<compile_context>
chip_gen: v5e
topology: v5e:2x2
jax: 0.10.0
libtpu: 0.0.40
codegen_flags: <defaults>
</compile_context>

<pallas_src>
import functools

import numpy as np

import jax
import jax.numpy as jnp
from jax import lax
from jax.experimental import pallas as pl
from jax.experimental.pallas import tpu as pltpu


def _rup8(n):
    return (int(n) + 7) // 8 * 8


# ----------------------------------------------------------------------------
# Fused Pallas kernel (B images per grid step; lanes = B*H*W)
# ----------------------------------------------------------------------------
def _decoder_kernel(x_ref, mask_ref, w_ref, b_ref, o_ref, slab_ref, *, plan):
    f32 = jnp.float32
    W = plan["W"]
    L = plan["L"]
    S = plan["S"]
    cin_p, hid_p, res_p, c1_p = (plan["cin_p"], plan["hid_p"],
                                 plan["res_p"], plan["c1_p"])
    mask_idx = plan["mask_idx"]

    def shift(blk, dy, dx):
        """blk[:, q] -> blk[:, q + dy*W + dx]; zero outside the image owning lane q."""
        if (dy, dx) == (0, 0):
            return blk
        s = dy * W + dx
        blk = pltpu.roll(blk, shift=(-s) % L, axis=1)          # XLU lane rotate
        m = mask_idx[(dy, dx)]
        return blk * mask_ref[m:m + 1, :]                      # combined boundary mask

    def wslice(off, rows, cols):
        return w_ref[off:off + rows, 0:cols], b_ref[off:off + rows, :]

    def conv(act, taps, off, co, blk_rows):
        """Sum-of-shifts conv as ONE im2col matmul: (co, K) @ (K, L), K = ntaps*blk_rows.

        blk_rows is always a multiple of 8, so every slab store is a full unmasked vst
        at an 8-aligned sublane offset."""
        for t, (r0, dy, dx) in enumerate(taps):
            slab_ref[t * blk_rows:(t + 1) * blk_rows, :] = shift(
                act[r0:r0 + blk_rows, :], dy, dx)
        K = len(taps) * blk_rows
        w, b = wslice(off, co, K)
        return jnp.dot(w, slab_ref[0:K, :], preferred_element_type=f32) + b

    relu = lambda a: jnp.maximum(a, 0.0)

    x = x_ref[0]                                               # (cin_p, L) f32
    taps3 = [(0, dy, dx) for dy, dx in plan["taps9"]]

    # bottleneck 3x3 conv (padding=1)
    y = conv(x, taps3, plan["off_bn"], hid_p, cin_p)           # (hid_p, L)

    # residual stacks: y + conv1x1(relu(conv3x3(relu(y))))
    for o1, o2 in plan["stack_offs"]:
        h = conv(relu(y), taps3, o1, res_p, hid_p)             # (res_p, L)
        w2, b2 = wslice(o2, hid_p, res_p)
        y = y + jnp.dot(w2, relu(h), preferred_element_type=f32) + b2

    # ConvTranspose2d #1 (polyphase): s*s phase maps of c1_p rows each, one matmul.
    ct1_taps = [(0, dy, dx) for dy, dx in plan["ct1_taps"]]
    y1 = relu(conv(relu(y), ct1_taps, plan["off_ct1"], S * c1_p, hid_p))

    # ConvTranspose2d #2, polyphase composed over ct1's phase maps.
    ct2_taps = [(src * c1_p, dy, dx) for src, dy, dx in plan["ct2_taps"]]
    out = conv(y1, ct2_taps, plan["off_ct2"], S * S, c1_p)     # (S*S, L)
    o_ref[0] = out.astype(o_ref.dtype)


# ----------------------------------------------------------------------------
# One-time parameter preparation (outside the jitted forward)
# ----------------------------------------------------------------------------
def _ct_axis_taps(r, k, s, p):
    """1-D ConvTranspose(k, s, p) taps for output residue r:
    out[s*q + r] += in[q + d] * w[kidx] for every (d, kidx) returned."""
    taps = []
    for d in range(-k, k + 1):
        kidx = r + p - s * d
        if 0 <= kidx < k:
            taps.append((d, kidx))
    return taps


def prepare_params(params, *, kernel_size, stride, H, W):
    """PyTorch-layout params -> packed weight slab, packed bias column, masks, plan."""
    k, s = int(kernel_size), int(stride)
    p_ct = k // s - 1                                  # padding used by the module
    # Polyphase path assumes ConvTranspose output == stride * input (true for the
    # module's kernel_size=4, stride=2 configuration).
    assert k == s + 2 * p_ct, "unsupported (kernel_size, stride) for the polyphase path"
    # TODO(synk): general kernel_size/stride combos (ragged polyphase output sizes).

    w_bn = np.asarray(params["bottleneck_w"], np.float32)       # (hidden, c_in, 3, 3)
    hidden, c_in = int(w_bn.shape[0]), int(w_bn.shape[1])
    w_ct1 = np.asarray(params["ct1_w"], np.float32)             # (hidden, c1, k, k)
    w_ct2 = np.asarray(params["ct2_w"], np.float32)             # (c1, 1, k, k)
    c1 = int(w_ct1.shape[1])
    assert int(w_ct2.shape[1]) == 1                             # module fixes out_channels=1

    res_blocks = params["res_blocks"]
    res_ch = int(np.asarray(res_blocks[0]["w1"]).shape[0]) if res_blocks else 8

    cin_p, hid_p, res_p, c1_p = map(_rup8, (c_in, hidden, res_ch, c1))
    S = s * s
    taps9 = [(dy, dx) for dy in (-1, 0, 1) for dx in (-1, 0, 1)]

    # --- ConvTranspose #1 as a polyphase stride-1 conv over its input ----------------
    ax = [_ct_axis_taps(r, k, s, p_ct) for r in range(s)]
    deltas = sorted({d for taps in ax for d, _ in taps})
    nT = len(deltas)
    tix = {d: i for i, d in enumerate(deltas)}
    ct1_taps = [(dy, dx) for dy in deltas for dx in deltas]

    # --- ConvTranspose #2 composed with ct1's phase decomposition --------------------
    comp, src_set = {}, set()
    for r2 in range(s):
        for r1 in range(s):
            lst = []
            for d2, kidx in ax[r2]:
                t = r1 + d2
                lst.append((t % s, t // s, kidx))
                src_set.add((t % s, t // s))
            comp[(r2, r1)] = lst
    srcs = sorted(src_set)                  # per-axis (source phase, shift) pairs
    six = {sd: i for i, sd in enumerate(srcs)}
    nS = len(srcs)
    ct2_taps = [(sy * s + sx, dy, dx) for (sy, dy) in srcs for (sx, dx) in srcs]

    # --- one packed weight slab + one packed bias column (per-layer row offsets) -----
    cursor = [0]

    def alloc(rows):
        off = cursor[0]
        cursor[0] += rows
        return off

    off_bn = alloc(hid_p)
    stack_offs = [(alloc(res_p), alloc(hid_p)) for _ in res_blocks]
    off_ct1 = alloc(S * c1_p)
    off_ct2 = alloc(_rup8(S * S))
    R = _rup8(cursor[0])

    K_max = max(9 * cin_p, 9 * hid_p, res_p,
                len(ct1_taps) * hid_p, len(ct2_taps) * c1_p, 128)

    Wp = np.zeros((R, K_max), np.float32)
    Bp = np.zeros((R, 1), np.float32)

    # bottleneck 3x3 (Conv2d OIHW, padding=1): tap (dy,dx) -> kernel pos (dy+1, dx+1)
    for t, (dy, dx) in enumerate(taps9):
        Wp[off_bn:off_bn + hidden, t * cin_p:t * cin_p + c_in] = w_bn[:, :, dy + 1, dx + 1]
    Bp[off_bn:off_bn + hidden, 0] = np.asarray(params["bottleneck_b"], np.float32)

    # residual stacks
    for rb, (o1, o2) in zip(res_blocks, stack_offs):
        w1 = np.asarray(rb["w1"], np.float32)                   # (res, hidden, 3, 3)
        w2 = np.asarray(rb["w2"], np.float32)                   # (hidden, res, 1, 1)
        for t, (dy, dx) in enumerate(taps9):
            Wp[o1:o1 + res_ch, t * hid_p:t * hid_p + hidden] = w1[:, :, dy + 1, dx + 1]
        Bp[o1:o1 + res_ch, 0] = np.asarray(rb["b1"], np.float32)
        Wp[o2:o2 + hidden, 0:res_ch] = w2[:, :, 0, 0]
        Bp[o2:o2 + hidden, 0] = np.asarray(rb["b2"], np.float32)

    # ConvTranspose #1 (weight IOHW): phase (ry,rx) row-block x tap (dy,dx) col-block
    bc1 = np.asarray(params["ct1_b"], np.float32)
    for ry in range(s):
        for rx in range(s):
            r0 = off_ct1 + (ry * s + rx) * c1_p
            for dy, ky in ax[ry]:
                for dx, kx in ax[rx]:
                    c0 = (tix[dy] * nT + tix[dx]) * hid_p
                    Wp[r0:r0 + c1, c0:c0 + hidden] += w_ct1[:, :, ky, kx].T
            Bp[r0:r0 + c1, 0] = bc1

    # ConvTranspose #2 composed over ct1's phase maps
    for r2y in range(s):
        for r1y in range(s):
            py = s * r1y + r2y
            for r2x in range(s):
                for r1x in range(s):
                    px = s * r1x + r2x
                    row = off_ct2 + py * S + px
                    for sy, dy, ky in comp[(r2y, r1y)]:
                        for sx, dx, kx in comp[(r2x, r1x)]:
                            c0 = (six[(sy, dy)] * nS + six[(sx, dx)]) * c1_p
                            Wp[row, c0:c0 + c1] += w_ct2[:, 0, ky, kx]
    Bp[off_ct2:off_ct2 + S * S, 0] = float(np.asarray(params["ct2_b"]).reshape(-1)[0])

    # --- per-image combined boundary masks for every distinct non-zero (dy, dx) tap --
    all_dydx = sorted((set(taps9) | set(ct1_taps) |
                       {(dy, dx) for _, dy, dx in ct2_taps}) - {(0, 0)})
    mask_idx = {dd: i for i, dd in enumerate(all_dydx)}
    yy, xx = np.meshgrid(np.arange(H), np.arange(W), indexing="ij")
    if all_dydx:
        mask_img = np.stack(
            [(((yy + dy) >= 0) & ((yy + dy) < H) &
              ((xx + dx) >= 0) & ((xx + dx) < W)).astype(np.float32).reshape(-1)
             for dy, dx in all_dydx])
    else:
        mask_img = np.ones((1, H * W), np.float32)

    plan = dict(H=H, W=W, S=S, c_in=c_in,
                cin_p=cin_p, hid_p=hid_p, res_p=res_p, c1_p=c1_p,
                taps9=taps9, ct1_taps=ct1_taps, ct2_taps=ct2_taps,
                mask_idx=mask_idx, K_max=K_max,
                off_bn=off_bn, stack_offs=stack_offs,
                off_ct1=off_ct1, off_ct2=off_ct2)
    return {"plan": plan,
            "Wp": jnp.asarray(Wp), "Bp": jnp.asarray(Bp),
            "mask_img": mask_img}


# ----------------------------------------------------------------------------
# Fused forward wrapper
# ----------------------------------------------------------------------------
def decoder_forward(x_nchw, prep, *, lane_batch=None):
    """Fused Pallas forward.  x: (N, Cin, H, W) -> (N, stride^2*H, stride^2*W)."""
    plan, Wp, Bp, mask_img = prep["plan"], prep["Wp"], prep["Bp"], prep["mask_img"]
    H, W, S = plan["H"], plan["W"], plan["S"]
    HW = H * W
    N, c_in = x_nchw.shape[0], x_nchw.shape[1]
    assert (x_nchw.shape[2], x_nchw.shape[3]) == (H, W)
    assert c_in == plan["c_in"]
    cin_p = plan["cin_p"]

    # Fold the batch into the lane axis: B images per grid step amortize the per-step
    # fixed overhead and per-matmul weight pushes; lane extent stays a multiple of 256.
    if lane_batch is None:
        lane_batch = max(1, min(N, 2048 // HW))
    B = int(lane_batch)
    G = -(-N // B)
    Np = G * B
    L = B * HW

    x = x_nchw.astype(jnp.float32)
    x = jnp.pad(x, ((0, Np - N), (0, cin_p - c_in), (0, 0), (0, 0)))
    # (G, B, cin_p, HW) -> (G, cin_p, B*HW); image b owns lanes [b*HW, (b+1)*HW)
    x = x.reshape(G, B, cin_p, HW).transpose(0, 2, 1, 3).reshape(G, cin_p, L)

    masks = jnp.asarray(np.tile(mask_img, (1, B)))               # (n_taps, L)

    kplan = dict(plan, L=L)
    n_phase = S * S

    # NOTE: at production DCASE sizes (larger H*W / channel counts) add spatial tiling
    # to the BlockSpecs, set vmem_limit_bytes (v7x has only 64 MiB physical VMEM) and
    # single-buffer the grid-invariant masks/Wp/Bp specs.
    out = pl.pallas_call(
        functools.partial(_decoder_kernel, plan=kplan),
        out_shape=jax.ShapeDtypeStruct((G, n_phase, L), jnp.float32),
        grid=(G,),
        in_specs=[
            pl.BlockSpec((1, cin_p, L), lambda g: (g, 0, 0)),
            pl.BlockSpec(masks.shape, lambda g: (0, 0)),
            pl.BlockSpec(Wp.shape, lambda g: (0, 0)),
            pl.BlockSpec(Bp.shape, lambda g: (0, 0)),
        ],
        out_specs=pl.BlockSpec((1, n_phase, L), lambda g: (g, 0, 0)),
        scratch_shapes=[pltpu.VMEM((plan["K_max"], L), jnp.float32)],   # im2col slab
        compiler_params=pltpu.CompilerParams(
            dimension_semantics=("parallel",)),
    )(x, masks, Wp, Bp)

    # Interleave the polyphase outputs -> (N, S*H, S*W); out_channels==1 is squeezed.
    # (If the consumer accepts phase-major output this extra HBM pass can be skipped.)
    out = (out.reshape(G, S, S, B, H, W)
              .transpose(0, 3, 4, 1, 5, 2)
              .reshape(Np, S * H, S * W))
    return out[:N]


# ----------------------------------------------------------------------------
# Deterministic parameter init (PyTorch layouts: Conv OIHW, ConvTranspose IOHW)
# ----------------------------------------------------------------------------
def init_params(key, in_ch, hidden, res_ch, k, num_stacks):
    def w(kk, shape, fan_in):
        return jax.random.normal(kk, shape, jnp.float32) / jnp.sqrt(float(fan_in))

    def b(kk, n):
        return jax.random.normal(kk, (n,), jnp.float32) * 0.1

    keys = iter(jax.random.split(key, 6 + 4 * num_stacks))
    p = {"bottleneck_w": w(next(keys), (hidden, in_ch, 3, 3), 9 * in_ch),
         "bottleneck_b": b(next(keys), hidden),
         "res_blocks": []}
    for _ in range(num_stacks):
        p["res_blocks"].append({
            "w1": w(next(keys), (res_ch, hidden, 3, 3), 9 * hidden),
            "b1": b(next(keys), res_ch),
            "w2": w(next(keys), (hidden, res_ch, 1, 1), res_ch),
            "b2": b(next(keys), hidden)})
    p["ct1_w"] = w(next(keys), (hidden, hidden // 2, k, k), hidden * k * k)
    p["ct1_b"] = b(next(keys), hidden // 2)
    p["ct2_w"] = w(next(keys), (hidden // 2, 1, k, k), (hidden // 2) * k * k)
    p["ct2_b"] = b(next(keys), 1)
    return p


# ----------------------------------------------------------------------------
# Pure-JAX reference (PyTorch semantics, for correctness check)
# ----------------------------------------------------------------------------
def _ref_conv(x, w, b, pad):
    y = lax.conv_general_dilated(
        x, w, (1, 1), ((pad, pad), (pad, pad)),
        dimension_numbers=("NCHW", "OIHW", "NCHW"),
        precision=lax.Precision.HIGHEST)
    return y + b.reshape(1, -1, 1, 1)


def _ref_conv_transpose(x, wt, b, k, stride, padding):
    w_eq = jnp.transpose(wt[:, :, ::-1, ::-1], (1, 0, 2, 3))    # (Cout, Cin, k, k)
    kp = k - 1 - padding
    y = lax.conv_general_dilated(
        x, w_eq, (1, 1), ((kp, kp), (kp, kp)),
        lhs_dilation=(stride, stride),
        dimension_numbers=("NCHW", "OIHW", "NCHW"),
        precision=lax.Precision.HIGHEST)
    return y + b.reshape(1, -1, 1, 1)


def ref_forward(x, p, *, kernel_size, stride):
    y = _ref_conv(x, p["bottleneck_w"], p["bottleneck_b"], 1)
    for rb in p["res_blocks"]:
        h = _ref_conv(jax.nn.relu(y), rb["w1"], rb["b1"], 1)
        y = y + _ref_conv(jax.nn.relu(h), rb["w2"], rb["b2"], 0)
    pt = kernel_size // stride - 1
    y = _ref_conv_transpose(jax.nn.relu(y), p["ct1_w"], p["ct1_b"], kernel_size, stride, pt)
    y = _ref_conv_transpose(jax.nn.relu(y), p["ct2_w"], p["ct2_b"], kernel_size, stride, pt)
    return y[:, 0]                                               # squeeze(dim=1)


# ----------------------------------------------------------------------------
if __name__ == "__main__":
    key = jax.random.PRNGKey(0)
    kx, kp = jax.random.split(key)

    # Decoder(in_channels=4, hidden_channels=8, res_channels=4,
    #         kernel_size=4, stride=2, num_stacks=2) on a 16x16 input.
    N, Cin, H, W = 2, 4, 16, 16
    hidden, res_ch, ksz, stride, num_stacks = 8, 4, 4, 2, 2

    x = jax.random.normal(kx, (N, Cin, H, W), jnp.float32)
    params = init_params(kp, Cin, hidden, res_ch, ksz, num_stacks)
    prep = prepare_params(params, kernel_size=ksz, stride=stride, H=H, W=W)

    fwd = jax.jit(functools.partial(decoder_forward, prep=prep))
    out = jax.block_until_ready(fwd(x))
    assert out.shape == (N, H * stride * stride, W * stride * stride), out.shape

    ref = jax.block_until_ready(ref_forward(x, params, kernel_size=ksz, stride=stride))
    max_err = float(jnp.max(jnp.abs(out - ref)))
    # kernel matmuls run at default (bf16-pass) MXU precision vs HIGHEST-precision ref
    assert max_err < 5e-2, f"mismatch vs reference: {max_err}"

    print("KERNEL_OK")
</pallas_src>

<mosaic_0001>
module attributes {stable_mosaic.version = 11 : i64} {
  func.func @_decoder_kernel(%arg0: i32, %arg1: memref<1x8x512xf32, #tpu.memory_space<vmem>>, %arg2: memref<8x512xf32, #tpu.memory_space<vmem>>, %arg3: memref<88x128xf32, #tpu.memory_space<vmem>>, %arg4: memref<88x1xf32, #tpu.memory_space<vmem>>, %arg5: memref<1x16x512xf32, #tpu.memory_space<vmem>>, %arg6: memref<128x512xf32, #tpu.memory_space<vmem>>) attributes {dimension_semantics = [#tpu.dimension_semantics<parallel>], iteration_bounds = array<i64: 1>, scalar_prefetch = 0 : i64, scratch_operands = 1 : i64, tpu.core_type = #tpu.core_type<tc>, window_params = [{transform_indices = @transform_0, window_bounds = array<i64: 1, 8, 512>}, {pipeline_mode = #tpu.pipeline_mode<synchronous>, transform_indices = @transform_1, window_bounds = array<i64: 8, 512>}, {pipeline_mode = #tpu.pipeline_mode<synchronous>, transform_indices = @transform_2, window_bounds = array<i64: 88, 128>}, {pipeline_mode = #tpu.pipeline_mode<synchronous>, transform_indices = @transform_3, window_bounds = array<i64: 88, 1>}, {transform_indices = @transform_4, window_bounds = array<i64: 1, 16, 512>}]} {
    %c0 = arith.constant 0 : index
    %c0_0 = arith.constant 0 : index
    %c0_1 = arith.constant 0 : index
    %0 = vector.load %arg1[%c0, %c0_0, %c0_1] : memref<1x8x512xf32, #tpu.memory_space<vmem>>, vector<1x8x512xf32>
    %1 = vector.shape_cast %0 : vector<1x8x512xf32> to vector<8x512xf32>
    %c17_i32 = arith.constant 17 : i32
    %2 = tpu.dynamic_rotate %1 by %c17_i32 dim 1 : vector<8x512xf32>, i32 -> vector<8x512xf32>
    %c0_2 = arith.constant 0 : index
    %c0_3 = arith.constant 0 : index
    %3 = vector.load %arg2[%c0_2, %c0_3] : memref<8x512xf32, #tpu.memory_space<vmem>>, vector<1x512xf32>
    %4 = vector.broadcast %3 : vector<1x512xf32> to vector<8x512xf32>
    %5 = arith.mulf %2, %4 : vector<8x512xf32>
    %c0_4 = arith.constant 0 : index
    %c0_5 = arith.constant 0 : index
    %6 = vector.load %arg6[%c0_4, %c0_5] : memref<128x512xf32, #tpu.memory_space<vmem>>, vector<8x512xf32>
    tpu.vector_store %arg6[%c0_4, %c0_5], %5 {strides = array<i32>} : memref<128x512xf32, #tpu.memory_space<vmem>>, vector<8x512xf32>,
    %c16_i32 = arith.constant 16 : i32
    %7 = tpu.dynamic_rotate %1 by %c16_i32 dim 1 : vector<8x512xf32>, i32 -> vector<8x512xf32>
    %c1 = arith.constant 1 : index
    %c0_6 = arith.constant 0 : index
    %8 = vector.load %arg2[%c1, %c0_6] : memref<8x512xf32, #tpu.memory_space<vmem>>, vector<1x512xf32>
    %9 = vector.broadcast %8 : vector<1x512xf32> to vector<8x512xf32>
    %10 = arith.mulf %7, %9 : vector<8x512xf32>
    %c8 = arith.constant 8 : index
    %c0_7 = arith.constant 0 : index
    %11 = vector.load %arg6[%c8, %c0_7] : memref<128x512xf32, #tpu.memory_space<vmem>>, vector<8x512xf32>
    tpu.vector_store %arg6[%c8, %c0_7], %10 {strides = array<i32>} : memref<128x512xf32, #tpu.memory_space<vmem>>, vector<8x512xf32>,
    %c15_i32 = arith.constant 15 : i32
    %12 = tpu.dynamic_rotate %1 by %c15_i32 dim 1 : vector<8x512xf32>, i32 -> vector<8x512xf32>
    %c2 = arith.constant 2 : index
    %c0_8 = arith.constant 0 : index
    %13 = vector.load %arg2[%c2, %c0_8] : memref<8x512xf32, #tpu.memory_space<vmem>>, vector<1x512xf32>
    %14 = vector.broadcast %13 : vector<1x512xf32> to vector<8x512xf32>
    %15 = arith.mulf %12, %14 : vector<8x512xf32>
    %c16 = arith.constant 16 : index
    %c0_9 = arith.constant 0 : index
    %16 = vector.load %arg6[%c16, %c0_9] : memref<128x512xf32, #tpu.memory_space<vmem>>, vector<8x512xf32>
    tpu.vector_store %arg6[%c16, %c0_9], %15 {strides = array<i32>} : memref<128x512xf32, #tpu.memory_space<vmem>>, vector<8x512xf32>,
    %c1_i32 = arith.constant 1 : i32
    %17 = tpu.dynamic_rotate %1 by %c1_i32 dim 1 : vector<8x512xf32>, i32 -> vector<8x512xf32>
    %c3 = arith.constant 3 : index
    %c0_10 = arith.constant 0 : index
    %18 = vector.load %arg2[%c3, %c0_10] : memref<8x512xf32, #tpu.memory_space<vmem>>, vector<1x512xf32>
    %19 = vector.broadcast %18 : vector<1x512xf32> to vector<8x512xf32>
    %20 = arith.mulf %17, %19 : vector<8x512xf32>
    %c24 = arith.constant 24 : index
    %c0_11 = arith.constant 0 : index
    %21 = vector.load %arg6[%c24, %c0_11] : memref<128x512xf32, #tpu.memory_space<vmem>>, vector<8x512xf32>
    tpu.vector_store %arg6[%c24, %c0_11], %20 {strides = array<i32>} : memref<128x512xf32, #tpu.memory_space<vmem>>, vector<8x512xf32>,
    %c32 = arith.constant 32 : index
    %c0_12 = arith.constant 0 : index
    %22 = vector.load %arg6[%c32, %c0_12] : memref<128x512xf32, #tpu.memory_space<vmem>>, vector<8x512xf32>
    tpu.vector_store %arg6[%c32, %c0_12], %1 {strides = array<i32>} : memref<128x512xf32, #tpu.memory_space<vmem>>, vector<8x512xf32>,
    %c511_i32 = arith.constant 511 : i32
    %23 = tpu.dynamic_rotate %1 by %c511_i32 dim 1 : vector<8x512xf32>, i32 -> vector<8x512xf32>
    %c4 = arith.constant 4 : index
    %c0_13 = arith.constant 0 : index
    %24 = vector.load %arg2[%c4, %c0_13] : memref<8x512xf32, #tpu.memory_space<vmem>>, vector<1x512xf32>
    %25 = vector.broadcast %24 : vector<1x512xf32> to vector<8x512xf32>
    %26 = arith.mulf %23, %25 : vector<8x512xf32>
    %c40 = arith.constant 40 : index
    %c0_14 = arith.constant 0 : index
    %27 = vector.load %arg6[%c40, %c0_14] : memref<128x512xf32, #tpu.memory_space<vmem>>, vector<8x512xf32>
    tpu.vector_store %arg6[%c40, %c0_14], %26 {strides = array<i32>} : memref<128x512xf32, #tpu.memory_space<vmem>>, vector<8x512xf32>,
    %c497_i32 = arith.constant 497 : i32
    %28 = tpu.dynamic_rotate %1 by %c497_i32 dim 1 : vector<8x512xf32>, i32 -> vector<8x512xf32>
    %c5 = arith.constant 5 : index
    %c0_15 = arith.constant 0 : index
    %29 = vector.load %arg2[%c5, %c0_15] : memref<8x512xf32, #tpu.memory_space<vmem>>, vector<1x512xf32>
    %30 = vector.broadcast %29 : vector<1x512xf32> to vector<8x512xf32>
    %31 = arith.mulf %28, %30 : vector<8x512xf32>
    %c48 = arith.constant 48 : index
    %c0_16 = arith.constant 0 : index
    %32 = vector.load %arg6[%c48, %c0_16] : memref<128x512xf32, #tpu.memory_space<vmem>>, vector<8x512xf32>
    tpu.vector_store %arg6[%c48, %c0_16], %31 {strides = array<i32>} : memref<128x512xf32, #tpu.memory_space<vmem>>, vector<8x512xf32>,
    %c496_i32 = arith.constant 496 : i32
    %33 = tpu.dynamic_rotate %1 by %c496_i32 dim 1 : vector<8x512xf32>, i32 -> vector<8x512xf32>
    %c6 = arith.constant 6 : index
    %c0_17 = arith.constant 0 : index
    %34 = vector.load %arg2[%c6, %c0_17] : memref<8x512xf32, #tpu.memory_space<vmem>>, vector<1x512xf32>
    %35 = vector.broadcast %34 : vector<1x512xf32> to vector<8x512xf32>
    %36 = arith.mulf %33, %35 : vector<8x512xf32>
    %c56 = arith.constant 56 : index
    %c0_18 = arith.constant 0 : index
    %37 = vector.load %arg6[%c56, %c0_18] : memref<128x512xf32, #tpu.memory_space<vmem>>, vector<8x512xf32>
    tpu.vector_store %arg6[%c56, %c0_18], %36 {strides = array<i32>} : memref<128x512xf32, #tpu.memory_space<vmem>>, vector<8x512xf32>,
    %c495_i32 = arith.constant 495 : i32
    %38 = tpu.dynamic_rotate %1 by %c495_i32 dim 1 : vector<8x512xf32>, i32 -> vector<8x512xf32>
    %c7 = arith.constant 7 : index
    %c0_19 = arith.constant 0 : index
    %39 = vector.load %arg2[%c7, %c0_19] : memref<8x512xf32, #tpu.memory_space<vmem>>, vector<1x512xf32>
    %40 = vector.broadcast %39 : vector<1x512xf32> to vector<8x512xf32>
    %41 = arith.mulf %38, %40 : vector<8x512xf32>
    %c64 = arith.constant 64 : index
    %c0_20 = arith.constant 0 : index
    %42 = vector.load %arg6[%c64, %c0_20] : memref<128x512xf32, #tpu.memory_space<vmem>>, vector<8x512xf32>
    tpu.vector_store %arg6[%c64, %c0_20], %41 {strides = array<i32>} : memref<128x512xf32, #tpu.memory_space<vmem>>, vector<8x512xf32>,
    %c0_21 = arith.constant 0 : index
    %c0_22 = arith.constant 0 : index
    %43 = vector.load %arg3[%c0_21, %c0_22] : memref<88x128xf32, #tpu.memory_space<vmem>>, vector<8x72xf32>
    %c0_23 = arith.constant 0 : index
    %c0_24 = arith.constant 0 : index
    %44 = vector.load %arg4[%c0_23, %c0_24] : memref<88x1xf32, #tpu.memory_space<vmem>>, vector<8x1xf32>
    %c0_25 = arith.constant 0 : index
    %c0_26 = arith.constant 0 : index
    %45 = vector.load %arg6[%c0_25, %c0_26] : memref<128x512xf32, #tpu.memory_space<vmem>>, vector<72x512xf32>
    %cst = arith.constant dense<0.000000e+00> : vector<8x512xf32>
    %46 = tpu.matmul %43, %45, %cst {dimension_numbers = #tpu.dot_dimension_numbers<[1], [0], [0], [1], [0, 0, 1, 1], [], []>} : vector<8x72xf32>, vector<72x512xf32>, vector<8x512xf32> -> vector<8x512xf32>
    %47 = vector.broadcast %44 : vector<8x1xf32> to vector<8x512xf32>
    %48 = arith.addf %46, %47 : vector<8x512xf32>
    %cst_27 = arith.constant 0.000000e+00 : f32
    %49 = vector.broadcast %cst_27 : f32 to vector<8x512xf32>
    %50 = arith.maximumf %48, %49 : vector<8x512xf32>
    %c17_i32_28 = arith.constant 17 : i32
    %51 = tpu.dynamic_rotate %50 by %c17_i32_28 dim 1 : vector<8x512xf32>, i32 -> vector<8x512xf32>
    %c0_29 = arith.constant 0 : index
    %c0_30 = arith.constant 0 : index
    %52 = vector.load %arg2[%c0_29, %c0_30] : memref<8x512xf32, #tpu.memory_space<vmem>>, vector<1x512xf32>
    %53 = vector.broadcast %52 : vector<1x512xf32> to vector<8x512xf32>
    %54 = arith.mulf %51, %53 : vector<8x512xf32>
    %c0_31 = arith.constant 0 : index
    %c0_32 = arith.constant 0 : index
    %55 = vector.load %arg6[%c0_31, %c0_32] : memref<128x512xf32, #tpu.memory_space<vmem>>, vector<8x512xf32>
    tpu.vector_store %arg6[%c0_31, %c0_32], %54 {strides = array<i32>} : memref<128x512xf32, #tpu.memory_space<vmem>>, vector<8x512xf32>,
    %c16_i32_33 = arith.constant 16 : i32
    %56 = tpu.dynamic_rotate %50 by %c16_i32_33 dim 1 : vector<8x512xf32>, i32 -> vector<8x512xf32>
    %c1_34 = arith.constant 1 : index
    %c0_35 = arith.constant 0 : index
    %57 = vector.load %arg2[%c1_34, %c0_35] : memref<8x512xf32, #tpu.memory_space<vmem>>, vector<1x512xf32>
    %58 = vector.broadcast %57 : vector<1x512xf32> to vector<8x512xf32>
    %59 = arith.mulf %56, %58 : vector<8x512xf32>
    %c8_36 = arith.constant 8 : index
    %c0_37 = arith.constant 0 : index
    %60 = vector.load %arg6[%c8_36, %c0_37] : memref<128x512xf32, #tpu.memory_space<vmem>>, vector<8x512xf32>
    tpu.vector_store %arg6[%c8_36, %c0_37], %59 {strides = array<i32>} : memref<128x512xf32, #tpu.memory_space<vmem>>, vector<8x512xf32>,
    %c15_i32_38 = arith.constant 15 : i32
    %61 = tpu.dynamic_rotate %50 by %c15_i32_38 dim 1 : vector<8x512xf32>, i32 -> vector<8x512xf32>
    %c2_39 = arith.constant 2 : index
    %c0_40 = arith.constant 0 : index
    %62 = vector.load %arg2[%c2_39, %c0_40] : memref<8x512xf32, #tpu.memory_space<vmem>>, vector<1x512xf32>
    %63 = vector.broadcast %62 : vector<1x512xf32> to vector<8x512xf32>
    %64 = arith.mulf %61, %63 : vector<8x512xf32>
    %c16_41 = arith.constant 16 : index
    %c0_42 = arith.constant 0 : index
    %65 = vector.load %arg6[%c16_41, %c0_42] : memref<128x512xf32, #tpu.memory_space<vmem>>, vector<8x512xf32>
    tpu.vector_store %arg6[%c16_41, %c0_42], %64 {strides = array<i32>} : memref<128x512xf32, #tpu.memory_space<vmem>>, vector<8x512xf32>,
    %c1_i32_43 = arith.constant 1 : i32
    %66 = tpu.dynamic_rotate %50 by %c1_i32_43 dim 1 : vector<8x512xf32>, i32 -> vector<8x512xf32>
    %c3_44 = arith.constant 3 : index
    %c0_45 = arith.constant 0 : index
    %67 = vector.load %arg2[%c3_44, %c0_45] : memref<8x512xf32, #tpu.memory_space<vmem>>, vector<1x512xf32>
    %68 = vector.broadcast %67 : vector<1x512xf32> to vector<8x512xf32>
    %69 = arith.mulf %66, %68 : vector<8x512xf32>
    %c24_46 = arith.constant 24 : index
    %c0_47 = arith.constant 0 : index
    %70 = vector.load %arg6[%c24_46, %c0_47] : memref<128x512xf32, #tpu.memory_space<vmem>>, vector<8x512xf32>
    tpu.vector_store %arg6[%c24_46, %c0_47], %69 {strides = array<i32>} : memref<128x512xf32, #tpu.memory_space<vmem>>, vector<8x512xf32>,
    %c32_48 = arith.constant 32 : index
    %c0_49 = arith.constant 0 : index
    %71 = vector.load %arg6[%c32_48, %c0_49] : memref<128x512xf32, #tpu.memory_space<vmem>>, vector<8x512xf32>
    tpu.vector_store %arg6[%c32_48, %c0_49], %50 {strides = array<i32>} : memref<128x512xf32, #tpu.memory_space<vmem>>, vector<8x512xf32>,
    %c511_i32_50 = arith.constant 511 : i32
    %72 = tpu.dynamic_rotate %50 by %c511_i32_50 dim 1 : vector<8x512xf32>, i32 -> vector<8x512xf32>
    %c4_51 = arith.constant 4 : index
    %c0_52 = arith.constant 0 : index
    %73 = vector.load %arg2[%c4_51, %c0_52] : memref<8x512xf32, #tpu.memory_space<vmem>>, vector<1x512xf32>
    %74 = vector.broadcast %73 : vector<1x512xf32> to vector<8x512xf32>
    %75 = arith.mulf %72, %74 : vector<8x512xf32>
    %c40_53 = arith.constant 40 : index
    %c0_54 = arith.constant 0 : index
    %76 = vector.load %arg6[%c40_53, %c0_54] : memref<128x512xf32, #tpu.memory_space<vmem>>, vector<8x512xf32>
    tpu.vector_store %arg6[%c40_53, %c0_54], %75 {strides = array<i32>} : memref<128x512xf32, #tpu.memory_space<vmem>>, vector<8x512xf32>,
    %c497_i32_55 = arith.constant 497 : i32
    %77 = tpu.dynamic_rotate %50 by %c497_i32_55 dim 1 : vector<8x512xf32>, i32 -> vector<8x512xf32>
    %c5_56 = arith.constant 5 : index
    %c0_57 = arith.constant 0 : index
    %78 = vector.load %arg2[%c5_56, %c0_57] : memref<8x512xf32, #tpu.memory_space<vmem>>, vector<1x512xf32>
    %79 = vector.broadcast %78 : vector<1x512xf32> to vector<8x512xf32>
    %80 = arith.mulf %77, %79 : vector<8x512xf32>
    %c48_58 = arith.constant 48 : index
    %c0_59 = arith.constant 0 : index
    %81 = vector.load %arg6[%c48_58, %c0_59] : memref<128x512xf32, #tpu.memory_space<vmem>>, vector<8x512xf32>
    tpu.vector_store %arg6[%c48_58, %c0_59], %80 {strides = array<i32>} : memref<128x512xf32, #tpu.memory_space<vmem>>, vector<8x512xf32>,
    %c496_i32_60 = arith.constant 496 : i32
    %82 = tpu.dynamic_rotate %50 by %c496_i32_60 dim 1 : vector<8x512xf32>, i32 -> vector<8x512xf32>
    %c6_61 = arith.constant 6 : index
    %c0_62 = arith.constant 0 : index
    %83 = vector.load %arg2[%c6_61, %c0_62] : memref<8x512xf32, #tpu.memory_space<vmem>>, vector<1x512xf32>
    %84 = vector.broadcast %83 : vector<1x512xf32> to vector<8x512xf32>
    %85 = arith.mulf %82, %84 : vector<8x512xf32>
    %c56_63 = arith.constant 56 : index
    %c0_64 = arith.constant 0 : index
    %86 = vector.load %arg6[%c56_63, %c0_64] : memref<128x512xf32, #tpu.memory_space<vmem>>, vector<8x512xf32>
    tpu.vector_store %arg6[%c56_63, %c0_64], %85 {strides = array<i32>} : memref<128x512xf32, #tpu.memory_space<vmem>>, vector<8x512xf32>,
    %c495_i32_65 = arith.constant 495 : i32
    %87 = tpu.dynamic_rotate %50 by %c495_i32_65 dim 1 : vector<8x512xf32>, i32 -> vector<8x512xf32>
    %c7_66 = arith.constant 7 : index
    %c0_67 = arith.constant 0 : index
    %88 = vector.load %arg2[%c7_66, %c0_67] : memref<8x512xf32, #tpu.memory_space<vmem>>, vector<1x512xf32>
    %89 = vector.broadcast %88 : vector<1x512xf32> to vector<8x512xf32>
    %90 = arith.mulf %87, %89 : vector<8x512xf32>
    %c64_68 = arith.constant 64 : index
    %c0_69 = arith.constant 0 : index
    %91 = vector.load %arg6[%c64_68, %c0_69] : memref<128x512xf32, #tpu.memory_space<vmem>>, vector<8x512xf32>
    tpu.vector_store %arg6[%c64_68, %c0_69], %90 {strides = array<i32>} : memref<128x512xf32, #tpu.memory_space<vmem>>, vector<8x512xf32>,
    %c8_70 = arith.constant 8 : index
    %c0_71 = arith.constant 0 : index
    %92 = vector.load %arg3[%c8_70, %c0_71] : memref<88x128xf32, #tpu.memory_space<vmem>>, vector<8x72xf32>
    %c8_72 = arith.constant 8 : index
    %c0_73 = arith.constant 0 : index
    %93 = vector.load %arg4[%c8_72, %c0_73] : memref<88x1xf32, #tpu.memory_space<vmem>>, vector<8x1xf32>
    %c0_74 = arith.constant 0 : index
    %c0_75 = arith.constant 0 : index
    %94 = vector.load %arg6[%c0_74, %c0_75] : memref<128x512xf32, #tpu.memory_space<vmem>>, vector<72x512xf32>
    %cst_76 = arith.constant dense<0.000000e+00> : vector<8x512xf32>
    %95 = tpu.matmul %92, %94, %cst_76 {dimension_numbers = #tpu.dot_dimension_numbers<[1], [0], [0], [1], [0, 0, 1, 1], [], []>} : vector<8x72xf32>, vector<72x512xf32>, vector<8x512xf32> -> vector<8x512xf32>
    %96 = vector.broadcast %93 : vector<8x1xf32> to vector<8x512xf32>
    %97 = arith.addf %95, %96 : vector<8x512xf32>
    %c16_77 = arith.constant 16 : index
    %c0_78 = arith.constant 0 : index
    %98 = vector.load %arg3[%c16_77, %c0_78] : memref<88x128xf32, #tpu.memory_space<vmem>>, vector<8x8xf32>
    %c16_79 = arith.constant 16 : index
    %c0_80 = arith.constant 0 : index
    %99 = vector.load %arg4[%c16_79, %c0_80] : memref<88x1xf32, #tpu.memory_space<vmem>>, vector<8x1xf32>
    %cst_81 = arith.constant 0.000000e+00 : f32
    %100 = vector.broadcast %cst_81 : f32 to vector<8x512xf32>
    %101 = arith.maximumf %97, %100 : vector<8x512xf32>
    %cst_82 = arith.constant dense<0.000000e+00> : vector<8x512xf32>
    %102 = tpu.matmul %98, %101, %cst_82 {dimension_numbers = #tpu.dot_dimension_numbers<[1], [0], [0], [1], [0, 0, 1, 1], [], []>} : vector<8x8xf32>, vector<8x512xf32>, vector<8x512xf32> -> vector<8x512xf32>
    %103 = arith.addf %48, %102 : vector<8x512xf32>
    %104 = vector.broadcast %99 : vector<8x1xf32> to vector<8x512xf32>
    %105 = arith.addf %103, %104 : vector<8x512xf32>
    %cst_83 = arith.constant 0.000000e+00 : f32
    %106 = vector.broadcast %cst_83 : f32 to vector<8x512xf32>
    %107 = arith.maximumf %105, %106 : vector<8x512xf32>
    %c17_i32_84 = arith.constant 17 : i32
    %108 = tpu.dynamic_rotate %107 by %c17_i32_84 dim 1 : vector<8x512xf32>, i32 -> vector<8x512xf32>
    %c0_85 = arith.constant 0 : index
    %c0_86 = arith.constant 0 : index
    %109 = vector.load %arg2[%c0_85, %c0_86] : memref<8x512xf32, #tpu.memory_space<vmem>>, vector<1x512xf32>
    %110 = vector.broadcast %109 : vector<1x512xf32> to vector<8x512xf32>
    %111 = arith.mulf %108, %110 : vector<8x512xf32>
    %c0_87 = arith.constant 0 : index
    %c0_88 = arith.constant 0 : index
    %112 = vector.load %arg6[%c0_87, %c0_88] : memref<128x512xf32, #tpu.memory_space<vmem>>, vector<8x512xf32>
    tpu.vector_store %arg6[%c0_87, %c0_88], %111 {strides = array<i32>} : memref<128x512xf32, #tpu.memory_space<vmem>>, vector<8x512xf32>,
    %c16_i32_89 = arith.constant 16 : i32
    %113 = tpu.dynamic_rotate %107 by %c16_i32_89 dim 1 : vector<8x512xf32>, i32 -> vector<8x512xf32>
    %c1_90 = arith.constant 1 : index
    %c0_91 = arith.constant 0 : index
    %114 = vector.load %arg2[%c1_90, %c0_91] : memref<8x512xf32, #tpu.memory_space<vmem>>, vector<1x512xf32>
    %115 = vector.broadcast %114 : vector<1x512xf32> to vector<8x512xf32>
    %116 = arith.mulf %113, %115 : vector<8x512xf32>
    %c8_92 = arith.constant 8 : index
    %c0_93 = arith.constant 0 : index
    %117 = vector.load %arg6[%c8_92, %c0_93] : memref<128x512xf32, #tpu.memory_space<vmem>>, vector<8x512xf32>
    tpu.vector_store %arg6[%c8_92, %c0_93], %116 {strides = array<i32>} : memref<128x512xf32, #tpu.memory_space<vmem>>, vector<8x512xf32>,
    %c15_i32_94 = arith.constant 15 : i32
    %118 = tpu.dynamic_rotate %107 by %c15_i32_94 dim 1 : vector<8x512xf32>, i32 -> vector<8x512xf32>
    %c2_95 = arith.constant 2 : index
    %c0_96 = arith.constant 0 : index
    %119 = vector.load %arg2[%c2_95, %c0_96] : memref<8x512xf32, #tpu.memory_space<vmem>>, vector<1x512xf32>
    %120 = vector.broadcast %119 : vector<1x512xf32> to vector<8x512xf32>
    %121 = arith.mulf %118, %120 : vector<8x512xf32>
    %c16_97 = arith.constant 16 : index
    %c0_98 = arith.constant 0 : index
    %122 = vector.load %arg6[%c16_97, %c0_98] : memref<128x512xf32, #tpu.memory_space<vmem>>, vector<8x512xf32>
    tpu.vector_store %arg6[%c16_97, %c0_98], %121 {strides = array<i32>} : memref<128x512xf32, #tpu.memory_space<vmem>>, vector<8x512xf32>,
    %c1_i32_99 = arith.constant 1 : i32
    %123 = tpu.dynamic_rotate %107 by %c1_i32_99 dim 1 : vector<8x512xf32>, i32 -> vector<8x512xf32>
    %c3_100 = arith.constant 3 : index
    %c0_101 = arith.constant 0 : index
    %124 = vector.load %arg2[%c3_100, %c0_101] : memref<8x512xf32, #tpu.memory_space<vmem>>, vector<1x512xf32>
    %125 = vector.broadcast %124 : vector<1x512xf32> to vector<8x512xf32>
    %126 = arith.mulf %123, %125 : vector<8x512xf32>
    %c24_102 = arith.constant 24 : index
    %c0_103 = arith.constant 0 : index
    %127 = vector.load %arg6[%c24_102, %c0_103] : memref<128x512xf32, #tpu.memory_space<vmem>>, vector<8x512xf32>
    tpu.vector_store %arg6[%c24_102, %c0_103], %126 {strides = array<i32>} : memref<128x512xf32, #tpu.memory_space<vmem>>, vector<8x512xf32>,
    %c32_104 = arith.constant 32 : index
    %c0_105 = arith.constant 0 : index
    %128 = vector.load %arg6[%c32_104, %c0_105] : memref<128x512xf32, #tpu.memory_space<vmem>>, vector<8x512xf32>
    tpu.vector_store %arg6[%c32_104, %c0_105], %107 {strides = array<i32>} : memref<128x512xf32, #tpu.memory_space<vmem>>, vector<8x512xf32>,
    %c511_i32_106 = arith.constant 511 : i32
    %129 = tpu.dynamic_rotate %107 by %c511_i32_106 dim 1 : vector<8x512xf32>, i32 -> vector<8x512xf32>
    %c4_107 = arith.constant 4 : index
    %c0_108 = arith.constant 0 : index
    %130 = vector.load %arg2[%c4_107, %c0_108] : memref<8x512xf32, #tpu.memory_space<vmem>>, vector<1x512xf32>
    %131 = vector.broadcast %130 : vector<1x512xf32> to vector<8x512xf32>
    %132 = arith.mulf %129, %131 : vector<8x512xf32>
    %c40_109 = arith.constant 40 : index
    %c0_110 = arith.constant 0 : index
    %133 = vector.load %arg6[%c40_109, %c0_110] : memref<128x512xf32, #tpu.memory_space<vmem>>, vector<8x512xf32>
    tpu.vector_store %arg6[%c40_109, %c0_110], %132 {strides = array<i32>} : memref<128x512xf32, #tpu.memory_space<vmem>>, vector<8x512xf32>,
    %c497_i32_111 = arith.constant 497 : i32
    %134 = tpu.dynamic_rotate %107 by %c497_i32_111 dim 1 : vector<8x512xf32>, i32 -> vector<8x512xf32>
    %c5_112 = arith.constant 5 : index
    %c0_113 = arith.constant 0 : index
    %135 = vector.load %arg2[%c5_112, %c0_113] : memref<8x512xf32, #tpu.memory_space<vmem>>, vector<1x512xf32>
    %136 = vector.broadcast %135 : vector<1x512xf32> to vector<8x512xf32>
    %137 = arith.mulf %134, %136 : vector<8x512xf32>
    %c48_114 = arith.constant 48 : index
    %c0_115 = arith.constant 0 : index
    %138 = vector.load %arg6[%c48_114, %c0_115] : memref<128x512xf32, #tpu.memory_space<vmem>>, vector<8x512xf32>
    tpu.vector_store %arg6[%c48_114, %c0_115], %137 {strides = array<i32>} : memref<128x512xf32, #tpu.memory_space<vmem>>, vector<8x512xf32>,
    %c496_i32_116 = arith.constant 496 : i32
    %139 = tpu.dynamic_rotate %107 by %c496_i32_116 dim 1 : vector<8x512xf32>, i32 -> vector<8x512xf32>
    %c6_117 = arith.constant 6 : index
    %c0_118 = arith.constant 0 : index
    %140 = vector.load %arg2[%c6_117, %c0_118] : memref<8x512xf32, #tpu.memory_space<vmem>>, vector<1x512xf32>
    %141 = vector.broadcast %140 : vector<1x512xf32> to vector<8x512xf32>
    %142 = arith.mulf %139, %141 : vector<8x512xf32>
    %c56_119 = arith.constant 56 : index
    %c0_120 = arith.constant 0 : index
    %143 = vector.load %arg6[%c56_119, %c0_120] : memref<128x512xf32, #tpu.memory_space<vmem>>, vector<8x512xf32>
    tpu.vector_store %arg6[%c56_119, %c0_120], %142 {strides = array<i32>} : memref<128x512xf32, #tpu.memory_space<vmem>>, vector<8x512xf32>,
    %c495_i32_121 = arith.constant 495 : i32
    %144 = tpu.dynamic_rotate %107 by %c495_i32_121 dim 1 : vector<8x512xf32>, i32 -> vector<8x512xf32>
    %c7_122 = arith.constant 7 : index
    %c0_123 = arith.constant 0 : index
    %145 = vector.load %arg2[%c7_122, %c0_123] : memref<8x512xf32, #tpu.memory_space<vmem>>, vector<1x512xf32>
    %146 = vector.broadcast %145 : vector<1x512xf32> to vector<8x512xf32>
    %147 = arith.mulf %144, %146 : vector<8x512xf32>
    %c64_124 = arith.constant 64 : index
    %c0_125 = arith.constant 0 : index
    %148 = vector.load %arg6[%c64_124, %c0_125] : memref<128x512xf32, #tpu.memory_space<vmem>>, vector<8x512xf32>
    tpu.vector_store %arg6[%c64_124, %c0_125], %147 {strides = array<i32>} : memref<128x512xf32, #tpu.memory_space<vmem>>, vector<8x512xf32>,
    %c24_126 = arith.constant 24 : index
    %c0_127 = arith.constant 0 : index
    %149 = vector.load %arg3[%c24_126, %c0_127] : memref<88x128xf32, #tpu.memory_space<vmem>>, vector<8x72xf32>
    %c24_128 = arith.constant 24 : index
    %c0_129 = arith.constant 0 : index
    %150 = vector.load %arg4[%c24_128, %c0_129] : memref<88x1xf32, #tpu.memory_space<vmem>>, vector<8x1xf32>
    %c0_130 = arith.constant 0 : index
    %c0_131 = arith.constant 0 : index
    %151 = vector.load %arg6[%c0_130, %c0_131] : memref<128x512xf32, #tpu.memory_space<vmem>>, vector<72x512xf32>
    %cst_132 = arith.constant dense<0.000000e+00> : vector<8x512xf32>
    %152 = tpu.matmul %149, %151, %cst_132 {dimension_numbers = #tpu.dot_dimension_numbers<[1], [0], [0], [1], [0, 0, 1, 1], [], []>} : vector<8x72xf32>, vector<72x512xf32>, vector<8x512xf32> -> vector<8x512xf32>
    %153 = vector.broadcast %150 : vector<8x1xf32> to vector<8x512xf32>
    %154 = arith.addf %152, %153 : vector<8x512xf32>
    %c32_133 = arith.constant 32 : index
    %c0_134 = arith.constant 0 : index
    %155 = vector.load %arg3[%c32_133, %c0_134] : memref<88x128xf32, #tpu.memory_space<vmem>>, vector<8x8xf32>
    %c32_135 = arith.constant 32 : index
    %c0_136 = arith.constant 0 : index
    %156 = vector.load %arg4[%c32_135, %c0_136] : memref<88x1xf32, #tpu.memory_space<vmem>>, vector<8x1xf32>
    %cst_137 = arith.constant 0.000000e+00 : f32
    %157 = vector.broadcast %cst_137 : f32 to vector<8x512xf32>
    %158 = arith.maximumf %154, %157 : vector<8x512xf32>
    %cst_138 = arith.constant dense<0.000000e+00> : vector<8x512xf32>
    %159 = tpu.matmul %155, %158, %cst_138 {dimension_numbers = #tpu.dot_dimension_numbers<[1], [0], [0], [1], [0, 0, 1, 1], [], []>} : vector<8x8xf32>, vector<8x512xf32>, vector<8x512xf32> -> vector<8x512xf32>
    %160 = arith.addf %105, %159 : vector<8x512xf32>
    %161 = vector.broadcast %156 : vector<8x1xf32> to vector<8x512xf32>
    %162 = arith.addf %160, %161 : vector<8x512xf32>
    %cst_139 = arith.constant 0.000000e+00 : f32
    %163 = vector.broadcast %cst_139 : f32 to vector<8x512xf32>
    %164 = arith.maximumf %162, %163 : vector<8x512xf32>
    %c17_i32_140 = arith.constant 17 : i32
    %165 = tpu.dynamic_rotate %164 by %c17_i32_140 dim 1 : vector<8x512xf32>, i32 -> vector<8x512xf32>
    %c0_141 = arith.constant 0 : index
    %c0_142 = arith.constant 0 : index
    %166 = vector.load %arg2[%c0_141, %c0_142] : memref<8x512xf32, #tpu.memory_space<vmem>>, vector<1x512xf32>
    %167 = vector.broadcast %166 : vector<1x512xf32> to vector<8x512xf32>
    %168 = arith.mulf %165, %167 : vector<8x512xf32>
    %c0_143 = arith.constant 0 : index
    %c0_144 = arith.constant 0 : index
    %169 = vector.load %arg6[%c0_143, %c0_144] : memref<128x512xf32, #tpu.memory_space<vmem>>, vector<8x512xf32>
    tpu.vector_store %arg6[%c0_143, %c0_144], %168 {strides = array<i32>} : memref<128x512xf32, #tpu.memory_space<vmem>>, vector<8x512xf32>,
    %c16_i32_145 = arith.constant 16 : i32
    %170 = tpu.dynamic_rotate %164 by %c16_i32_145 dim 1 : vector<8x512xf32>, i32 -> vector<8x512xf32>
    %c1_146 = arith.constant 1 : index
    %c0_147 = arith.constant 0 : index
    %171 = vector.load %arg2[%c1_146, %c0_147] : memref<8x512xf32, #tpu.memory_space<vmem>>, vector<1x512xf32>
    %172 = vector.broadcast %171 : vector<1x512xf32> to vector<8x512xf32>
    %173 = arith.mulf %170, %172 : vector<8x512xf32>
    %c8_148 = arith.constant 8 : index
    %c0_149 = arith.constant 0 : index
    %174 = vector.load %arg6[%c8_148, %c0_149] : memref<128x512xf32, #tpu.memory_space<vmem>>, vector<8x512xf32>
    tpu.vector_store %arg6[%c8_148, %c0_149], %173 {strides = array<i32>} : memref<128x512xf32, #tpu.memory_space<vmem>>, vector<8x512xf32>,
    %c15_i32_150 = arith.constant 15 : i32
    %175 = tpu.dynamic_rotate %164 by %c15_i32_150 dim 1 : vector<8x512xf32>, i32 -> vector<8x512xf32>
    %c2_151 = arith.constant 2 : index
    %c0_152 = arith.constant 0 : index
    %176 = vector.load %arg2[%c2_151, %c0_152] : memref<8x512xf32, #tpu.memory_space<vmem>>, vector<1x512xf32>
    %177 = vector.broadcast %176 : vector<1x512xf32> to vector<8x512xf32>
    %178 = arith.mulf %175, %177 : vector<8x512xf32>
    %c16_153 = arith.constant 16 : index
    %c0_154 = arith.constant 0 : index
    %179 = vector.load %arg6[%c16_153, %c0_154] : memref<128x512xf32, #tpu.memory_space<vmem>>, vector<8x512xf32>
    tpu.vector_store %arg6[%c16_153, %c0_154], %178 {strides = array<i32>} : memref<128x512xf32, #tpu.memory_space<vmem>>, vector<8x512xf32>,
    %c1_i32_155 = arith.constant 1 : i32
    %180 = tpu.dynamic_rotate %164 by %c1_i32_155 dim 1 : vector<8x512xf32>, i32 -> vector<8x512xf32>
    %c3_156 = arith.constant 3 : index
    %c0_157 = arith.constant 0 : index
    %181 = vector.load %arg2[%c3_156, %c0_157] : memref<8x512xf32, #tpu.memory_space<vmem>>, vector<1x512xf32>
    %182 = vector.broadcast %181 : vector<1x512xf32> to vector<8x512xf32>
    %183 = arith.mulf %180, %182 : vector<8x512xf32>
    %c24_158 = arith.constant 24 : index
    %c0_159 = arith.constant 0 : index
    %184 = vector.load %arg6[%c24_158, %c0_159] : memref<128x512xf32, #tpu.memory_space<vmem>>, vector<8x512xf32>
    tpu.vector_store %arg6[%c24_158, %c0_159], %183 {strides = array<i32>} : memref<128x512xf32, #tpu.memory_space<vmem>>, vector<8x512xf32>,
    %c32_160 = arith.constant 32 : index
    %c0_161 = arith.constant 0 : index
    %185 = vector.load %arg6[%c32_160, %c0_161] : memref<128x512xf32, #tpu.memory_space<vmem>>, vector<8x512xf32>
    tpu.vector_store %arg6[%c32_160, %c0_161], %164 {strides = array<i32>} : memref<128x512xf32, #tpu.memory_space<vmem>>, vector<8x512xf32>,
    %c511_i32_162 = arith.constant 511 : i32
    %186 = tpu.dynamic_rotate %164 by %c511_i32_162 dim 1 : vector<8x512xf32>, i32 -> vector<8x512xf32>
    %c4_163 = arith.constant 4 : index
    %c0_164 = arith.constant 0 : index
    %187 = vector.load %arg2[%c4_163, %c0_164] : memref<8x512xf32, #tpu.memory_space<vmem>>, vector<1x512xf32>
    %188 = vector.broadcast %187 : vector<1x512xf32> to vector<8x512xf32>
    %189 = arith.mulf %186, %188 : vector<8x512xf32>
    %c40_165 = arith.constant 40 : index
    %c0_166 = arith.constant 0 : index
    %190 = vector.load %arg6[%c40_165, %c0_166] : memref<128x512xf32, #tpu.memory_space<vmem>>, vector<8x512xf32>
    tpu.vector_store %arg6[%c40_165, %c0_166], %189 {strides = array<i32>} : memref<128x512xf32, #tpu.memory_space<vmem>>, vector<8x512xf32>,
    %c497_i32_167 = arith.constant 497 : i32
    %191 = tpu.dynamic_rotate %164 by %c497_i32_167 dim 1 : vector<8x512xf32>, i32 -> vector<8x512xf32>
    %c5_168 = arith.constant 5 : index
    %c0_169 = arith.constant 0 : index
    %192 = vector.load %arg2[%c5_168, %c0_169] : memref<8x512xf32, #tpu.memory_space<vmem>>, vector<1x512xf32>
    %193 = vector.broadcast %192 : vector<1x512xf32> to vector<8x512xf32>
    %194 = arith.mulf %191, %193 : vector<8x512xf32>
    %c48_170 = arith.constant 48 : index
    %c0_171 = arith.constant 0 : index
    %195 = vector.load %arg6[%c48_170, %c0_171] : memref<128x512xf32, #tpu.memory_space<vmem>>, vector<8x512xf32>
    tpu.vector_store %arg6[%c48_170, %c0_171], %194 {strides = array<i32>} : memref<128x512xf32, #tpu.memory_space<vmem>>, vector<8x512xf32>,
    %c496_i32_172 = arith.constant 496 : i32
    %196 = tpu.dynamic_rotate %164 by %c496_i32_172 dim 1 : vector<8x512xf32>, i32 -> vector<8x512xf32>
    %c6_173 = arith.constant 6 : index
    %c0_174 = arith.constant 0 : index
    %197 = vector.load %arg2[%c6_173, %c0_174] : memref<8x512xf32, #tpu.memory_space<vmem>>, vector<1x512xf32>
    %198 = vector.broadcast %197 : vector<1x512xf32> to vector<8x512xf32>
    %199 = arith.mulf %196, %198 : vector<8x512xf32>
    %c56_175 = arith.constant 56 : index
    %c0_176 = arith.constant 0 : index
    %200 = vector.load %arg6[%c56_175, %c0_176] : memref<128x512xf32, #tpu.memory_space<vmem>>, vector<8x512xf32>
    tpu.vector_store %arg6[%c56_175, %c0_176], %199 {strides = array<i32>} : memref<128x512xf32, #tpu.memory_space<vmem>>, vector<8x512xf32>,
    %c495_i32_177 = arith.constant 495 : i32
    %201 = tpu.dynamic_rotate %164 by %c495_i32_177 dim 1 : vector<8x512xf32>, i32 -> vector<8x512xf32>
    %c7_178 = arith.constant 7 : index
    %c0_179 = arith.constant 0 : index
    %202 = vector.load %arg2[%c7_178, %c0_179] : memref<8x512xf32, #tpu.memory_space<vmem>>, vector<1x512xf32>
    %203 = vector.broadcast %202 : vector<1x512xf32> to vector<8x512xf32>
    %204 = arith.mulf %201, %203 : vector<8x512xf32>
    %c64_180 = arith.constant 64 : index
    %c0_181 = arith.constant 0 : index
    %205 = vector.load %arg6[%c64_180, %c0_181] : memref<128x512xf32, #tpu.memory_space<vmem>>, vector<8x512xf32>
    tpu.vector_store %arg6[%c64_180, %c0_181], %204 {strides = array<i32>} : memref<128x512xf32, #tpu.memory_space<vmem>>, vector<8x512xf32>,
    %c40_182 = arith.constant 40 : index
    %c0_183 = arith.constant 0 : index
    %206 = vector.load %arg3[%c40_182, %c0_183] : memref<88x128xf32, #tpu.memory_space<vmem>>, vector<32x72xf32>
    %c40_184 = arith.constant 40 : index
    %c0_185 = arith.constant 0 : index
    %207 = vector.load %arg4[%c40_184, %c0_185] : memref<88x1xf32, #tpu.memory_space<vmem>>, vector<32x1xf32>
    %c0_186 = arith.constant 0 : index
    %c0_187 = arith.constant 0 : index
    %208 = vector.load %arg6[%c0_186, %c0_187] : memref<128x512xf32, #tpu.memory_space<vmem>>, vector<72x512xf32>
    %cst_188 = arith.constant dense<0.000000e+00> : vector<32x512xf32>
    %209 = tpu.matmul %206, %208, %cst_188 {dimension_numbers = #tpu.dot_dimension_numbers<[1], [0], [0], [1], [0, 0, 1, 1], [], []>} : vector<32x72xf32>, vector<72x512xf32>, vector<32x512xf32> -> vector<32x512xf32>
    %210 = vector.broadcast %207 : vector<32x1xf32> to vector<32x512xf32>
    %211 = arith.addf %209, %210 : vector<32x512xf32>
    %cst_189 = arith.constant 0.000000e+00 : f32
    %212 = vector.broadcast %cst_189 : f32 to vector<32x512xf32>
    %213 = arith.maximumf %211, %212 : vector<32x512xf32>
    %214 = vector.extract_strided_slice %213 {offsets = [0, 0], sizes = [8, 512], strides = [1, 1]} : vector<32x512xf32> to vector<8x512xf32>
    %c0_190 = arith.constant 0 : index
    %c0_191 = arith.constant 0 : index
    %215 = vector.load %arg6[%c0_190, %c0_191] : memref<128x512xf32, #tpu.memory_space<vmem>>, vector<8x512xf32>
    tpu.vector_store %arg6[%c0_190, %c0_191], %214 {strides = array<i32>} : memref<128x512xf32, #tpu.memory_space<vmem>>, vector<8x512xf32>,
    %216 = vector.extract_strided_slice %213 {offsets = [0, 0], sizes = [8, 512], strides = [1, 1]} : vector<32x512xf32> to vector<8x512xf32>
    %c511_i32_192 = arith.constant 511 : i32
    %217 = tpu.dynamic_rotate %216 by %c511_i32_192 dim 1 : vector<8x512xf32>, i32 -> vector<8x512xf32>
    %c4_193 = arith.constant 4 : index
    %c0_194 = arith.constant 0 : index
    %218 = vector.load %arg2[%c4_193, %c0_194] : memref<8x512xf32, #tpu.memory_space<vmem>>, vector<1x512xf32>
    %219 = vector.broadcast %218 : vector<1x512xf32> to vector<8x512xf32>
    %220 = arith.mulf %217, %219 : vector<8x512xf32>
    %c8_195 = arith.constant 8 : index
    %c0_196 = arith.constant 0 : index
    %221 = vector.load %arg6[%c8_195, %c0_196] : memref<128x512xf32, #tpu.memory_space<vmem>>, vector<8x512xf32>
    tpu.vector_store %arg6[%c8_195, %c0_196], %220 {strides = array<i32>} : memref<128x512xf32, #tpu.memory_space<vmem>>, vector<8x512xf32>,
    %222 = vector.extract_strided_slice %213 {offsets = [8, 0], sizes = [8, 512], strides = [1, 1]} : vector<32x512xf32> to vector<8x512xf32>
    %c1_i32_197 = arith.constant 1 : i32
    %223 = tpu.dynamic_rotate %222 by %c1_i32_197 dim 1 : vector<8x512xf32>, i32 -> vector<8x512xf32>
    %c3_198 = arith.constant 3 : index
    %c0_199 = arith.constant 0 : index
    %224 = vector.load %arg2[%c3_198, %c0_199] : memref<8x512xf32, #tpu.memory_space<vmem>>, vector<1x512xf32>
    %225 = vector.broadcast %224 : vector<1x512xf32> to vector<8x512xf32>
    %226 = arith.mulf %223, %225 : vector<8x512xf32>
    %c16_200 = arith.constant 16 : index
    %c0_201 = arith.constant 0 : index
    %227 = vector.load %arg6[%c16_200, %c0_201] : memref<128x512xf32, #tpu.memory_space<vmem>>, vector<8x512xf32>
    tpu.vector_store %arg6[%c16_200, %c0_201], %226 {strides = array<i32>} : memref<128x512xf32, #tpu.memory_space<vmem>>, vector<8x512xf32>,
    %228 = vector.extract_strided_slice %213 {offsets = [8, 0], sizes = [8, 512], strides = [1, 1]} : vector<32x512xf32> to vector<8x512xf32>
    %c24_202 = arith.constant 24 : index
    %c0_203 = arith.constant 0 : index
    %229 = vector.load %arg6[%c24_202, %c0_203] : memref<128x512xf32, #tpu.memory_space<vmem>>, vector<8x512xf32>
    tpu.vector_store %arg6[%c24_202, %c0_203], %228 {strides = array<i32>} : memref<128x512xf32, #tpu.memory_space<vmem>>, vector<8x512xf32>,
    %230 = vector.extract_strided_slice %213 {offsets = [0, 0], sizes = [8, 512], strides = [1, 1]} : vector<32x512xf32> to vector<8x512xf32>
    %c496_i32_204 = arith.constant 496 : i32
    %231 = tpu.dynamic_rotate %230 by %c496_i32_204 dim 1 : vector<8x512xf32>, i32 -> vector<8x512xf32>
    %c6_205 = arith.constant 6 : index
    %c0_206 = arith.constant 0 : index
    %232 = vector.load %arg2[%c6_205, %c0_206] : memref<8x512xf32, #tpu.memory_space<vmem>>, vector<1x512xf32>
    %233 = vector.broadcast %232 : vector<1x512xf32> to vector<8x512xf32>
    %234 = arith.mulf %231, %233 : vector<8x512xf32>
    %c32_207 = arith.constant 32 : index
    %c0_208 = arith.constant 0 : index
    %235 = vector.load %arg6[%c32_207, %c0_208] : memref<128x512xf32, #tpu.memory_space<vmem>>, vector<8x512xf32>
    tpu.vector_store %arg6[%c32_207, %c0_208], %234 {strides = array<i32>} : memref<128x512xf32, #tpu.memory_space<vmem>>, vector<8x512xf32>,
    %236 = vector.extract_strided_slice %213 {offsets = [0, 0], sizes = [8, 512], strides = [1, 1]} : vector<32x512xf32> to vector<8x512xf32>
    %c495_i32_209 = arith.constant 495 : i32
    %237 = tpu.dynamic_rotate %236 by %c495_i32_209 dim 1 : vector<8x512xf32>, i32 -> vector<8x512xf32>
    %c7_210 = arith.constant 7 : index
    %c0_211 = arith.constant 0 : index
    %238 = vector.load %arg2[%c7_210, %c0_211] : memref<8x512xf32, #tpu.memory_space<vmem>>, vector<1x512xf32>
    %239 = vector.broadcast %238 : vector<1x512xf32> to vector<8x512xf32>
    %240 = arith.mulf %237, %239 : vector<8x512xf32>
    %c40_212 = arith.constant 40 : index
    %c0_213 = arith.constant 0 : index
    %241 = vector.load %arg6[%c40_212, %c0_213] : memref<128x512xf32, #tpu.memory_space<vmem>>, vector<8x512xf32>
    tpu.vector_store %arg6[%c40_212, %c0_213], %240 {strides = array<i32>} : memref<128x512xf32, #tpu.memory_space<vmem>>, vector<8x512xf32>,
    %242 = vector.extract_strided_slice %213 {offsets = [8, 0], sizes = [8, 512], strides = [1, 1]} : vector<32x512xf32> to vector<8x512xf32>
    %c497_i32_214 = arith.constant 497 : i32
    %243 = tpu.dynamic_rotate %242 by %c497_i32_214 dim 1 : vector<8x512xf32>, i32 -> vector<8x512xf32>
    %c5_215 = arith.constant 5 : index
    %c0_216 = arith.constant 0 : index
    %244 = vector.load %arg2[%c5_215, %c0_216] : memref<8x512xf32, #tpu.memory_space<vmem>>, vector<1x512xf32>
    %245 = vector.broadcast %244 : vector<1x512xf32> to vector<8x512xf32>
    %246 = arith.mulf %243, %245 : vector<8x512xf32>
    %c48_217 = arith.constant 48 : index
    %c0_218 = arith.constant 0 : index
    %247 = vector.load %arg6[%c48_217, %c0_218] : memref<128x512xf32, #tpu.memory_space<vmem>>, vector<8x512xf32>
    tpu.vector_store %arg6[%c48_217, %c0_218], %246 {strides = array<i32>} : memref<128x512xf32, #tpu.memory_space<vmem>>, vector<8x512xf32>,
    %248 = vector.extract_strided_slice %213 {offsets = [8, 0], sizes = [8, 512], strides = [1, 1]} : vector<32x512xf32> to vector<8x512xf32>
    %c496_i32_219 = arith.constant 496 : i32
    %249 = tpu.dynamic_rotate %248 by %c496_i32_219 dim 1 : vector<8x512xf32>, i32 -> vector<8x512xf32>
    %c6_220 = arith.constant 6 : index
    %c0_221 = arith.constant 0 : index
    %250 = vector.load %arg2[%c6_220, %c0_221] : memref<8x512xf32, #tpu.memory_space<vmem>>, vector<1x512xf32>
    %251 = vector.broadcast %250 : vector<1x512xf32> to vector<8x512xf32>
    %252 = arith.mulf %249, %251 : vector<8x512xf32>
    %c56_222 = arith.constant 56 : index
    %c0_223 = arith.constant 0 : index
    %253 = vector.load %arg6[%c56_222, %c0_223] : memref<128x512xf32, #tpu.memory_space<vmem>>, vector<8x512xf32>
    tpu.vector_store %arg6[%c56_222, %c0_223], %252 {strides = array<i32>} : memref<128x512xf32, #tpu.memory_space<vmem>>, vector<8x512xf32>,
    %254 = vector.extract_strided_slice %213 {offsets = [16, 0], sizes = [8, 512], strides = [1, 1]} : vector<32x512xf32> to vector<8x512xf32>
    %c16_i32_224 = arith.constant 16 : i32
    %255 = tpu.dynamic_rotate %254 by %c16_i32_224 dim 1 : vector<8x512xf32>, i32 -> vector<8x512xf32>
    %c1_225 = arith.constant 1 : index
    %c0_226 = arith.constant 0 : index
    %256 = vector.load %arg2[%c1_225, %c0_226] : memref<8x512xf32, #tpu.memory_space<vmem>>, vector<1x512xf32>
    %257 = vector.broadcast %256 : vector<1x512xf32> to vector<8x512xf32>
    %258 = arith.mulf %255, %257 : vector<8x512xf32>
    %c64_227 = arith.constant 64 : index
    %c0_228 = arith.constant 0 : index
    %259 = vector.load %arg6[%c64_227, %c0_228] : memref<128x512xf32, #tpu.memory_space<vmem>>, vector<8x512xf32>
    tpu.vector_store %arg6[%c64_227, %c0_228], %258 {strides = array<i32>} : memref<128x512xf32, #tpu.memory_space<vmem>>, vector<8x512xf32>,
    %260 = vector.extract_strided_slice %213 {offsets = [16, 0], sizes = [8, 512], strides = [1, 1]} : vector<32x512xf32> to vector<8x512xf32>
    %c15_i32_229 = arith.constant 15 : i32
    %261 = tpu.dynamic_rotate %260 by %c15_i32_229 dim 1 : vector<8x512xf32>, i32 -> vector<8x512xf32>
    %c2_230 = arith.constant 2 : index
    %c0_231 = arith.constant 0 : index
    %262 = vector.load %arg2[%c2_230, %c0_231] : memref<8x512xf32, #tpu.memory_space<vmem>>, vector<1x512xf32>
    %263 = vector.broadcast %262 : vector<1x512xf32> to vector<8x512xf32>
    %264 = arith.mulf %261, %263 : vector<8x512xf32>
    %c72 = arith.constant 72 : index
    %c0_232 = arith.constant 0 : index
    %265 = vector.load %arg6[%c72, %c0_232] : memref<128x512xf32, #tpu.memory_space<vmem>>, vector<8x512xf32>
    tpu.vector_store %arg6[%c72, %c0_232], %264 {strides = array<i32>} : memref<128x512xf32, #tpu.memory_space<vmem>>, vector<8x512xf32>,
    %266 = vector.extract_strided_slice %213 {offsets = [24, 0], sizes = [8, 512], strides = [1, 1]} : vector<32x512xf32> to vector<8x512xf32>
    %c17_i32_233 = arith.constant 17 : i32
    %267 = tpu.dynamic_rotate %266 by %c17_i32_233 dim 1 : vector<8x512xf32>, i32 -> vector<8x512xf32>
    %c0_234 = arith.constant 0 : index
    %c0_235 = arith.constant 0 : index
    %268 = vector.load %arg2[%c0_234, %c0_235] : memref<8x512xf32, #tpu.memory_space<vmem>>, vector<1x512xf32>
    %269 = vector.broadcast %268 : vector<1x512xf32> to vector<8x512xf32>
    %270 = arith.mulf %267, %269 : vector<8x512xf32>
    %c80 = arith.constant 80 : index
    %c0_236 = arith.constant 0 : index
    %271 = vector.load %arg6[%c80, %c0_236] : memref<128x512xf32, #tpu.memory_space<vmem>>, vector<8x512xf32>
    tpu.vector_store %arg6[%c80, %c0_236], %270 {strides = array<i32>} : memref<128x512xf32, #tpu.memory_space<vmem>>, vector<8x512xf32>,
    %272 = vector.extract_strided_slice %213 {offsets = [24, 0], sizes = [8, 512], strides = [1, 1]} : vector<32x512xf32> to vector<8x512xf32>
    %c16_i32_237 = arith.constant 16 : i32
    %273 = tpu.dynamic_rotate %272 by %c16_i32_237 dim 1 : vector<8x512xf32>, i32 -> vector<8x512xf32>
    %c1_238 = arith.constant 1 : index
    %c0_239 = arith.constant 0 : index
    %274 = vector.load %arg2[%c1_238, %c0_239] : memref<8x512xf32, #tpu.memory_space<vmem>>, vector<1x512xf32>
    %275 = vector.broadcast %274 : vector<1x512xf32> to vector<8x512xf32>
    %276 = arith.mulf %273, %275 : vector<8x512xf32>
    %c88 = arith.constant 88 : index
    %c0_240 = arith.constant 0 : index
    %277 = vector.load %arg6[%c88, %c0_240] : memref<128x512xf32, #tpu.memory_space<vmem>>, vector<8x512xf32>
    tpu.vector_store %arg6[%c88, %c0_240], %276 {strides = array<i32>} : memref<128x512xf32, #tpu.memory_space<vmem>>, vector<8x512xf32>,
    %278 = vector.extract_strided_slice %213 {offsets = [16, 0], sizes = [8, 512], strides = [1, 1]} : vector<32x512xf32> to vector<8x512xf32>
    %c96 = arith.constant 96 : index
    %c0_241 = arith.constant 0 : index
    %279 = vector.load %arg6[%c96, %c0_241] : memref<128x512xf32, #tpu.memory_space<vmem>>, vector<8x512xf32>
    tpu.vector_store %arg6[%c96, %c0_241], %278 {strides = array<i32>} : memref<128x512xf32, #tpu.memory_space<vmem>>, vector<8x512xf32>,
    %280 = vector.extract_strided_slice %213 {offsets = [16, 0], sizes = [8, 512], strides = [1, 1]} : vector<32x512xf32> to vector<8x512xf32>
    %c511_i32_242 = arith.constant 511 : i32
    %281 = tpu.dynamic_rotate %280 by %c511_i32_242 dim 1 : vector<8x512xf32>, i32 -> vector<8x512xf32>
    %c4_243 = arith.constant 4 : index
    %c0_244 = arith.constant 0 : index
    %282 = vector.load %arg2[%c4_243, %c0_244] : memref<8x512xf32, #tpu.memory_space<vmem>>, vector<1x512xf32>
    %283 = vector.broadcast %282 : vector<1x512xf32> to vector<8x512xf32>
    %284 = arith.mulf %281, %283 : vector<8x512xf32>
    %c104 = arith.constant 104 : index
    %c0_245 = arith.constant 0 : index
    %285 = vector.load %arg6[%c104, %c0_245] : memref<128x512xf32, #tpu.memory_space<vmem>>, vector<8x512xf32>
    tpu.vector_store %arg6[%c104, %c0_245], %284 {strides = array<i32>} : memref<128x512xf32, #tpu.memory_space<vmem>>, vector<8x512xf32>,
    %286 = vector.extract_strided_slice %213 {offsets = [24, 0], sizes = [8, 512], strides = [1, 1]} : vector<32x512xf32> to vector<8x512xf32>
    %c1_i32_246 = arith.constant 1 : i32
    %287 = tpu.dynamic_rotate %286 by %c1_i32_246 dim 1 : vector<8x512xf32>, i32 -> vector<8x512xf32>
    %c3_247 = arith.constant 3 : index
    %c0_248 = arith.constant 0 : index
    %288 = vector.load %arg2[%c3_247, %c0_248] : memref<8x512xf32, #tpu.memory_space<vmem>>, vector<1x512xf32>
    %289 = vector.broadcast %288 : vector<1x512xf32> to vector<8x512xf32>
    %290 = arith.mulf %287, %289 : vector<8x512xf32>
    %c112 = arith.constant 112 : index
    %c0_249 = arith.constant 0 : index
    %291 = vector.load %arg6[%c112, %c0_249] : memref<128x512xf32, #tpu.memory_space<vmem>>, vector<8x512xf32>
    tpu.vector_store %arg6[%c112, %c0_249], %290 {strides = array<i32>} : memref<128x512xf32, #tpu.memory_space<vmem>>, vector<8x512xf32>,
    %292 = vector.extract_strided_slice %213 {offsets = [24, 0], sizes = [8, 512], strides = [1, 1]} : vector<32x512xf32> to vector<8x512xf32>
    %c120 = arith.constant 120 : index
    %c0_250 = arith.constant 0 : index
    %293 = vector.load %arg6[%c120, %c0_250] : memref<128x512xf32, #tpu.memory_space<vmem>>, vector<8x512xf32>
    tpu.vector_store %arg6[%c120, %c0_250], %292 {strides = array<i32>} : memref<128x512xf32, #tpu.memory_space<vmem>>, vector<8x512xf32>,
    %c72_251 = arith.constant 72 : index
    %c0_252 = arith.constant 0 : index
    %294 = vector.load %arg3[%c72_251, %c0_252] : memref<88x128xf32, #tpu.memory_space<vmem>>, vector<16x128xf32>
    %c72_253 = arith.constant 72 : index
    %c0_254 = arith.constant 0 : index
    %295 = vector.load %arg4[%c72_253, %c0_254] : memref<88x1xf32, #tpu.memory_space<vmem>>, vector<16x1xf32>
    %c0_255 = arith.constant 0 : index
    %c0_256 = arith.constant 0 : index
    %296 = vector.load %arg6[%c0_255, %c0_256] : memref<128x512xf32, #tpu.memory_space<vmem>>, vector<128x512xf32>
    %cst_257 = arith.constant dense<0.000000e+00> : vector<16x512xf32>
    %297 = tpu.matmul %294, %296, %cst_257 {dimension_numbers = #tpu.dot_dimension_numbers<[1], [0], [0], [1], [0, 0, 1, 1], [], []>} : vector<16x128xf32>, vector<128x512xf32>, vector<16x512xf32> -> vector<16x512xf32>
    %298 = vector.broadcast %295 : vector<16x1xf32> to vector<16x512xf32>
    %299 = arith.addf %297, %298 : vector<16x512xf32>
    %c0_258 = arith.constant 0 : index
    %c0_259 = arith.constant 0 : index
    %c0_260 = arith.constant 0 : index
    %300 = vector.load %arg5[%c0_258, %c0_259, %c0_260] : memref<1x16x512xf32, #tpu.memory_space<vmem>>, vector<1x16x512xf32>
    %301 = vector.shape_cast %300 : vector<1x16x512xf32> to vector<16x512xf32>
    %302 = vector.shape_cast %299 : vector<16x512xf32> to vector<1x16x512xf32>
    tpu.vector_store %arg5[%c0_258, %c0_259, %c0_260], %302 {strides = array<i32>} : memref<1x16x512xf32, #tpu.memory_space<vmem>>, vector<1x16x512xf32>,
    return
  }
  func.func @transform_0(%arg0: i32) -> (i32, i32, i32) {
    %c0_i32 = arith.constant 0 : i32
    %c0_i32_0 = arith.constant 0 : i32
    %c0_i32_1 = arith.constant 0 : i32
    return %arg0, %c0_i32, %c0_i32_0 : i32, i32, i32
  }
  func.func @transform_1(%arg0: i32) -> (i32, i32) {
    %c0_i32 = arith.constant 0 : i32
    %c0_i32_0 = arith.constant 0 : i32
    %c0_i32_1 = arith.constant 0 : i32
    return %c0_i32, %c0_i32_0 : i32, i32
  }
  func.func @transform_2(%arg0: i32) -> (i32, i32) {
    %c0_i32 = arith.constant 0 : i32
    %c0_i32_0 = arith.constant 0 : i32
    %c0_i32_1 = arith.constant 0 : i32
    return %c0_i32, %c0_i32_0 : i32, i32
  }
  func.func @transform_3(%arg0: i32) -> (i32, i32) {
    %c0_i32 = arith.constant 0 : i32
    %c0_i32_0 = arith.constant 0 : i32
    %c0_i32_1 = arith.constant 0 : i32
    return %c0_i32, %c0_i32_0 : i32, i32
  }
  func.func @transform_4(%arg0: i32) -> (i32, i32, i32) {
    %c0_i32 = arith.constant 0 : i32
    %c0_i32_0 = arith.constant 0 : i32
    %c0_i32_1 = arith.constant 0 : i32
    return %arg0, %c0_i32, %c0_i32_0 : i32, i32, i32
  }
}

</mosaic_0001>

<bundles_post_ra>
// kernel: decoder_forward.1
= control target key start
LH: loop header
LB: loop body
LE: loop exit
PB: predicated region body
PF: predicated region fallthrough
CT: control target
= control target key end

     0   :  { %s2463_s21 = smov 111   ;;  %s2464_s22 = smov 112   ;;  %v29_v6 = vlaneseq  ;;  %vm325_vm8 = vcmask 588800   ;;  %vm789_vm9 = vcmask 64512   ;;  %s4075_s0 = inlined_call_operand.vmem [shape: f32[1,8,512], index: 0, kind: input, shape index: {}]   ;;  %s4076_s1 = inlined_call_operand.vmem [shape: f32[8,512], index: 1, kind: input, shape index: {}]   ;;  %s4077_s3 = inlined_call_operand.vmem [shape: f32[88,1], index: 3, kind: input, shape index: {}]   ;;  %s4078_s2 = inlined_call_operand.vmem [shape: f32[88,128], index: 2, kind: input, shape index: {}]   ;;  %s4079_s4 = inlined_call_operand.vmem [shape: f32[1,16,512], index: 4, kind: output, shape index: {}]  }
   0x1   :  { %v2500_v0 = vld [vmem:[%s4075_s0 + $0x18] sm:$0xff]  ;;  %v2505_v1 = vld [vmem:[%s4075_s0 + $0x10] sm:$0xff]  ;;  %v2510_v2 = vld [vmem:[%s4075_s0] sm:$0xff]  ;;  %s2465_s23 = smov 113   ;;  %s2466_s24 = smov 127  }
   0x2   :  { %256 = vrot.lane.b32.xlu1 %v2500_v0, %s2463_s21  ;;  %222 = vrot.lane.b32.xlu2 %v2505_v1, %s2464_s22  ;;  %v2539_v3 = vld [vmem:[%s4075_s0 + $0x8] sm:$0xff]  ;;  %s2467_s27 = smov 1   ;;  %s2468_s0 = smov 15   ;;  %v2583_v7 = vand.u32 127, %v29_v6 }
   0x3   :  { %250 = vrot.lane.b32.xlu0 %v2510_v2, %s2463_s21  ;;  %s2469_s28 = smov 16   ;;  %s2470_s29 = smov 17   ;;  %v2588_v8 = vld [vmem:[%s4076_s1 + $0x7] ss:$8 sm:$0xf] }
   0x4   :  { %vm258_vm0 = vcmp.lt.s32.totalorder %v2583_v7, 111  ;;  %v269_v9 = vperm.slane %v2588_v8, 3  ;;  %v2597_v15 = vld [vmem:[%s4076_s1 + $0x6] ss:$8 sm:$0xf]  ;;  %v268_v17 = vperm.slane %v2588_v8, 2 }
   0x5   :  { %v237_v16 = vperm.slane %v2597_v15, 3  ;;  %vm226_vm1 = vcmp.lt.s32.totalorder %v2583_v7, 112  ;;  %v236_v20 = vperm.slane %v2597_v15, 2  ;;  %v2380_v27 = vld [vmem:[%s4076_s1 + $0x5] ss:$8 sm:$0xf] }
   0x6   :  { %v204_v29 = vperm.slane %v2380_v27, 2  ;;  %vm194_vm2 = vcmp.lt.s32.totalorder %v2583_v7, 113  ;;  %v205_v30 = vperm.slane %v2380_v27, 3  ;;  %v2623_v38 = vld [vmem:[%s4076_s1 + $0x4] ss:$8 sm:$0xf] }
   0x7   :  { %v172_v39 = vperm.slane %v2623_v38, 2  ;;  %vm162_vm3 = vcmp.lt.s32.totalorder %v2583_v7, 127  ;;  %v173_v40 = vperm.slane %v2623_v38, 3  ;;  %v266_v48 = vperm.slane %v2588_v8, 0 }
   0x8   :  { %v267_v49 = vperm.slane %v2588_v8, 1  ;;  %v234_v52 = vperm.slane %v2597_v15, 0  ;;  %v235_v53 = vperm.slane %v2597_v15, 1  ;;  %v202_v60 = vperm.slane %v2380_v27, 0 }
   0x9   :  { %v203_v61 = vperm.slane %v2380_v27, 1  ;;  %vm126_vm4 = vcmp.lt.s32.totalorder %v2583_v7, 1  ;;  %vm94_vm5 = vcmp.lt.s32.totalorder %v2583_v7, 15  ;;  %v2691_v27 = vld [vmem:[%s4076_s1 + $0x1] ss:$8 sm:$0xf] }
   0xa   :  { %224 = vrot.lane.b32.xlu2 %v2500_v0, %s2464_s22  ;;  %218 = vrot.lane.b32.xlu1 %v2510_v2, %s2464_s22  ;;  %vm62_vm6 = vcmp.lt.s32.totalorder %v2583_v7, 16  ;;  %vm31_vm7 = vcmp.lt.s32.totalorder %v2583_v7, 17  ;;  %v2195_v7 = vld [vmem:[%s4078_s2 + $0x50] sm:$0xff] }
   0xb   :  { %254 = vrot.lane.b32.xlu0 %v2505_v1, %s2463_s21 }
  0x12   :  { %192 = vrot.lane.b32.xlu2 %v2500_v0, %s2465_s23  ;;  %190 = vrot.lane.b32.xlu1 %v2505_v1, %s2465_s23 }
  0x13   :  { %186 = vrot.lane.b32.xlu0 %v2510_v2, %s2465_s23 }
  0x1a   :  { %160 = vrot.lane.b32.xlu2 %v2500_v0, %s2466_s24  ;;  %158 = vrot.lane.b32.xlu1 %v2505_v1, %s2466_s24 }
  0x1b   :  { %154 = vrot.lane.b32.xlu0 %v2510_v2, %s2466_s24 }
  0x22   :  { %120 = vrot.lane.b32.xlu2 %v2539_v3, %s2467_s27  ;;  %220 = vrot.lane.b32.xlu1 %v2539_v3, %s2464_s22 }
  0x23   :  { %252 = vrot.lane.b32.xlu0 %v2539_v3, %s2463_s21 }
  0x2a   :  { %188 = vrot.lane.b32.xlu2 %v2539_v3, %s2465_s23  ;;  %124 = vrot.lane.b32.xlu1 %v2500_v0, %s2467_s27 }
  0x2b   :  { %122 = vrot.lane.b32.xlu0 %v2505_v1, %s2467_s27 }
  0x32   :  { %92 = vrot.lane.b32.xlu2 %v2500_v0, %s2468_s0  ;;  %90 = vrot.lane.b32.xlu1 %v2505_v1, %s2468_s0 }
  0x33   :  { %88 = vrot.lane.b32.xlu0 %v2539_v3, %s2468_s0 }
  0x3a   :  { %58 = vrot.lane.b32.xlu2 %v2505_v1, %s2469_s28  ;;  %56 = vrot.lane.b32.xlu1 %v2539_v3, %s2469_s28 }
  0x3b   :  { %156 = vrot.lane.b32.xlu0 %v2539_v3, %s2466_s24 }
  0x42   :  { %25 = vrot.lane.b32.xlu2 %v2505_v1, %s2470_s29  ;;  %23 = vrot.lane.b32.xlu1 %v2539_v3, %s2470_s29 }
  0x43   :  { %60 = vrot.lane.b32.xlu0 %v2500_v0, %s2469_s28 }
  0x4a   :  { %86 = vrot.lane.b32.xlu2 %v2510_v2, %s2468_s0  ;;  %118 = vrot.lane.b32.xlu1 %v2510_v2, %s2467_s27 }
  0x4b   :  { %27 = vrot.lane.b32.xlu0 %v2500_v0, %s2470_s29 }
  0x52   :  { %21 = vrot.lane.b32.xlu1 %v2510_v2, %s2470_s29 }
  0x53   :  { %54 = vrot.lane.b32.xlu0 %v2510_v2, %s2469_s28 }
  0x5c   :  { %v2581_v4 = vpop.permute.xlu2 %222 }
  0x64   :  { %v225_v5 = vpop.permute.xlu2 %224 }
  0x65   :  { %v227_v24 = vsel %vm226_vm1, %v2581_v4, %v225_v5 }
  0x66   :  { %v244_v28 = vmul.f32 %v236_v20, %v227_v24 }
  0x6c   :  { %v193_v10 = vpop.permute.xlu2 %192 }
  0x74   :  { %v257_v11 = vpop.permute.xlu1 %256  ;;  %v161_v22 = vpop.permute.xlu2 %160 }
  0x75   :  { %v251_v12 = vpop.permute.xlu0 %250 }
  0x76   :  { %v262_v13 = vsel %vm258_vm0, %v257_v11, %v251_v12 }
  0x77   :  { %v277_v14 = vmul.f32 %v269_v9, %v262_v13 }
  0x79   :  { %396 = vmatpush.msra.mxu3 %v277_v14 }
  0x7c   :  { %v219_v18 = vpop.permute.xlu1 %218  ;;  %v2618_v37 = vpop.permute.xlu2 %120 }
  0x7d   :  { %v255_v19 = vpop.permute.xlu0 %254  ;;  %v230_v21 = vsel %vm226_vm1, %v225_v5, %v219_v18 }
  0x7e   :  { %v259_v23 = vsel %vm258_vm0, %v255_v19, %v257_v11  ;;  %v245_v25 = vmul.f32 %v237_v16, %v230_v21 }
  0x7f   :  { %v276_v26 = vmul.f32 %v268_v17, %v259_v23  ;;  %v2678_v17 = vld [vmem:[%s4076_s1 + $0x2] ss:$8 sm:$0xf] }
  0x80   :  { %397 = vmatpush.msra.mxu3 %v245_v25 }
  0x81   :  { %376 = vmatpush.msra.mxu2 %v276_v26 }
  0x83   :  { %377 = vmatpush.msra.mxu2 %v244_v28  ;;  %v72_v28 = vperm.slane %v2691_v27, 2 }
  0x84   :  { %v191_v31 = vpop.permute.xlu1 %190  ;;  %v189_v47 = vpop.permute.xlu2 %188 }
  0x85   :  { %v187_v32 = vpop.permute.xlu0 %186  ;;  %v195_v33 = vsel %vm194_vm2, %v191_v31, %v193_v10  ;;  %v196_v63 = vsel %vm194_vm2, %v189_v47, %v191_v31 }
  0x86   :  { %v198_v34 = vsel %vm194_vm2, %v193_v10, %v187_v32  ;;  %v212_v35 = vmul.f32 %v204_v29, %v195_v33  ;;  %v197_v62 = vsel %vm194_vm2, %v187_v32, %v189_v47  ;;  %v211_v6 = vmul.f32 %v203_v61, %v196_v63  ;;  %v283_v32 = vld [vmem:[%s4077_s3] sm:$0xff] }
  0x87   :  { %v213_v36 = vmul.f32 %v205_v30, %v198_v34  ;;  %v170_v29 = vperm.slane %v2623_v38, 0  ;;  %v171_v30 = vperm.slane %v2623_v38, 1 }
  0x88   :  { %378 = vmatpush.msra.mxu2 %v212_v35  ;;  %v2471_v35 = vmov 0  }
  0x89   :  { %398 = vmatpush.msra.mxu3 %v213_v36  ;;  %2460 = vset.pattern.permute.xlu2 %v2471_v35 }
  0x8a   :  { %2461 = vset.pattern.permute.xlu0 %v2471_v35  ;;  %322 = vperm.xlu2 %2460, %v283_v32  }
  0x8b   :  { %2462 = vset.pattern.permute.xlu1 %v2471_v35 }
  0x8c   :  { %v2628_v41 = vpop.permute.xlu1 %158  ;;  %v2665_v10 = vpop.permute.xlu2 %92 }
  0x8d   :  { %v2630_v42 = vpop.permute.xlu0 %154  ;;  %v163_v43 = vsel %vm162_vm3, %v2628_v41, %v161_v22 }
  0x8e   :  { %v166_v44 = vsel %vm162_vm3, %v161_v22, %v2630_v42  ;;  %v180_v45 = vmul.f32 %v172_v39, %v163_v43 }
  0x8f   :  { %v181_v46 = vmul.f32 %v173_v40, %v166_v44  ;;  %v36_v44 = vld [vmem:[%s4076_s1] ss:$8 sm:$0xf] }
  0x90   :  { %379 = vmatpush.msra.mxu2 %v180_v45 }
  0x91   :  { %399 = vmatpush.msra.mxu3 %v181_v46  ;;  %v73_v46 = vperm.slane %v2691_v27, 3 }
  0x92   :  { %380 = vmatpush.msra.mxu2 %v2505_v1 }
  0x93   :  { %400 = vmatpush.msra.mxu3 %v2500_v0  ;;  %v2660_v0 = vld [vmem:[%s4076_s1 + $0x3] ss:$8 sm:$0xf] }
  0x94   :  { %v221_v50 = vpop.permute.xlu1 %220  ;;  %v136_v8 = vperm.slane %v2660_v0, 2  ;;  %v137_v9 = vperm.slane %v2660_v0, 3  ;;  %v59_v23 = vpop.permute.xlu2 %58 }
  0x95   :  { %v253_v51 = vpop.permute.xlu0 %252  ;;  %v229_v56 = vsel %vm226_vm1, %v219_v18, %v221_v50  ;;  %v228_v57 = vsel %vm226_vm1, %v221_v50, %v2581_v4  ;;  %v210_v4 = vmul.f32 %v202_v60, %v197_v62  ;;  %v105_v18 = vperm.slane %v2678_v17, 3 }
  0x96   :  { %v261_v54 = vsel %vm258_vm0, %v251_v12, %v253_v51  ;;  %v260_v55 = vsel %vm258_vm0, %v253_v51, %v255_v19  ;;  %v242_v1 = vmul.f32 %v234_v52, %v229_v56  ;;  %v243_v5 = vmul.f32 %v235_v53, %v228_v57  ;;  %v282_v51 = vld [vmem:[%s4078_s2] sm:$0xff] }
  0x97   :  { %v274_v58 = vmul.f32 %v266_v48, %v261_v54  ;;  %v275_v59 = vmul.f32 %v267_v49, %v260_v55  ;;  %v104_v19 = vperm.slane %v2678_v17, 2  ;;  %v135_v53 = vperm.slane %v2660_v0, 1 }
  0x98   :  { %v41_v54 = vperm.slane %v36_v44, 3  ;;  %v102_v56 = vperm.slane %v2678_v17, 0  ;;  %v103_v57 = vperm.slane %v2678_v17, 1 }
  0x99   :  { %336 = vmatpush.msra.mxu0 %v274_v58  ;;  %356 = vmatpush.msra.mxu1 %v275_v59 }
  0x9b   :  { %337 = vmatpush.msra.mxu0 %v242_v1  ;;  %357 = vmatpush.msra.mxu1 %v243_v5 }
  0x9c   :  { %v2667_v11 = vpop.permute.xlu1 %124  ;;  %v26_v45 = vpop.permute.xlu2 %25 }
  0x9d   :  { %338 = vmatpush.msra.mxu0 %v210_v4  ;;  %358 = vmatpush.msra.mxu1 %v211_v6  ;;  %v123_v12 = vpop.permute.xlu0 %122 }
  0x9e   :  { %v128_v13 = vsel %vm126_vm4, %v2618_v37, %v123_v12  ;;  %v127_v14 = vsel %vm126_vm4, %v123_v12, %v2667_v11  ;;  %v39_v12 = vperm.slane %v36_v44, 1 }
  0x9f   :  { %v144_v15 = vmul.f32 %v136_v8, %v128_v13  ;;  %v145_v16 = vmul.f32 %v137_v9, %v127_v14  ;;  %v71_v8 = vperm.slane %v2691_v27, 1 }
  0xa1   :  { %381 = vmatpush.msra.mxu2 %v144_v15  ;;  %401 = vmatpush.msra.mxu3 %v145_v16 }
  0xa4   :  { %v91_v20 = vpop.permute.xlu1 %90 }
  0xa5   :  { %v89_v21 = vpop.permute.xlu0 %88  ;;  %v95_v22 = vsel %vm94_vm5, %v91_v20, %v2665_v10 }
  0xa6   :  { %v96_v24 = vsel %vm94_vm5, %v89_v21, %v91_v20  ;;  %v113_v25 = vmul.f32 %v105_v18, %v95_v22 }
  0xa7   :  { %v112_v26 = vmul.f32 %v104_v19, %v96_v24 }
  0xa8   :  { %402 = vmatpush.msra.mxu3 %v113_v25 }
  0xa9   :  { %382 = vmatpush.msra.mxu2 %v112_v26 }
  0xac   :  { %v2697_v31 = vpop.permute.xlu1 %56 }
  0xad   :  { %v157_v33 = vpop.permute.xlu0 %156  ;;  %v64_v34 = vsel %vm62_vm6, %v2697_v31, %v59_v23 }
  0xae   :  { %v165_v36 = vsel %vm162_vm3, %v2630_v42, %v157_v33  ;;  %v164_v38 = vsel %vm162_vm3, %v157_v33, %v2628_v41  ;;  %v80_v39 = vmul.f32 %v72_v28, %v64_v34  ;;  %v40_v42 = vperm.slane %v36_v44, 2  ;;  %v658_v34 = vld [vmem:[%s4077_s3 + $0x8] sm:$0xff] }
  0xaf   :  { %v178_v40 = vmul.f32 %v170_v29, %v165_v36  ;;  %v179_v43 = vmul.f32 %v171_v30, %v164_v38 }
  0xb0   :  { %383 = vmatpush.msra.mxu2 %v80_v39  ;;  %v2849_v39 = vld [vmem:[%s4076_s1 + $0x7] ss:$8 sm:$0xf] }
  0xb1   :  { %339 = vmatpush.msra.mxu0 %v178_v40  ;;  %359 = vmatpush.msra.mxu1 %v179_v43  ;;  %v644_v40 = vperm.slane %v2849_v39, 3 }
  0xb3   :  { %340 = vmatpush.msra.mxu0 %v2510_v2  ;;  %360 = vmatpush.msra.mxu1 %v2539_v3  ;;  %v87_v2 = vpop.permute.xlu2 %86  ;;  %v134_v3 = vperm.slane %v2660_v0, 0 }
  0xb4   :  { %v24_v41 = vpop.permute.xlu1 %23  ;;  %v98_v61 = vsel %vm94_vm5, %v2665_v10, %v87_v2  ;;  %v97_v62 = vsel %vm94_vm5, %v87_v2, %v89_v21  ;;  %v2870_v2 = vld [vmem:[%s4076_s1 + $0x5] ss:$8 sm:$0xf] }
  0xb5   :  { %v61_v47 = vpop.permute.xlu0 %60  ;;  %v33_v48 = vsel %vm31_vm7, %v24_v41, %v26_v45  ;;  %v110_v4 = vmul.f32 %v102_v56, %v98_v61  ;;  %v111_v6 = vmul.f32 %v103_v57, %v97_v62  ;;  %v2883_v61 = vld [vmem:[%s4076_s1 + $0x4] ss:$8 sm:$0xf] }
  0xb6   :  { %v63_v49 = vsel %vm62_vm6, %v59_v23, %v61_v47  ;;  %v48_v50 = vmul.f32 %v40_v42, %v33_v48  ;;  %v554_v62 = vperm.slane %v2883_v61, 3 }
  0xb7   :  { %v81_v52 = vmul.f32 %v73_v46, %v63_v49 }
  0xb8   :  { %384 = vmatpush.msra.mxu2 %v48_v50 }
  0xb9   :  { %403 = vmatpush.msra.mxu3 %v81_v52  ;;  %2385 = vmatmul.msk.f32.vlgmr.msra.gmra.mxu2 %vm325_vm8, %v282_v51 }
  0xbc   :  { %v119_v55 = vpop.permute.xlu1 %118 }
  0xbd   :  { %v28_v58 = vpop.permute.xlu0 %27  ;;  %v130_v59 = vsel %vm126_vm4, %v2667_v11, %v119_v55  ;;  %v129_v60 = vsel %vm126_vm4, %v119_v55, %v2618_v37  ;;  %v70_v37 = vperm.slane %v2691_v27, 0  ;;  %v38_v11 = vperm.slane %v36_v44, 0 }
  0xbe   :  { %v142_v63 = vmul.f32 %v134_v3, %v130_v59  ;;  %v143_v0 = vmul.f32 %v135_v53, %v129_v60  ;;  %v32_v1 = vsel %vm31_vm7, %v26_v45, %v28_v58  ;;  %v584_v3 = vperm.slane %v2870_v2, 3 }
  0xbf   :  { %v49_v5 = vmul.f32 %v41_v54, %v32_v1  ;;  %v643_v53 = vperm.slane %v2849_v39, 2 }
  0xc0   :  { %341 = vmatpush.msra.mxu0 %v142_v63  ;;  %361 = vmatpush.msra.mxu1 %v143_v0 }
  0xc1   :  { %404 = vmatpush.msra.mxu3 %v49_v5 }
  0xc2   :  { %342 = vmatpush.msra.mxu0 %v110_v4  ;;  %362 = vmatpush.msra.mxu1 %v111_v6 }
  0xc3   :  { %2386 = vmatmul.msk.f32.vlgmr.msra.gmra.mxu3 %vm325_vm8, %v282_v51 }
  0xc4   :  { %v22_v9 = vpop.permute.xlu1 %21 }
  0xc5   :  { %v55_v10 = vpop.permute.xlu0 %54  ;;  %v35_v15 = vsel %vm31_vm7, %v28_v58, %v22_v9  ;;  %v34_v16 = vsel %vm31_vm7, %v22_v9, %v24_v41  ;;  %v2862_v41 = vld [vmem:[%s4076_s1 + $0x6] ss:$8 sm:$0xf]  ;;  %v583_v9 = vperm.slane %v2870_v2, 2 }
  0xc6   :  { %v66_v13 = vsel %vm62_vm6, %v61_v47, %v55_v10  ;;  %v65_v14 = vsel %vm62_vm6, %v55_v10, %v2697_v31  ;;  %v46_v19 = vmul.f32 %v38_v11, %v35_v15  ;;  %v47_v20 = vmul.f32 %v39_v12, %v34_v16 }
  0xc7   :  { %v78_v17 = vmul.f32 %v70_v37, %v66_v13  ;;  %v79_v18 = vmul.f32 %v71_v8, %v65_v14  ;;  %v614_v47 = vperm.slane %v2862_v41, 3  ;;  %v613_v63 = vperm.slane %v2862_v41, 2 }
  0xc8   :  { %v553_v15 = vperm.slane %v2883_v61, 2 }
  0xc9   :  { %343 = vmatpush.msra.mxu0 %v78_v17  ;;  %363 = vmatpush.msra.mxu1 %v79_v18 }
  0xcb   :  { %344 = vmatpush.msra.mxu0 %v46_v19  ;;  %364 = vmatpush.msra.mxu1 %v47_v20  ;;  %v2913_v20 = vld [vmem:[%s4076_s1 + $0x3] ss:$8 sm:$0xf] }
  0xcc   :  { %2383 = vmatmul.msk.f32.vlgmr.msra.gmra.mxu0 %vm325_vm8, %v282_v51  ;;  %2384 = vmatmul.msk.f32.vlgmr.msra.gmra.mxu1 %vm325_vm8, %v282_v51 }
  0xe4   :  { %v323_v21 = vpop.permute.xlu2 %322 }
 0x13c   :  { %v386_v31 = vpop.f32.mrf.mxu2 }
 0x13d   :  { %v2784_v32 = vadd.f32 %v386_v31, %v323_v21 }
 0x13f   :  { %v2787_v33 = vmax.f32 %v2784_v32, 0.0 }
 0x146   :  { %v406_v28 = vpop.f32.mrf.mxu3 }
 0x147   :  { %v2773_v29 = vadd.f32 %v406_v28, %v323_v21  ;;  %v520_v28 = vperm.slane %v2913_v20, 3 }
 0x149   :  { %v346_v22 = vpop.f32.mrf.mxu0  ;;  %v366_v23 = vpop.f32.mrf.mxu1  ;;  %v2776_v30 = vmax.f32 %v2773_v29, 0.0 }
 0x14a   :  { %v2757_v24 = vadd.f32 %v346_v22, %v323_v21  ;;  %v2759_v25 = vadd.f32 %v366_v23, %v323_v21  ;;  %v641_v21 = vperm.slane %v2849_v39, 0  ;;  %v642_v22 = vperm.slane %v2849_v39, 1 }
 0x14b   :  { %v519_v23 = vperm.slane %v2913_v20, 2 }
 0x14c   :  { %v2762_v26 = vmax.f32 %v2757_v24, 0.0  ;;  %v2765_v27 = vmax.f32 %v2759_v25, 0.0 }
 0x14e   :  { %627 = vrot.lane.b32.xlu0 %v2762_v26, %s2463_s21  ;;  %415 = vrot.lane.b32.xlu2 %v2765_v27, %s2470_s29 }
 0x14f   :  { %445 = vrot.lane.b32.xlu1 %v2765_v27, %s2469_s28 }
 0x156   :  { %597 = vrot.lane.b32.xlu0 %v2762_v26, %s2464_s22  ;;  %633 = vrot.lane.b32.xlu2 %v2776_v30, %s2463_s21 }
 0x157   :  { %599 = vrot.lane.b32.xlu1 %v2765_v27, %s2464_s22 }
 0x15e   :  { %567 = vrot.lane.b32.xlu0 %v2762_v26, %s2465_s23  ;;  %603 = vrot.lane.b32.xlu2 %v2776_v30, %s2464_s22 }
 0x15f   :  { %631 = vrot.lane.b32.xlu1 %v2787_v33, %s2463_s21 }
 0x166   :  { %537 = vrot.lane.b32.xlu0 %v2762_v26, %s2466_s24  ;;  %573 = vrot.lane.b32.xlu2 %v2776_v30, %s2465_s23 }
 0x167   :  { %601 = vrot.lane.b32.xlu1 %v2787_v33, %s2464_s22 }
 0x16e   :  { %543 = vrot.lane.b32.xlu2 %v2776_v30, %s2466_s24  ;;  %505 = vrot.lane.b32.xlu0 %v2765_v27, %s2467_s27 }
 0x16f   :  { %571 = vrot.lane.b32.xlu1 %v2787_v33, %s2465_s23 }
 0x176   :  { %509 = vrot.lane.b32.xlu2 %v2776_v30, %s2467_s27  ;;  %475 = vrot.lane.b32.xlu0 %v2765_v27, %s2468_s0 }
 0x177   :  { %541 = vrot.lane.b32.xlu1 %v2787_v33, %s2466_s24 }
 0x17e   :  { %479 = vrot.lane.b32.xlu2 %v2776_v30, %s2468_s0  ;;  %629 = vrot.lane.b32.xlu0 %v2765_v27, %s2463_s21 }
 0x17f   :  { %507 = vrot.lane.b32.xlu1 %v2787_v33, %s2467_s27 }
 0x186   :  { %447 = vrot.lane.b32.xlu2 %v2787_v33, %s2469_s28  ;;  %449 = vrot.lane.b32.xlu0 %v2776_v30, %s2469_s28 }
 0x187   :  { %477 = vrot.lane.b32.xlu1 %v2787_v33, %s2468_s0 }
 0x18e   :  { %569 = vrot.lane.b32.xlu2 %v2765_v27, %s2465_s23  ;;  %417 = vrot.lane.b32.xlu0 %v2787_v33, %s2470_s29 }
 0x18f   :  { %419 = vrot.lane.b32.xlu1 %v2776_v30, %s2470_s29 }
 0x196   :  { %473 = vrot.lane.b32.xlu2 %v2762_v26, %s2468_s0  ;;  %539 = vrot.lane.b32.xlu0 %v2765_v27, %s2466_s24 }
 0x197   :  { %503 = vrot.lane.b32.xlu1 %v2762_v26, %s2467_s27 }
 0x19e   :  { %697 = vperm.xlu2 %2460, %v658_v34   ;;  %443 = vrot.lane.b32.xlu0 %v2762_v26, %s2469_s28  ;;  %v611_v34 = vperm.slane %v2862_v41, 0 }
 0x19f   :  { %413 = vrot.lane.b32.xlu1 %v2762_v26, %s2470_s29 }
 0x1a8   :  { %v2844_v35 = vpop.permute.xlu2 %415 }
 0x1b0   :  { %v634_v36 = vpop.permute.xlu2 %633 }
 0x1b8   :  { %v604_v38 = vpop.permute.xlu2 %603 }
 0x1c0   :  { %v2852_v43 = vpop.permute.xlu0 %627  ;;  %v574_v44 = vpop.permute.xlu2 %573 }
 0x1c1   :  { %v2854_v45 = vpop.permute.xlu1 %445  ;;  %v638_v42 = vsel %vm258_vm0, %v634_v36, %v2852_v43 }
 0x1c2   :  { %v652_v46 = vmul.f32 %v644_v40, %v638_v42  ;;  %v582_v40 = vperm.slane %v2870_v2, 1 }
 0x1c4   :  { %770 = vmatpush.msrb.mxu3 %v652_v46 }
 0x1c8   :  { %v598_v48 = vpop.permute.xlu0 %597  ;;  %v544_v49 = vpop.permute.xlu2 %543 }
 0x1c9   :  { %v600_v50 = vpop.permute.xlu1 %599  ;;  %v608_v51 = vsel %vm226_vm1, %v604_v38, %v598_v48 }
 0x1ca   :  { %v622_v52 = vmul.f32 %v614_v47, %v608_v51  ;;  %v607_v46 = vsel %vm226_vm1, %v598_v48, %v600_v50 }
 0x1cb   :  { %v619_v48 = vmul.f32 %v611_v34, %v607_v46  ;;  %v551_v34 = vperm.slane %v2883_v61, 0 }
 0x1cc   :  { %771 = vmatpush.msrb.mxu3 %v622_v52 }
 0x1d0   :  { %v568_v54 = vpop.permute.xlu0 %567  ;;  %v2876_v57 = vpop.permute.xlu2 %509 }
 0x1d1   :  { %v578_v55 = vsel %vm194_vm2, %v574_v44, %v568_v54  ;;  %v632_v56 = vpop.permute.xlu1 %631 }
 0x1d2   :  { %v635_v58 = vsel %vm258_vm0, %v632_v56, %v634_v36  ;;  %v592_v59 = vmul.f32 %v584_v3, %v578_v55  ;;  %v612_v36 = vperm.slane %v2862_v41, 1 }
 0x1d3   :  { %v651_v60 = vmul.f32 %v643_v53, %v635_v58 }
 0x1d4   :  { %772 = vmatpush.msrb.mxu3 %v592_v59 }
 0x1d5   :  { %750 = vmatpush.msrb.mxu2 %v651_v60 }
 0x1d8   :  { %v2887_v0 = vpop.permute.xlu0 %537  ;;  %v2894_v8 = vpop.permute.xlu2 %479 }
 0x1d9   :  { %v548_v1 = vsel %vm162_vm3, %v544_v49, %v2887_v0  ;;  %v602_v5 = vpop.permute.xlu1 %601 }
 0x1da   :  { %v605_v4 = vsel %vm226_vm1, %v602_v5, %v604_v38  ;;  %v562_v6 = vmul.f32 %v554_v62, %v548_v1  ;;  %v581_v38 = vperm.slane %v2870_v2, 0 }
 0x1db   :  { %v621_v37 = vmul.f32 %v613_v63, %v605_v4 }
 0x1dc   :  { %773 = vmatpush.msrb.mxu3 %v562_v6 }
 0x1dd   :  { %751 = vmatpush.msrb.mxu2 %v621_v37 }
 0x1de   :  { %774 = vmatpush.msrb.mxu3 %v2776_v30 }
 0x1e0   :  { %v2898_v10 = vpop.permute.xlu0 %505  ;;  %v448_v14 = vpop.permute.xlu2 %447 }
 0x1e1   :  { %v572_v11 = vpop.permute.xlu1 %571 }
 0x1e2   :  { %v575_v12 = vsel %vm194_vm2, %v572_v11, %v574_v44  ;;  %v606_v44 = vsel %vm226_vm1, %v600_v50, %v602_v5  ;;  %v452_v5 = vsel %vm62_vm6, %v2854_v45, %v448_v14 }
 0x1e3   :  { %v591_v13 = vmul.f32 %v583_v9, %v575_v12  ;;  %v620_v50 = vmul.f32 %v612_v36, %v606_v44  ;;  %v2974_v12 = vld [vmem:[%s4076_s1] ss:$8 sm:$0xf]  ;;  %v552_v36 = vperm.slane %v2883_v61, 1 }
 0x1e5   :  { %752 = vmatpush.msrb.mxu2 %v591_v13 }
 0x1e8   :  { %v2903_v16 = vpop.permute.xlu0 %475  ;;  %v570_v30 = vpop.permute.xlu2 %569 }
 0x1e9   :  { %v2905_v17 = vpop.permute.xlu1 %541  ;;  %v576_v52 = vsel %vm194_vm2, %v570_v30, %v572_v11  ;;  %v577_v2 = vsel %vm194_vm2, %v568_v54, %v570_v30  ;;  %v2951_v54 = vld [vmem:[%s4076_s1 + $0x1] ss:$8 sm:$0xf] }
 0x1ea   :  { %v545_v18 = vsel %vm162_vm3, %v2905_v17, %v544_v49  ;;  %v589_v53 = vmul.f32 %v581_v38, %v577_v2  ;;  %v590_v55 = vmul.f32 %v582_v40, %v576_v52  ;;  %v459_v63 = vperm.slane %v2951_v54, 2  ;;  %v657_v30 = vld [vmem:[%s4078_s2 + $0x8] sm:$0xff] }
 0x1eb   :  { %v561_v19 = vmul.f32 %v553_v15, %v545_v18  ;;  %v460_v1 = vperm.slane %v2951_v54, 3  ;;  %v429_v18 = vperm.slane %v2974_v12, 2  ;;  %v457_v52 = vperm.slane %v2951_v54, 0 }
 0x1ec   :  { %v467_v13 = vmul.f32 %v459_v63, %v452_v5  ;;  %v458_v2 = vperm.slane %v2951_v54, 1 }
 0x1ed   :  { %753 = vmatpush.msrb.mxu2 %v561_v19  ;;  %v430_v19 = vperm.slane %v2974_v12, 3 }
 0x1ef   :  { %754 = vmatpush.msrb.mxu2 %v2787_v33 }
 0x1f0   :  { %v630_v31 = vpop.permute.xlu0 %629 }
 0x1f1   :  { %v508_v39 = vpop.permute.xlu1 %507  ;;  %v636_v33 = vsel %vm258_vm0, %v630_v31, %v632_v56  ;;  %v637_v42 = vsel %vm258_vm0, %v2852_v43, %v630_v31  ;;  %v2946_v56 = vld [vmem:[%s4076_s1 + $0x2] ss:$8 sm:$0xf] }
 0x1f2   :  { %v511_v41 = vsel %vm126_vm4, %v508_v39, %v2876_v57  ;;  %v512_v47 = vsel %vm126_vm4, %v2898_v10, %v508_v39  ;;  %v649_v49 = vmul.f32 %v641_v21, %v637_v42  ;;  %v650_v51 = vmul.f32 %v642_v22, %v636_v33  ;;  %v474_v33 = vpop.permute.xlu2 %473 }
 0x1f3   :  { %v527_v43 = vmul.f32 %v519_v23, %v512_v47  ;;  %v528_v3 = vmul.f32 %v520_v28, %v511_v41  ;;  %v489_v58 = vperm.slane %v2946_v56, 2  ;;  %v490_v59 = vperm.slane %v2946_v56, 3 }
 0x1f4   :  { %710 = vmatpush.msrb.mxu0 %v649_v49  ;;  %730 = vmatpush.msrb.mxu1 %v650_v51  ;;  %v517_v41 = vperm.slane %v2913_v20, 0  ;;  %v518_v47 = vperm.slane %v2913_v20, 1  ;;  %v483_v51 = vsel %vm94_vm5, %v474_v33, %v2903_v16  ;;  %v484_v20 = vsel %vm94_vm5, %v2894_v8, %v474_v33 }
 0x1f5   :  { %755 = vmatpush.msrb.mxu2 %v527_v43  ;;  %775 = vmatpush.msrb.mxu3 %v528_v3 }
 0x1f6   :  { %711 = vmatpush.msrb.mxu0 %v619_v48  ;;  %731 = vmatpush.msrb.mxu1 %v620_v50 }
 0x1f8   :  { %712 = vmatpush.msrb.mxu0 %v589_v53  ;;  %732 = vmatpush.msrb.mxu1 %v590_v55  ;;  %v2955_v60 = vpop.permute.xlu0 %449 }
 0x1f9   :  { %v478_v62 = vpop.permute.xlu1 %477  ;;  %v451_v37 = vsel %vm62_vm6, %v448_v14, %v2955_v60 }
 0x1fa   :  { %v481_v4 = vsel %vm94_vm5, %v478_v62, %v2894_v8  ;;  %v482_v6 = vsel %vm94_vm5, %v2903_v16, %v478_v62  ;;  %v468_v15 = vmul.f32 %v460_v1, %v451_v37  ;;  %v427_v16 = vperm.slane %v2974_v12, 0 }
 0x1fb   :  { %v497_v9 = vmul.f32 %v489_v58, %v482_v6  ;;  %v498_v11 = vmul.f32 %v490_v59, %v481_v4  ;;  %v428_v8 = vperm.slane %v2974_v12, 1  ;;  %v698_v59 = vpop.permute.xlu2 %697  ;;  %v783_v4 = vld [vmem:[%s4078_s2 + $0x10] sm:$0xff] }
 0x1fd   :  { %756 = vmatpush.msrb.mxu2 %v497_v9  ;;  %776 = vmatpush.msrb.mxu3 %v498_v11 }
 0x1ff   :  { %757 = vmatpush.msrb.mxu2 %v467_v13  ;;  %777 = vmatpush.msrb.mxu3 %v468_v15 }
 0x200   :  { %v418_v21 = vpop.permute.xlu0 %417 }
 0x201   :  { %v420_v22 = vpop.permute.xlu1 %419  ;;  %v422_v14 = vsel %vm31_vm7, %v2844_v35, %v418_v21 }
 0x202   :  { %v421_v23 = vsel %vm31_vm7, %v418_v21, %v420_v22  ;;  %v437_v28 = vmul.f32 %v429_v18, %v422_v14 }
 0x203   :  { %v438_v31 = vmul.f32 %v430_v19, %v421_v23 }
 0x204   :  { %758 = vmatpush.msrb.mxu2 %v437_v28 }
 0x205   :  { %778 = vmatpush.msrb.mxu3 %v438_v31  ;;  %2396 = vmatmul.msk.f32.vlgmr.msrb.gmra.mxu2 %vm325_vm8, %v657_v30 }
 0x206   :  { %2397 = vmatmul.msk.f32.vlgmr.msrb.gmra.mxu3 %vm325_vm8, %v657_v30 }
 0x208   :  { %v540_v38 = vpop.permute.xlu0 %539 }
 0x209   :  { %v504_v40 = vpop.permute.xlu1 %503  ;;  %v546_v44 = vsel %vm162_vm3, %v540_v38, %v2905_v17  ;;  %v547_v39 = vsel %vm162_vm3, %v2887_v0, %v540_v38  ;;  %v487_v17 = vperm.slane %v2946_v56, 0  ;;  %v488_v0 = vperm.slane %v2946_v56, 1 }
 0x20a   :  { %v559_v42 = vmul.f32 %v551_v34, %v547_v39  ;;  %v560_v46 = vmul.f32 %v552_v36, %v546_v44  ;;  %v513_v61 = vsel %vm126_vm4, %v504_v40, %v2898_v10  ;;  %v514_v49 = vsel %vm126_vm4, %v2876_v57, %v504_v40 }
 0x20b   :  { %v525_v10 = vmul.f32 %v517_v41, %v514_v49  ;;  %v526_v57 = vmul.f32 %v518_v47, %v513_v61  ;;  %v495_v3 = vmul.f32 %v487_v17, %v484_v20  ;;  %v496_v48 = vmul.f32 %v488_v0, %v483_v51  ;;  %v2408_v0 = vld [vmem:[%s4076_s1 + $0x7] ss:$8 sm:$0xf]  ;;  %v2407_v51 = vld [vmem:[%s4076_s1 + $0x6] ss:$8 sm:$0xf] }
 0x20c   :  { %713 = vmatpush.msrb.mxu0 %v559_v42  ;;  %733 = vmatpush.msrb.mxu1 %v560_v46  ;;  %v1118_v20 = vperm.slane %v2408_v0, 0 }
 0x20e   :  { %714 = vmatpush.msrb.mxu0 %v2762_v26  ;;  %734 = vmatpush.msrb.mxu1 %v2765_v27 }
 0x210   :  { %715 = vmatpush.msrb.mxu0 %v525_v10  ;;  %735 = vmatpush.msrb.mxu1 %v526_v57  ;;  %v444_v43 = vpop.permute.xlu0 %443  ;;  %v1121_v10 = vperm.slane %v2408_v0, 3  ;;  %v1088_v57 = vperm.slane %v2407_v51, 0 }
 0x211   :  { %v414_v50 = vpop.permute.xlu1 %413  ;;  %v453_v26 = vsel %vm62_vm6, %v444_v43, %v2854_v45  ;;  %v454_v27 = vsel %vm62_vm6, %v2955_v60, %v444_v43 }
 0x212   :  { %v423_v53 = vsel %vm31_vm7, %v414_v50, %v2844_v35  ;;  %v424_v55 = vsel %vm31_vm7, %v420_v22, %v414_v50  ;;  %716 = vmatpush.msrb.mxu0 %v495_v3  ;;  %736 = vmatpush.msrb.mxu1 %v496_v48  ;;  %v465_v56 = vmul.f32 %v457_v52, %v454_v27  ;;  %v784_v35 = vld [vmem:[%s4077_s3 + $0x10] sm:$0xff] }
 0x213   :  { %v466_v54 = vmul.f32 %v458_v2, %v453_v26  ;;  %v435_v58 = vmul.f32 %v427_v16, %v424_v55  ;;  %v436_v45 = vmul.f32 %v428_v8, %v423_v53  ;;  %879 = vperm.xlu0 %2461, %v784_v35   ;;  %v1119_v8 = vperm.slane %v2408_v0, 1 }
 0x214   :  { %717 = vmatpush.msrb.mxu0 %v465_v56  ;;  %v1120_v53 = vperm.slane %v2408_v0, 2  ;;  %v1091_v55 = vperm.slane %v2407_v51, 3  ;;  %v1089_v56 = vperm.slane %v2407_v51, 1 }
 0x215   :  { %737 = vmatpush.msrb.mxu1 %v466_v54 }
 0x216   :  { %718 = vmatpush.msrb.mxu0 %v435_v58 }
 0x217   :  { %738 = vmatpush.msrb.mxu1 %v436_v45  ;;  %2394 = vmatmul.msk.f32.vlgmr.msrb.gmra.mxu0 %vm325_vm8, %v657_v30  ;;  %v1090_v45 = vperm.slane %v2407_v51, 2 }
 0x218   :  { %2395 = vmatmul.msk.f32.vlgmr.msrb.gmra.mxu1 %vm325_vm8, %v657_v30 }
 0x285   :  { %v880_v22 = vpop.permute.xlu0 %879 }
 0x288   :  { %v760_v60 = vpop.f32.mrf.mxu2 }
 0x289   :  { %v761_v62 = vadd.f32 %v760_v60, %v698_v59  ;;  %v780_v63 = vpop.f32.mrf.mxu3 }
 0x28a   :  { %v781_v1 = vadd.f32 %v780_v63, %v698_v59 }
 0x28b   :  { %v787_v5 = vmax.f32 %v761_v62, 0.0 }
 0x28c   :  { %v788_v6 = vmax.f32 %v781_v1, 0.0 }
 0x28d   :  { %848 = vmatpush.msra.mxu2 %v787_v5 }
 0x28e   :  { %868 = vmatpush.msra.mxu3 %v788_v6  ;;  %2400 = vmatmul.msk.f32.vlgmr.msra.gmra.mxu2 %vm789_vm9, %v783_v4 }
 0x28f   :  { %2401 = vmatmul.msk.f32.vlgmr.msra.gmra.mxu3 %vm789_vm9, %v783_v4 }
 0x294   :  { %v720_v37 = vpop.f32.mrf.mxu0 }
 0x295   :  { %v721_v9 = vadd.f32 %v720_v37, %v698_v59  ;;  %v740_v11 = vpop.f32.mrf.mxu1  ;;  %v3171_v37 = vld [vmem:[%s4076_s1 + $0x5] ss:$8 sm:$0xf] }
 0x296   :  { %v741_v12 = vadd.f32 %v740_v11, %v698_v59 }
 0x297   :  { %v785_v13 = vmax.f32 %v721_v9, 0.0 }
 0x298   :  { %v786_v15 = vmax.f32 %v741_v12, 0.0  ;;  %v1060_v12 = vperm.slane %v3171_v37, 2 }
 0x299   :  { %808 = vmatpush.msra.mxu0 %v785_v13  ;;  %v1061_v13 = vperm.slane %v3171_v37, 3 }
 0x29a   :  { %828 = vmatpush.msra.mxu1 %v786_v15  ;;  %2398 = vmatmul.msk.f32.vlgmr.msra.gmra.mxu0 %vm789_vm9, %v783_v4 }
 0x29b   :  { %2399 = vmatmul.msk.f32.vlgmr.msra.gmra.mxu1 %vm789_vm9, %v783_v4 }
 0x317   :  { %v810_v18 = vpop.f32.mrf.mxu0 }
 0x318   :  { %v873_v19 = vadd.f32 %v810_v18, %v2757_v24  ;;  %v830_v21 = vpop.f32.mrf.mxu1  ;;  %v870_v24 = vpop.f32.mrf.mxu3 }
 0x319   :  { %v874_v14 = vadd.f32 %v830_v21, %v2759_v25  ;;  %v850_v25 = vpop.f32.mrf.mxu2  ;;  %v876_v34 = vadd.f32 %v870_v24, %v2773_v29  ;;  %v3186_v24 = vld [vmem:[%s4076_s1 + $0x4] ss:$8 sm:$0xf] }
 0x31a   :  { %v3043_v23 = vadd.f32 %v880_v22, %v873_v19  ;;  %v875_v36 = vadd.f32 %v850_v25, %v2784_v32  ;;  %v1261_v32 = vld [vmem:[%s4077_s3 + $0x20] sm:$0xff]  ;;  %v1030_v25 = vperm.slane %v3186_v24, 2 }
 0x31b   :  { %v3045_v28 = vadd.f32 %v880_v22, %v874_v14  ;;  %v3067_v38 = vadd.f32 %v880_v22, %v876_v34  ;;  %v1031_v34 = vperm.slane %v3186_v24, 3 }
 0x31c   :  { %v3048_v30 = vmax.f32 %v3043_v23, 0.0  ;;  %v3069_v40 = vadd.f32 %v880_v22, %v875_v36  ;;  %v3193_v36 = vld [vmem:[%s4076_s1 + $0x3] ss:$8 sm:$0xf] }
 0x31d   :  { %v3051_v31 = vmax.f32 %v3045_v28, 0.0  ;;  %v3072_v44 = vmax.f32 %v3067_v38, 0.0  ;;  %v996_v0 = vperm.slane %v3193_v36, 2 }
 0x31e   :  { %1074 = vrot.lane.b32.xlu2 %v3048_v30, %s2464_s22  ;;  %1104 = vrot.lane.b32.xlu1 %v3048_v30, %s2463_s21  ;;  %v3075_v29 = vmax.f32 %v3069_v40, 0.0 }
 0x31f   :  { %922 = vrot.lane.b32.xlu0 %v3051_v31, %s2469_s28 }
 0x326   :  { %1044 = vrot.lane.b32.xlu2 %v3048_v30, %s2465_s23  ;;  %892 = vrot.lane.b32.xlu1 %v3051_v31, %s2470_s29 }
 0x327   :  { %1076 = vrot.lane.b32.xlu0 %v3051_v31, %s2464_s22 }
 0x32e   :  { %1014 = vrot.lane.b32.xlu2 %v3048_v30, %s2466_s24  ;;  %1110 = vrot.lane.b32.xlu1 %v3072_v44, %s2463_s21 }
 0x32f   :  { %1078 = vrot.lane.b32.xlu0 %v3075_v29, %s2464_s22 }
 0x336   :  { %982 = vrot.lane.b32.xlu2 %v3051_v31, %s2467_s27  ;;  %1080 = vrot.lane.b32.xlu1 %v3072_v44, %s2464_s22 }
 0x337   :  { %1048 = vrot.lane.b32.xlu0 %v3075_v29, %s2465_s23 }
 0x33e   :  { %952 = vrot.lane.b32.xlu2 %v3051_v31, %s2468_s0  ;;  %1050 = vrot.lane.b32.xlu1 %v3072_v44, %s2465_s23 }
 0x33f   :  { %1018 = vrot.lane.b32.xlu0 %v3075_v29, %s2466_s24 }
 0x346   :  { %1106 = vrot.lane.b32.xlu2 %v3051_v31, %s2463_s21  ;;  %1020 = vrot.lane.b32.xlu1 %v3072_v44, %s2466_s24 }
 0x347   :  { %984 = vrot.lane.b32.xlu0 %v3075_v29, %s2467_s27 }
 0x34e   :  { %1108 = vrot.lane.b32.xlu2 %v3075_v29, %s2463_s21  ;;  %986 = vrot.lane.b32.xlu1 %v3072_v44, %s2467_s27 }
 0x34f   :  { %954 = vrot.lane.b32.xlu0 %v3075_v29, %s2468_s0 }
 0x356   :  { %926 = vrot.lane.b32.xlu2 %v3072_v44, %s2469_s28  ;;  %956 = vrot.lane.b32.xlu1 %v3072_v44, %s2468_s0 }
 0x357   :  { %896 = vrot.lane.b32.xlu0 %v3072_v44, %s2470_s29 }
 0x35e   :  { %894 = vrot.lane.b32.xlu2 %v3075_v29, %s2470_s29  ;;  %924 = vrot.lane.b32.xlu1 %v3075_v29, %s2469_s28 }
 0x35f   :  { %980 = vrot.lane.b32.xlu0 %v3048_v30, %s2467_s27 }
 0x366   :  { %1016 = vrot.lane.b32.xlu2 %v3051_v31, %s2466_s24  ;;  %1046 = vrot.lane.b32.xlu1 %v3051_v31, %s2465_s23 }
 0x367   :  { %890 = vrot.lane.b32.xlu0 %v3048_v30, %s2470_s29 }
 0x36e   :  { %920 = vrot.lane.b32.xlu2 %v3048_v30, %s2469_s28  ;;  %950 = vrot.lane.b32.xlu1 %v3048_v30, %s2468_s0 }
 0x376   :  { %1355 = vperm.xlu2 %2460, %v1261_v32  }
 0x378   :  { %v1075_v39 = vpop.permute.xlu2 %1074 }
 0x380   :  { %v3132_v33 = vpop.permute.xlu2 %1044 }
 0x388   :  { %v3134_v42 = vpop.permute.xlu2 %1014 }
 0x390   :  { %v3136_v46 = vpop.permute.xlu2 %982  ;;  %v1105_v41 = vpop.permute.xlu1 %1104 }
 0x391   :  { %v3138_v47 = vpop.permute.xlu0 %922 }
 0x398   :  { %v3140_v61 = vpop.permute.xlu2 %952  ;;  %v3142_v49 = vpop.permute.xlu1 %892 }
 0x399   :  { %v1077_v17 = vpop.permute.xlu0 %1076 }
 0x39a   :  { %v1084_v43 = vsel %vm226_vm1, %v1075_v39, %v1077_v17 }
 0x39b   :  { %v1096_v27 = vmul.f32 %v1088_v57, %v1084_v43  ;;  %v3208_v57 = vld [vmem:[%s4076_s1 + $0x2] ss:$8 sm:$0xf] }
 0x39c   :  { %v966_v43 = vperm.slane %v3208_v57, 2 }
 0x3a0   :  { %v1107_v52 = vpop.permute.xlu2 %1106  ;;  %v1111_v2 = vpop.permute.xlu1 %1110 }
 0x3a1   :  { %v1079_v3 = vpop.permute.xlu0 %1078  ;;  %v1114_v48 = vsel %vm258_vm0, %v1105_v41, %v1107_v52  ;;  %v1115_v16 = vsel %vm258_vm0, %v1111_v2, %v1105_v41 }
 0x3a2   :  { %v1126_v50 = vmul.f32 %v1118_v20, %v1114_v48  ;;  %v1129_v26 = vmul.f32 %v1121_v10, %v1115_v16  ;;  %v1083_v54 = vsel %vm226_vm1, %v1077_v17, %v1079_v3 }
 0x3a3   :  { %v1097_v9 = vmul.f32 %v1089_v56, %v1083_v54 }
 0x3a4   :  { %1187 = vmatpush.msrb.mxu0 %v1126_v50  ;;  %1247 = vmatpush.msrb.mxu3 %v1129_v26 }
 0x3a6   :  { %1188 = vmatpush.msrb.mxu0 %v1096_v27 }
 0x3a8   :  { %v1109_v58 = vpop.permute.xlu2 %1108  ;;  %v1081_v35 = vpop.permute.xlu1 %1080 }
 0x3a9   :  { %v3158_v59 = vpop.permute.xlu0 %1048  ;;  %v1112_v60 = vsel %vm258_vm0, %v1109_v58, %v1111_v2  ;;  %v1113_v62 = vsel %vm258_vm0, %v1107_v52, %v1109_v58  ;;  %v1082_v63 = vsel %vm226_vm1, %v1079_v3, %v1081_v35  ;;  %v1085_v1 = vsel %vm226_vm1, %v1081_v35, %v1075_v39  ;;  %v3240_v35 = vld [vmem:[%s4076_s1 + $0x1] ss:$8 sm:$0xf] }
 0x3aa   :  { %v1127_v5 = vmul.f32 %v1119_v8, %v1113_v62  ;;  %v1128_v4 = vmul.f32 %v1120_v53, %v1112_v60  ;;  %v1099_v6 = vmul.f32 %v1091_v55, %v1085_v1  ;;  %v1098_v11 = vmul.f32 %v1090_v45, %v1082_v63  ;;  %v1135_v8 = vld [vmem:[%s4077_s3 + $0x18] sm:$0xff] }
 0x3ab   :  { %v997_v2 = vperm.slane %v3193_v36, 3  ;;  %1174 = vperm.xlu1 %2462, %v1135_v8   ;;  %v3235_v45 = vld [vmem:[%s4076_s1] ss:$8 sm:$0xf]  ;;  %v936_v60 = vperm.slane %v3240_v35, 2  ;;  %v937_v62 = vperm.slane %v3240_v35, 3 }
 0x3ac   :  { %1207 = vmatpush.msrb.mxu1 %v1127_v5  ;;  %1227 = vmatpush.msrb.mxu2 %v1128_v4  ;;  %v906_v63 = vperm.slane %v3235_v45, 2  ;;  %v907_v1 = vperm.slane %v3235_v45, 3 }
 0x3ad   :  { %1248 = vmatpush.msrb.mxu3 %v1099_v6 }
 0x3ae   :  { %1208 = vmatpush.msrb.mxu1 %v1097_v9  ;;  %1228 = vmatpush.msrb.mxu2 %v1098_v11 }
 0x3b0   :  { %v1051_v15 = vpop.permute.xlu1 %1050  ;;  %v3214_v3 = vpop.permute.xlu2 %926 }
 0x3b1   :  { %v3175_v18 = vpop.permute.xlu0 %1018  ;;  %v1052_v19 = vsel %vm194_vm2, %v3158_v59, %v1051_v15  ;;  %v1055_v21 = vsel %vm194_vm2, %v1051_v15, %v3132_v33 }
 0x3b2   :  { %v1068_v22 = vmul.f32 %v1060_v12, %v1052_v19  ;;  %v1069_v14 = vmul.f32 %v1061_v13, %v1055_v21 }
 0x3b4   :  { %1229 = vmatpush.msrb.mxu2 %v1068_v22  ;;  %1249 = vmatpush.msrb.mxu3 %v1069_v14  ;;  %v1134_v22 = vld [vmem:[%s4078_s2 + $0x18] sm:$0xff] }
 0x3b8   :  { %v1021_v32 = vpop.permute.xlu1 %1020  ;;  %v895_v56 = vpop.permute.xlu2 %894 }
 0x3b9   :  { %v985_v39 = vpop.permute.xlu0 %984  ;;  %v1022_v41 = vsel %vm162_vm3, %v3175_v18, %v1021_v32  ;;  %v1025_v17 = vsel %vm162_vm3, %v1021_v32, %v3134_v42  ;;  %v899_v4 = vsel %vm31_vm7, %v3142_v49, %v895_v56  ;;  %v1028_v32 = vperm.slane %v3186_v24, 0 }
 0x3ba   :  { %v1038_v51 = vmul.f32 %v1030_v25, %v1022_v41  ;;  %v1039_v20 = vmul.f32 %v1031_v34, %v1025_v17  ;;  %v989_v10 = vsel %vm126_vm4, %v3136_v46, %v985_v39  ;;  %v914_v15 = vmul.f32 %v906_v63, %v899_v4 }
 0x3bb   :  { %v1004_v52 = vmul.f32 %v996_v0, %v989_v10  ;;  %v1058_v25 = vperm.slane %v3171_v37, 0  ;;  %v1059_v34 = vperm.slane %v3171_v37, 1 }
 0x3bc   :  { %1230 = vmatpush.msrb.mxu2 %v1038_v51  ;;  %1250 = vmatpush.msrb.mxu3 %v1039_v20 }
 0x3be   :  { %1231 = vmatpush.msrb.mxu2 %v3075_v29  ;;  %1251 = vmatpush.msrb.mxu3 %v3072_v44  ;;  %v967_v44 = vperm.slane %v3208_v57, 3 }
 0x3c0   :  { %1232 = vmatpush.msrb.mxu2 %v1004_v52  ;;  %v987_v48 = vpop.permute.xlu1 %986  ;;  %v1017_v19 = vpop.permute.xlu2 %1016 }
 0x3c1   :  { %v955_v16 = vpop.permute.xlu0 %954  ;;  %v988_v50 = vsel %vm126_vm4, %v985_v39, %v987_v48  ;;  %v1029_v39 = vperm.slane %v3186_v24, 1  ;;  %v1023_v17 = vsel %vm162_vm3, %v1017_v19, %v3175_v18  ;;  %v1024_v0 = vsel %vm162_vm3, %v3134_v42, %v1017_v19 }
 0x3c2   :  { %v959_v26 = vsel %vm94_vm5, %v3140_v61, %v955_v16  ;;  %v1005_v27 = vmul.f32 %v997_v2, %v988_v50  ;;  %v1036_v24 = vmul.f32 %v1028_v32, %v1024_v0  ;;  %v994_v2 = vperm.slane %v3193_v36, 0 }
 0x3c3   :  { %v974_v29 = vmul.f32 %v966_v43, %v959_v26  ;;  %v1037_v52 = vmul.f32 %v1029_v39, %v1023_v17  ;;  %v995_v18 = vperm.slane %v3193_v36, 1  ;;  %v934_v50 = vperm.slane %v3240_v35, 0 }
 0x3c4   :  { %1252 = vmatpush.msrb.mxu3 %v1005_v27  ;;  %v935_v36 = vperm.slane %v3240_v35, 1 }
 0x3c5   :  { %1233 = vmatpush.msrb.mxu2 %v974_v29 }
 0x3c8   :  { %v3225_v53 = vpop.permute.xlu1 %956  ;;  %v921_v43 = vpop.permute.xlu2 %920 }
 0x3c9   :  { %v958_v55 = vsel %vm94_vm5, %v955_v16, %v3225_v53  ;;  %v3230_v58 = vpop.permute.xlu0 %896  ;;  %v965_v16 = vperm.slane %v3208_v57, 1 }
 0x3ca   :  { %v975_v54 = vmul.f32 %v967_v44, %v958_v55  ;;  %v898_v6 = vsel %vm31_vm7, %v895_v56, %v3230_v58 }
 0x3cb   :  { %v915_v21 = vmul.f32 %v907_v1, %v898_v6 }
 0x3cc   :  { %1253 = vmatpush.msrb.mxu3 %v975_v54 }
 0x3d0   :  { %v925_v5 = vpop.permute.xlu1 %924 }
 0x3d1   :  { %v928_v9 = vsel %vm62_vm6, %v925_v5, %v3214_v3  ;;  %v929_v11 = vsel %vm62_vm6, %v3138_v47, %v925_v5  ;;  %v981_v14 = vpop.permute.xlu0 %980  ;;  %v1260_v5 = vld [vmem:[%s4078_s2 + $0x20] sm:$0xff] }
 0x3d2   :  { %v944_v12 = vmul.f32 %v936_v60, %v929_v11  ;;  %v945_v13 = vmul.f32 %v937_v62, %v928_v9  ;;  %v990_v42 = vsel %vm126_vm4, %v981_v14, %v3136_v46 }
 0x3d3   :  { %v1003_v27 = vmul.f32 %v995_v18, %v990_v42  ;;  %v2423_v42 = vld [vmem:[%s4076_s1 + $0x7] ss:$8 sm:$0xf] }
 0x3d4   :  { %1234 = vmatpush.msrb.mxu2 %v944_v12  ;;  %1254 = vmatpush.msrb.mxu3 %v945_v13 }
 0x3d6   :  { %1235 = vmatpush.msrb.mxu2 %v914_v15  ;;  %1255 = vmatpush.msrb.mxu3 %v915_v21 }
 0x3d7   :  { %2411 = vmatmul.msk.f32.vlgmr.msrb.gmra.mxu2 %vm325_vm8, %v1134_v22  ;;  %2412 = vmatmul.msk.f32.vlgmr.msrb.gmra.mxu3 %vm325_vm8, %v1134_v22 }
 0x3d8   :  { %v1047_v41 = vpop.permute.xlu1 %1046 }
 0x3d9   :  { %v1053_v37 = vsel %vm194_vm2, %v1047_v41, %v3158_v59  ;;  %v1054_v51 = vsel %vm194_vm2, %v3132_v33, %v1047_v41  ;;  %v991_v59 = vsel %vm126_vm4, %v987_v48, %v981_v14  ;;  %v964_v33 = vperm.slane %v3208_v57, 0  ;;  %v891_v29 = vpop.permute.xlu0 %890  ;;  %v1356_v14 = vpop.permute.xlu2 %1355 }
 0x3da   :  { %v1066_v20 = vmul.f32 %v1058_v25, %v1054_v51  ;;  %v1067_v10 = vmul.f32 %v1059_v34, %v1053_v37  ;;  %v1002_v26 = vmul.f32 %v994_v2, %v991_v59  ;;  %v930_v48 = vsel %vm62_vm6, %v921_v43, %v3138_v47 }
 0x3db   :  { %v931_v57 = vsel %vm62_vm6, %v3214_v3, %v921_v43  ;;  %v900_v47 = vsel %vm31_vm7, %v891_v29, %v3142_v49  ;;  %v943_v54 = vmul.f32 %v935_v36, %v930_v48  ;;  %v1597_v59 = vperm.slane %v2423_v42, 3  ;;  %v2422_v36 = vld [vmem:[%s4076_s1 + $0x6] ss:$8 sm:$0xf] }
 0x3dc   :  { %1189 = vmatpush.msrb.mxu0 %v1066_v20  ;;  %1209 = vmatpush.msrb.mxu1 %v1067_v10  ;;  %v942_v3 = vmul.f32 %v934_v50, %v931_v57  ;;  %v1614_v20 = vld [vmem:[%s4077_s3 + $0x28] sm:$0xff]  ;;  %v1615_v10 = vld [vmem:[%s4077_s3 + $0x30] sm:$0xff] }
 0x3de   :  { %1190 = vmatpush.msrb.mxu0 %v1036_v24  ;;  %1210 = vmatpush.msrb.mxu1 %v1037_v52  ;;  %v1616_v24 = vld [vmem:[%s4077_s3 + $0x38] sm:$0xff] }
 0x3e0   :  { %1191 = vmatpush.msrb.mxu0 %v3048_v30  ;;  %1211 = vmatpush.msrb.mxu1 %v3051_v31  ;;  %v951_v46 = vpop.permute.xlu1 %950  ;;  %v904_v30 = vperm.slane %v3235_v45, 0  ;;  %v905_v31 = vperm.slane %v3235_v45, 1 }
 0x3e1   :  { %v960_v44 = vsel %vm94_vm5, %v951_v46, %v3140_v61  ;;  %v961_v8 = vsel %vm94_vm5, %v3225_v53, %v951_v46  ;;  %v901_v61 = vsel %vm31_vm7, %v3230_v58, %v891_v29 }
 0x3e2   :  { %v972_v55 = vmul.f32 %v964_v33, %v961_v8  ;;  %v973_v56 = vmul.f32 %v965_v16, %v960_v44  ;;  %1192 = vmatpush.msrb.mxu0 %v1002_v26  ;;  %1212 = vmatpush.msrb.mxu1 %v1003_v27  ;;  %v912_v53 = vmul.f32 %v904_v30, %v901_v61  ;;  %v1567_v27 = vperm.slane %v2422_v36, 3  ;;  %v2421_v44 = vld [vmem:[%s4076_s1 + $0x5] ss:$8 sm:$0xf] }
 0x3e3   :  { %v913_v35 = vmul.f32 %v905_v31, %v900_v47  ;;  %v1537_v30 = vperm.slane %v2421_v44, 3  ;;  %v3435_v61 = vld [vmem:[%s4076_s1 + $0x4] ss:$8 sm:$0xf] }
 0x3e4   :  { %1193 = vmatpush.msrb.mxu0 %v972_v55  ;;  %1213 = vmatpush.msrb.mxu1 %v973_v56 }
 0x3e6   :  { %1194 = vmatpush.msrb.mxu0 %v942_v3  ;;  %1214 = vmatpush.msrb.mxu1 %v943_v54  ;;  %v1596_v3 = vperm.slane %v2423_v42, 2  ;;  %v1507_v54 = vperm.slane %v3435_v61, 3 }
 0x3e8   :  { %1195 = vmatpush.msrb.mxu0 %v912_v53  ;;  %1215 = vmatpush.msrb.mxu1 %v913_v35 }
 0x3e9   :  { %2409 = vmatmul.msk.f32.vlgmr.msrb.gmra.mxu0 %vm325_vm8, %v1134_v22  ;;  %2410 = vmatmul.msk.f32.vlgmr.msrb.gmra.mxu1 %vm325_vm8, %v1134_v22 }
 0x41d   :  { %v1175_v45 = vpop.permute.xlu1 %1174 }
 0x45a   :  { %v1237_v49 = vpop.f32.mrf.mxu2  ;;  %v1257_v60 = vpop.f32.mrf.mxu3 }
 0x45b   :  { %v1238_v62 = vadd.f32 %v1237_v49, %v1175_v45  ;;  %v1258_v63 = vadd.f32 %v1257_v60, %v1175_v45 }
 0x45d   :  { %v1264_v58 = vmax.f32 %v1238_v62, 0.0  ;;  %v1265_v1 = vmax.f32 %v1258_v63, 0.0 }
 0x45f   :  { %1324 = vmatpush.msra.mxu2 %v1264_v58  ;;  %1344 = vmatpush.msra.mxu3 %v1265_v1  ;;  %v1566_v58 = vperm.slane %v2422_v36, 2  ;;  %v1595_v1 = vperm.slane %v2423_v42, 1 }
 0x460   :  { %2415 = vmatmul.msk.f32.vlgmr.msra.gmra.mxu2 %vm789_vm9, %v1260_v5  ;;  %2416 = vmatmul.msk.f32.vlgmr.msra.gmra.mxu3 %vm789_vm9, %v1260_v5 }
 0x466   :  { %v1197_v4 = vpop.f32.mrf.mxu0  ;;  %v1217_v6 = vpop.f32.mrf.mxu1 }
 0x467   :  { %v1198_v9 = vadd.f32 %v1197_v4, %v1175_v45  ;;  %v1218_v11 = vadd.f32 %v1217_v6, %v1175_v45  ;;  %v1594_v4 = vperm.slane %v2423_v42, 0  ;;  %v1565_v6 = vperm.slane %v2422_v36, 1 }
 0x469   :  { %v1262_v12 = vmax.f32 %v1198_v9, 0.0  ;;  %v1263_v13 = vmax.f32 %v1218_v11, 0.0 }
 0x46b   :  { %1284 = vmatpush.msra.mxu0 %v1262_v12  ;;  %1304 = vmatpush.msra.mxu1 %v1263_v13  ;;  %v1564_v12 = vperm.slane %v2422_v36, 0 }
 0x46c   :  { %2413 = vmatmul.msk.f32.vlgmr.msra.gmra.mxu0 %vm789_vm9, %v1260_v5  ;;  %2414 = vmatmul.msk.f32.vlgmr.msra.gmra.mxu1 %vm789_vm9, %v1260_v5 }
 0x4e3   :  { %v1346_v41 = vpop.f32.mrf.mxu3  ;;  %v1326_v17 = vpop.f32.mrf.mxu2 }
 0x4e4   :  { %v1351_v0 = vadd.f32 %v1326_v17, %v3069_v40  ;;  %v1617_v40 = vld [vmem:[%s4077_s3 + $0x40] sm:$0xff]  ;;  %v1535_v17 = vperm.slane %v2421_v44, 1 }
 0x4e9   :  { %v1286_v15 = vpop.f32.mrf.mxu0  ;;  %v1306_v19 = vpop.f32.mrf.mxu1 }
 0x4ea   :  { %v1349_v21 = vadd.f32 %v1286_v15, %v3043_v23  ;;  %v1350_v22 = vadd.f32 %v1306_v19, %v3045_v28  ;;  %v1352_v23 = vadd.f32 %v1346_v41, %v3067_v38  ;;  %v1360_v38 = vadd.f32 %v1356_v14, %v1351_v0 }
 0x4eb   :  { %v1536_v0 = vperm.slane %v2421_v44, 2 }
 0x4ec   :  { %v1358_v25 = vadd.f32 %v1356_v14, %v1349_v21  ;;  %v1359_v34 = vadd.f32 %v1356_v14, %v1350_v22  ;;  %v1361_v28 = vadd.f32 %v1356_v14, %v1352_v23  ;;  %v3349_v51 = vmax.f32 %v1360_v38, 0.0 }
 0x4ee   :  { %v3323_v32 = vmax.f32 %v1358_v25, 0.0  ;;  %v3325_v39 = vmax.f32 %v1359_v34, 0.0  ;;  %v3341_v37 = vmax.f32 %v1361_v28, 0.0  ;;  %v1534_v25 = vperm.slane %v2421_v44, 0 }
 0x4ef   :  { %v2419_v44 = vld [vmem:[%s4076_s1 + $0x3] ss:$8 sm:$0xf] }
 0x4f0   :  { %1458 = vrot.lane.b32.xlu2 %v3325_v39, %s2467_s27  ;;  %1552 = vrot.lane.b32.xlu1 %v3325_v39, %s2464_s22 }
 0x4f1   :  { %1580 = vrot.lane.b32.xlu0 %v3323_v32, %s2463_s21 }
 0x4f8   :  { %1522 = vrot.lane.b32.xlu2 %v3325_v39, %s2465_s23  ;;  %1398 = vrot.lane.b32.xlu1 %v3325_v39, %s2469_s28 }
 0x4f9   :  { %1550 = vrot.lane.b32.xlu0 %v3323_v32, %s2464_s22 }
 0x500   :  { %1586 = vrot.lane.b32.xlu2 %v3341_v37, %s2463_s21  ;;  %1368 = vrot.lane.b32.xlu1 %v3325_v39, %s2470_s29 }
 0x501   :  { %1520 = vrot.lane.b32.xlu0 %v3323_v32, %s2465_s23 }
 0x508   :  { %1556 = vrot.lane.b32.xlu2 %v3341_v37, %s2464_s22  ;;  %1584 = vrot.lane.b32.xlu1 %v3349_v51, %s2463_s21 }
 0x509   :  { %1490 = vrot.lane.b32.xlu0 %v3323_v32, %s2466_s24 }
 0x510   :  { %1526 = vrot.lane.b32.xlu2 %v3341_v37, %s2465_s23  ;;  %1554 = vrot.lane.b32.xlu1 %v3349_v51, %s2464_s22 }
 0x511   :  { %1582 = vrot.lane.b32.xlu0 %v3325_v39, %s2463_s21 }
 0x518   :  { %1496 = vrot.lane.b32.xlu2 %v3341_v37, %s2466_s24  ;;  %1524 = vrot.lane.b32.xlu1 %v3349_v51, %s2465_s23 }
 0x519   :  { %1428 = vrot.lane.b32.xlu0 %v3325_v39, %s2468_s0 }
 0x520   :  { %1432 = vrot.lane.b32.xlu2 %v3341_v37, %s2468_s0  ;;  %1494 = vrot.lane.b32.xlu1 %v3349_v51, %s2466_s24 }
 0x521   :  { %1492 = vrot.lane.b32.xlu0 %v3325_v39, %s2466_s24 }
 0x528   :  { %1400 = vrot.lane.b32.xlu2 %v3349_v51, %s2469_s28  ;;  %1462 = vrot.lane.b32.xlu1 %v3341_v37, %s2467_s27 }
 0x529   :  { %1460 = vrot.lane.b32.xlu0 %v3349_v51, %s2467_s27 }
 0x530   :  { %1370 = vrot.lane.b32.xlu2 %v3349_v51, %s2470_s29  ;;  %1430 = vrot.lane.b32.xlu1 %v3349_v51, %s2468_s0 }
 0x531   :  { %1402 = vrot.lane.b32.xlu0 %v3341_v37, %s2469_s28 }
 0x538   :  { %1426 = vrot.lane.b32.xlu2 %v3323_v32, %s2468_s0  ;;  %1456 = vrot.lane.b32.xlu1 %v3323_v32, %s2467_s27 }
 0x539   :  { %1372 = vrot.lane.b32.xlu0 %v3341_v37, %s2470_s29 }
 0x540   :  { %1671 = vperm.xlu2 %2460, %v1617_v40   ;;  %1366 = vrot.lane.b32.xlu1 %v3323_v32, %s2470_s29 }
 0x541   :  { %1396 = vrot.lane.b32.xlu0 %v3323_v32, %s2469_s28 }
 0x548   :  { %1656 = vperm.xlu2 %2460, %v1614_v20   ;;  %1661 = vperm.xlu1 %2462, %v1615_v10  }
 0x549   :  { %1666 = vperm.xlu0 %2461, %v1616_v24  }
 0x54a   :  { %v3409_v52 = vpop.permute.xlu2 %1458 }
 0x552   :  { %v3411_v2 = vpop.permute.xlu2 %1522 }
 0x55a   :  { %v1587_v18 = vpop.permute.xlu2 %1586 }
 0x562   :  { %v1553_v43 = vpop.permute.xlu1 %1552  ;;  %v1557_v26 = vpop.permute.xlu2 %1556 }
 0x563   :  { %v1581_v33 = vpop.permute.xlu0 %1580 }
 0x564   :  { %v1591_v16 = vsel %vm258_vm0, %v1587_v18, %v1581_v33 }
 0x565   :  { %v1605_v50 = vmul.f32 %v1597_v59, %v1591_v16  ;;  %v1506_v59 = vperm.slane %v3435_v61, 2  ;;  %v1504_v16 = vperm.slane %v3435_v61, 0 }
 0x567   :  { %1780 = vmatpush.msrb.mxu3 %v1605_v50 }
 0x56a   :  { %v3421_v29 = vpop.permute.xlu1 %1398  ;;  %v1527_v8 = vpop.permute.xlu2 %1526 }
 0x56b   :  { %v1551_v46 = vpop.permute.xlu0 %1550 }
 0x56c   :  { %v1561_v48 = vsel %vm226_vm1, %v1557_v26, %v1551_v46  ;;  %v1560_v21 = vsel %vm226_vm1, %v1551_v46, %v1553_v43 }
 0x56d   :  { %v1575_v57 = vmul.f32 %v1567_v27, %v1561_v48  ;;  %v1572_v28 = vmul.f32 %v1564_v12, %v1560_v21 }
 0x56f   :  { %1781 = vmatpush.msrb.mxu3 %v1575_v57 }
 0x572   :  { %v3428_v31 = vpop.permute.xlu1 %1368  ;;  %v1497_v35 = vpop.permute.xlu2 %1496 }
 0x573   :  { %v1521_v55 = vpop.permute.xlu0 %1520 }
 0x574   :  { %v1531_v56 = vsel %vm194_vm2, %v1527_v8, %v1521_v55  ;;  %v1530_v41 = vsel %vm194_vm2, %v1521_v55, %v3411_v2 }
 0x575   :  { %v1545_v47 = vmul.f32 %v1537_v30, %v1531_v56  ;;  %v1473_v30 = vperm.slane %v2419_v44, 3 }
 0x577   :  { %1782 = vmatpush.msrb.mxu3 %v1545_v47 }
 0x57a   :  { %v1585_v53 = vpop.permute.xlu1 %1584  ;;  %v3456_v38 = vpop.permute.xlu2 %1432 }
 0x57b   :  { %v1588_v45 = vsel %vm258_vm0, %v1585_v53, %v1587_v18  ;;  %v1491_v49 = vpop.permute.xlu0 %1490 }
 0x57c   :  { %v1604_v60 = vmul.f32 %v1596_v3, %v1588_v45  ;;  %v1501_v62 = vsel %vm162_vm3, %v1497_v35, %v1491_v49  ;;  %v3496_v45 = vld [vmem:[%s4076_s1] ss:$8 sm:$0xf] }
 0x57d   :  { %v1515_v63 = vmul.f32 %v1507_v54, %v1501_v62 }
 0x57e   :  { %1751 = vmatpush.msrb.mxu2 %v1604_v60 }
 0x57f   :  { %1783 = vmatpush.msrb.mxu3 %v1515_v63 }
 0x581   :  { %1784 = vmatpush.msrb.mxu3 %v3341_v37  ;;  %v1542_v37 = vmul.f32 %v1534_v25, %v1530_v41  ;;  %v1610_v25 = vld [vmem:[%s4078_s2 + $0x28] sm:$0xff] }
 0x582   :  { %v1555_v5 = vpop.permute.xlu1 %1554 }
 0x583   :  { %v1558_v9 = vsel %vm226_vm1, %v1555_v5, %v1557_v26  ;;  %v1583_v11 = vpop.permute.xlu0 %1582  ;;  %v1559_v13 = vsel %vm226_vm1, %v1553_v43, %v1555_v5  ;;  %v1505_v43 = vperm.slane %v3435_v61, 1  ;;  %v1401_v26 = vpop.permute.xlu2 %1400 }
 0x584   :  { %v1574_v15 = vmul.f32 %v1566_v58, %v1558_v9  ;;  %v1589_v19 = vsel %vm258_vm0, %v1583_v11, %v1585_v53  ;;  %v1590_v22 = vsel %vm258_vm0, %v1581_v33, %v1583_v11  ;;  %v1573_v23 = vmul.f32 %v1565_v6, %v1559_v13 }
 0x585   :  { %v1603_v14 = vmul.f32 %v1595_v1, %v1589_v19  ;;  %v1602_v34 = vmul.f32 %v1594_v4, %v1590_v22  ;;  %v1405_v63 = vsel %vm62_vm6, %v3421_v29, %v1401_v26  ;;  %v1382_v4 = vperm.slane %v3496_v45, 2 }
 0x586   :  { %1752 = vmatpush.msrb.mxu2 %v1574_v15  ;;  %v1470_v22 = vperm.slane %v2419_v44, 0 }
 0x587   :  { %1722 = vmatpush.msrb.mxu1 %v1603_v14  ;;  %1693 = vmatpush.msrb.mxu0 %v1602_v34  ;;  %v1471_v14 = vperm.slane %v2419_v44, 1  ;;  %v1383_v34 = vperm.slane %v3496_v45, 3 }
 0x589   :  { %1723 = vmatpush.msrb.mxu1 %v1573_v23  ;;  %1694 = vmatpush.msrb.mxu0 %v1572_v28 }
 0x58a   :  { %v1525_v40 = vpop.permute.xlu1 %1524 }
 0x58b   :  { %v1528_v20 = vsel %vm194_vm2, %v1525_v40, %v1527_v8  ;;  %v1529_v10 = vsel %vm194_vm2, %v3411_v2, %v1525_v40  ;;  %v3463_v24 = vpop.permute.xlu0 %1428  ;;  %1695 = vmatpush.msrb.mxu0 %v1542_v37  ;;  %v1472_v8 = vperm.slane %v2419_v44, 2  ;;  %v1371_v53 = vpop.permute.xlu2 %1370 }
 0x58c   :  { %v1543_v18 = vmul.f32 %v1535_v17, %v1529_v10  ;;  %v1544_v42 = vmul.f32 %v1536_v0, %v1528_v20  ;;  %v1375_v12 = vsel %vm31_vm7, %v3428_v31, %v1371_v53 }
 0x58d   :  { %v1390_v19 = vmul.f32 %v1382_v4, %v1375_v12 }
 0x58e   :  { %1724 = vmatpush.msrb.mxu1 %v1543_v18  ;;  %1753 = vmatpush.msrb.mxu2 %v1544_v42 }
 0x592   :  { %v1495_v33 = vpop.permute.xlu1 %1494 }
 0x593   :  { %v1498_v50 = vsel %vm162_vm3, %v1495_v33, %v1497_v35  ;;  %v1493_v36 = vpop.permute.xlu0 %1492  ;;  %v1427_v21 = vpop.permute.xlu2 %1426 }
 0x594   :  { %v1514_v2 = vmul.f32 %v1506_v59, %v1498_v50  ;;  %v1499_v27 = vsel %vm162_vm3, %v1493_v36, %v1495_v33  ;;  %v1500_v46 = vsel %vm162_vm3, %v1491_v49, %v1493_v36  ;;  %v1437_v17 = vsel %vm94_vm5, %v3456_v38, %v1427_v21 }
 0x595   :  { %v1513_v48 = vmul.f32 %v1505_v43, %v1499_v27  ;;  %v1512_v57 = vmul.f32 %v1504_v16, %v1500_v46  ;;  %v1436_v20 = vsel %vm94_vm5, %v1427_v21, %v3463_v24  ;;  %v1611_v43 = vld [vmem:[%s4078_s2 + $0x30] sm:$0xff]  ;;  %v1380_v50 = vperm.slane %v3496_v45, 0 }
 0x596   :  { %1754 = vmatpush.msrb.mxu2 %v1514_v2  ;;  %v1381_v36 = vperm.slane %v3496_v45, 1 }
 0x597   :  { %1725 = vmatpush.msrb.mxu1 %v1513_v48  ;;  %1696 = vmatpush.msrb.mxu0 %v1512_v57 }
 0x598   :  { %1755 = vmatpush.msrb.mxu2 %v3349_v51 }
 0x599   :  { %1726 = vmatpush.msrb.mxu1 %v3325_v39  ;;  %1697 = vmatpush.msrb.mxu0 %v3323_v32  ;;  %v3488_v39 = vld [vmem:[%s4076_s1 + $0x1] ss:$8 sm:$0xf]  ;;  %v2418_v32 = vld [vmem:[%s4076_s1 + $0x2] ss:$8 sm:$0xf] }
 0x59a   :  { %v1463_v55 = vpop.permute.xlu1 %1462  ;;  %v1442_v51 = vperm.slane %v2418_v32, 2  ;;  %v1443_v35 = vperm.slane %v2418_v32, 3  ;;  %v1412_v49 = vperm.slane %v3488_v39, 2  ;;  %v1413_v62 = vperm.slane %v3488_v39, 3 }
 0x59b   :  { %v1461_v56 = vpop.permute.xlu0 %1460  ;;  %v1440_v41 = vperm.slane %v2418_v32, 0  ;;  %v1441_v28 = vperm.slane %v2418_v32, 1  ;;  %v1411_v33 = vperm.slane %v3488_v39, 1 }
 0x59c   :  { %v1464_v47 = vsel %vm126_vm4, %v1461_v56, %v1463_v55  ;;  %v1465_v61 = vsel %vm126_vm4, %v3409_v52, %v1461_v56  ;;  %v1420_v13 = vmul.f32 %v1412_v49, %v1405_v63 }
 0x59d   :  { %v1480_v3 = vmul.f32 %v1472_v8, %v1465_v61  ;;  %v1481_v54 = vmul.f32 %v1473_v30, %v1464_v47  ;;  %v1448_v59 = vmul.f32 %v1440_v41, %v1437_v17 }
 0x59f   :  { %1756 = vmatpush.msrb.mxu2 %v1480_v3  ;;  %1785 = vmatpush.msrb.mxu3 %v1481_v54 }
 0x5a2   :  { %v1431_v60 = vpop.permute.xlu1 %1430 }
 0x5a3   :  { %v1434_v58 = vsel %vm94_vm5, %v1431_v60, %v3456_v38  ;;  %v1435_v1 = vsel %vm94_vm5, %v3463_v24, %v1431_v60  ;;  %v1403_v5 = vpop.permute.xlu0 %1402  ;;  %v1410_v24 = vperm.slane %v3488_v39, 0 }
 0x5a4   :  { %v1450_v6 = vmul.f32 %v1442_v51, %v1435_v1  ;;  %v1451_v9 = vmul.f32 %v1443_v35, %v1434_v58  ;;  %v1404_v11 = vsel %vm62_vm6, %v1401_v26, %v1403_v5 }
 0x5a5   :  { %v1421_v15 = vmul.f32 %v1413_v62, %v1404_v11 }
 0x5a6   :  { %1757 = vmatpush.msrb.mxu2 %v1450_v6  ;;  %1786 = vmatpush.msrb.mxu3 %v1451_v9 }
 0x5a8   :  { %1758 = vmatpush.msrb.mxu2 %v1420_v13  ;;  %1787 = vmatpush.msrb.mxu3 %v1421_v15 }
 0x5aa   :  { %v1457_v23 = vpop.permute.xlu1 %1456  ;;  %1759 = vmatpush.msrb.mxu2 %v1390_v19 }
 0x5ab   :  { %v1466_v0 = vsel %vm126_vm4, %v1457_v23, %v3409_v52  ;;  %v1467_v37 = vsel %vm126_vm4, %v1463_v55, %v1457_v23  ;;  %v1373_v40 = vpop.permute.xlu0 %1372  ;;  %2432 = vmatmul.msk.f32.vlgmr.msrb.gmra.mxu2 %vm325_vm8, %v1610_v25  ;;  %v1449_v52 = vmul.f32 %v1441_v28, %v1436_v20  ;;  %v1672_v55 = vpop.permute.xlu2 %1671 }
 0x5ac   :  { %v1478_v10 = vmul.f32 %v1470_v22, %v1467_v37  ;;  %v1479_v18 = vmul.f32 %v1471_v14, %v1466_v0  ;;  %v1374_v42 = vsel %vm31_vm7, %v1371_v53, %v1373_v40 }
 0x5ad   :  { %v1391_v38 = vmul.f32 %v1383_v34, %v1374_v42 }
 0x5ae   :  { %1698 = vmatpush.msrb.mxu0 %v1478_v10  ;;  %1727 = vmatpush.msrb.mxu1 %v1479_v18 }
 0x5af   :  { %1788 = vmatpush.msrb.mxu3 %v1391_v38 }
 0x5b0   :  { %2436 = vmatmul.msk.f32.vlgmr.msrb.gmra.mxu3 %vm325_vm8, %v1610_v25  ;;  %1699 = vmatpush.msrb.mxu0 %v1448_v59 }
 0x5b1   :  { %1728 = vmatpush.msrb.mxu1 %v1449_v52 }
 0x5b2   :  { %v1367_v16 = vpop.permute.xlu1 %1366 }
 0x5b3   :  { %v1397_v26 = vpop.permute.xlu0 %1396  ;;  %2433 = vmatmul.msk.f32.gmra.mxu2 %vm325_vm8, %v1611_v43  ;;  %v1376_v2 = vsel %vm31_vm7, %v1367_v16, %v3428_v31  ;;  %v1377_v27 = vsel %vm31_vm7, %v1373_v40, %v1367_v16  ;;  %v1612_v31 = vld [vmem:[%s4078_s2 + $0x38] sm:$0xff]  ;;  %v3571_v61 = vpop.permute.xlu2 %1656 }
 0x5b4   :  { %v1406_v46 = vsel %vm62_vm6, %v1397_v26, %v3421_v29  ;;  %v1407_v48 = vsel %vm62_vm6, %v1403_v5, %v1397_v26  ;;  %v1388_v8 = vmul.f32 %v1380_v50, %v1377_v27  ;;  %v1389_v30 = vmul.f32 %v1381_v36, %v1376_v2  ;;  %v1613_v29 = vld [vmem:[%s4078_s2 + $0x40] sm:$0xff] }
 0x5b5   :  { %v1418_v57 = vmul.f32 %v1410_v24, %v1407_v48  ;;  %v1419_v44 = vmul.f32 %v1411_v33, %v1406_v46 }
 0x5b7   :  { %1700 = vmatpush.msrb.mxu0 %v1418_v57  ;;  %1729 = vmatpush.msrb.mxu1 %v1419_v44 }
 0x5b8   :  { %2437 = vmatmul.msk.f32.gmra.mxu3 %vm325_vm8, %v1611_v43 }
 0x5b9   :  { %1701 = vmatpush.msrb.mxu0 %v1388_v8  ;;  %1730 = vmatpush.msrb.mxu1 %v1389_v30  ;;  %v2196_v8 = vld [vmem:[%s4077_s3 + $0x48] sm:$0xff] }
 0x5ba   :  { %2424 = vmatmul.msk.f32.vlgmr.msrb.gmra.mxu0 %vm325_vm8, %v1610_v25  ;;  %2428 = vmatmul.msk.f32.vlgmr.msrb.gmra.mxu1 %vm325_vm8, %v1610_v25  ;;  %v1662_v35 = vpop.permute.xlu1 %1661 }
 0x5bb   :  { %2434 = vmatmul.msk.f32.gmra.mxu2 %vm325_vm8, %v1612_v31  ;;  %v1667_v1 = vpop.permute.xlu0 %1666 }
 0x5c0   :  { %2438 = vmatmul.msk.f32.gmra.mxu3 %vm325_vm8, %v1612_v31 }
 0x5c2   :  { %2425 = vmatmul.msk.f32.gmra.mxu0 %vm325_vm8, %v1611_v43  ;;  %2429 = vmatmul.msk.f32.gmra.mxu1 %vm325_vm8, %v1611_v43 }
 0x5c3   :  { %2435 = vmatmul.msk.f32.gmra.mxu2 %vm325_vm8, %v1613_v29 }
 0x5c8   :  { %2439 = vmatmul.msk.f32.gmra.mxu3 %vm325_vm8, %v1613_v29 }
 0x5ca   :  { %2426 = vmatmul.msk.f32.gmra.mxu0 %vm325_vm8, %v1612_v31  ;;  %2430 = vmatmul.msk.f32.gmra.mxu1 %vm325_vm8, %v1612_v31 }
 0x5d2   :  { %2427 = vmatmul.msk.f32.gmra.mxu0 %vm325_vm8, %v1613_v29  ;;  %2431 = vmatmul.msk.f32.gmra.mxu1 %vm325_vm8, %v1613_v29 }
 0x62e   :  { %v1761_v56 = vpop.f32.mrf.mxu2 }
 0x62f   :  { %v1762_v34 = vadd.f32 %v1761_v56, %v3571_v61 }
 0x631   :  { %v3603_v37 = vmax.f32 %v1762_v34, 0.0 }
 0x633   :  { %v1790_v47 = vpop.f32.mrf.mxu3  ;;  %4091 = vst [vmem:[#allocation6_spill] sm:$0xff] %v3603_v37 }
 0x634   :  { %v1791_v22 = vadd.f32 %v1790_v47, %v3571_v61 }
 0x636   :  { %v1764_v3 = vpop.f32.mrf.mxu2  ;;  %v3601_v0 = vmax.f32 %v1791_v22, 0.0 }
 0x637   :  { %v1703_v54 = vpop.f32.mrf.mxu0  ;;  %v3573_v53 = vpop.f32.mrf.mxu1  ;;  %v1765_v10 = vadd.f32 %v1764_v3, %v1662_v35 }
 0x638   :  { %v1704_v39 = vadd.f32 %v1703_v54, %v3571_v61  ;;  %4090 = vst [vmem:[#allocation5_spill] sm:$0xff] %v3601_v0  ;;  %v1733_v26 = vadd.f32 %v3573_v53, %v3571_v61 }
 0x639   :  { %v3623_v42 = vmax.f32 %v1765_v10, 0.0 }
 0x63a   :  { %v3576_v32 = vmax.f32 %v1704_v39, 0.0  ;;  %v3680_v2 = vmax.f32 %v1733_v26, 0.0 }
 0x63b   :  { %v1793_v51 = vpop.f32.mrf.mxu3  ;;  %4093 = vst [vmem:[#allocation8_spill] sm:$0xff] %v3623_v42 }
 0x63c   :  { %4088 = vst [vmem:[#allocation3_spill] sm:$0xff] %v3576_v32  ;;  %1886 = vrot.lane.b32.xlu0 %v3576_v32, %s2464_s22  ;;  %1916 = vrot.lane.b32.xlu2 %v3576_v32, %s2463_s21  ;;  %v1794_v18 = vadd.f32 %v1793_v51, %v1662_v35 }
 0x63d   :  { %4095 = vst [vmem:[#allocation10_spill] sm:$0xff] %v3680_v2 }
 0x63e   :  { %v1767_v45 = vpop.f32.mrf.mxu2  ;;  %v3625_v38 = vmax.f32 %v1794_v18, 0.0 }
 0x63f   :  { %v1706_v49 = vpop.f32.mrf.mxu0  ;;  %v1735_v60 = vpop.f32.mrf.mxu1  ;;  %v1768_v43 = vadd.f32 %v1767_v45, %v1667_v1 }
 0x640   :  { %v1707_v62 = vadd.f32 %v1706_v49, %v1662_v35  ;;  %v1736_v40 = vadd.f32 %v1735_v60, %v1662_v35  ;;  %4094 = vst [vmem:[#allocation9_spill] sm:$0xff] %v3625_v38 }
 0x641   :  { %v3640_v24 = vmax.f32 %v1768_v43, 0.0 }
 0x642   :  { %v3582_v63 = vmax.f32 %v1707_v62, 0.0  ;;  %v3611_v20 = vmax.f32 %v1736_v40, 0.0 }
 0x643   :  { %v1796_v58 = vpop.f32.mrf.mxu3 }
 0x644   :  { %4089 = vst [vmem:[#allocation4_spill] sm:$0xff] %v3582_v63  ;;  %1946 = vrot.lane.b32.xlu1 %v3582_v63, %s2465_s23  ;;  %1976 = vrot.lane.b32.xlu0 %v3582_v63, %s2464_s22  ;;  %v1797_v33 = vadd.f32 %v1796_v58, %v1667_v1 }
 0x645   :  { %4092 = vst [vmem:[#allocation7_spill] sm:$0xff] %v3611_v20 }
 0x646   :  { %v1770_v5 = vpop.f32.mrf.mxu2  ;;  %v3648_v16 = vmax.f32 %v1797_v33, 0.0 }
 0x647   :  { %v1709_v4 = vpop.f32.mrf.mxu0  ;;  %v1738_v6 = vpop.f32.mrf.mxu1  ;;  %v1771_v9 = vadd.f32 %v1770_v5, %v1672_v55 }
 0x648   :  { %v1710_v11 = vadd.f32 %v1709_v4, %v1667_v1  ;;  %v1739_v59 = vadd.f32 %v1738_v6, %v1667_v1 }
 0x649   :  { %v3588_v12 = vmax.f32 %v1771_v9, 0.0 }
 0x64a   :  { %v3590_v13 = vmax.f32 %v1710_v11, 0.0  ;;  %v3632_v52 = vmax.f32 %v1739_v59, 0.0 }
 0x64b   :  { %v1799_v15 = vpop.f32.mrf.mxu3  ;;  %2318 = vmatpush.msra.mxu2 %v3588_v12 }
 0x64c   :  { %v1800_v19 = vadd.f32 %v1799_v15, %v1672_v55  ;;  %2006 = vrot.lane.b32.xlu2 %v3590_v13, %s2469_s28  ;;  %2036 = vrot.lane.b32.xlu1 %v3590_v13, %s2468_s0  ;;  %v3776_v15 = vld [vmem:[%s4076_s1 + $0x4] ss:$8 sm:$0xf] }
 0x64d   :  { %2130 = vrot.lane.b32.xlu0 %v3590_v13, %s2466_s24 }
 0x64e   :  { %v1817_v21 = vmax.f32 %v1800_v19, 0.0 }
 0x64f   :  { %v1712_v14 = vpop.f32.mrf.mxu0  ;;  %v1741_v25 = vpop.f32.mrf.mxu1 }
 0x650   :  { %v1713_v41 = vadd.f32 %v1712_v14, %v1672_v55  ;;  %v1742_v23 = vadd.f32 %v1741_v25, %v1672_v55  ;;  %2341 = vmatpush.msra.mxu3 %v1817_v21  ;;  %v2197_v55 = vld [vmem:[%s4077_s3 + $0x50] sm:$0xff] }
 0x652   :  { %v1814_v28 = vmax.f32 %v1713_v41, 0.0  ;;  %v1815_v17 = vmax.f32 %v1742_v23, 0.0 }
 0x654   :  { %2272 = vmatpush.msra.mxu0 %v1814_v28  ;;  %2295 = vmatpush.msra.mxu1 %v1815_v17 }
 0x655   :  { %1892 = vrot.lane.b32.xlu2 %v3601_v0, %s2464_s22  ;;  %1922 = vrot.lane.b32.xlu1 %v3601_v0, %s2463_s21 }
 0x656   :  { %1920 = vrot.lane.b32.xlu0 %v3603_v37, %s2463_s21 }
 0x65d   :  { %1854 = vrot.lane.b32.xlu2 %v3611_v20, %s2467_s27  ;;  %1890 = vrot.lane.b32.xlu1 %v3603_v37, %s2464_s22 }
 0x65e   :  { %1978 = vrot.lane.b32.xlu0 %v3611_v20, %s2464_s22 }
 0x665   :  { %2096 = vrot.lane.b32.xlu2 %v1814_v28, %s2469_s28  ;;  %1948 = vrot.lane.b32.xlu1 %v3611_v20, %s2465_s23  ;;  %v2146_v20 = vperm.slane %v3776_v15, 2 }
 0x666   :  { %2160 = vrot.lane.b32.xlu0 %v1814_v28, %s2467_s27 }
 0x66d   :  { %1982 = vrot.lane.b32.xlu2 %v3625_v38, %s2464_s22  ;;  %1980 = vrot.lane.b32.xlu1 %v3623_v42, %s2464_s22 }
 0x66e   :  { %2066 = vrot.lane.b32.xlu0 %v1814_v28, %s2470_s29  ;;  %v3793_v28 = vld [vmem:[%s4076_s1 + $0x1] ss:$8 sm:$0xf] }
 0x66f   :  { %v2110_v40 = vperm.slane %v3793_v28, 0 }
 0x675   :  { %1950 = vrot.lane.b32.xlu2 %v3623_v42, %s2465_s23  ;;  %2132 = vrot.lane.b32.xlu1 %v3632_v52, %s2466_s24 }
 0x676   :  { %1952 = vrot.lane.b32.xlu0 %v3625_v38, %s2465_s23 }
 0x67d   :  { %2038 = vrot.lane.b32.xlu2 %v3632_v52, %s2468_s0  ;;  %2134 = vrot.lane.b32.xlu1 %v3640_v24, %s2466_s24 }
 0x67e   :  { %2040 = vrot.lane.b32.xlu0 %v3640_v24, %s2468_s0 }
 0x685   :  { %2008 = vrot.lane.b32.xlu2 %v3632_v52, %s2469_s28  ;;  %2042 = vrot.lane.b32.xlu1 %v3648_v16, %s2468_s0 }
 0x686   :  { %2010 = vrot.lane.b32.xlu0 %v3640_v24, %s2469_s28 }
 0x68d   :  { %2136 = vrot.lane.b32.xlu2 %v3648_v16, %s2466_s24  ;;  %2012 = vrot.lane.b32.xlu1 %v3648_v16, %s2469_s28 }
 0x68e   :  { %2162 = vrot.lane.b32.xlu0 %v1815_v17, %s2467_s27 }
 0x695   :  { %2166 = vrot.lane.b32.xlu2 %v1817_v21, %s2467_s27  ;;  %2068 = vrot.lane.b32.xlu1 %v1815_v17, %s2470_s29 }
 0x696   :  { %2098 = vrot.lane.b32.xlu0 %v1815_v17, %s2469_s28  ;;  %v3667_v50 = vpop.permute.xlu2 %1916 }
 0x69d   :  { %2102 = vrot.lane.b32.xlu2 %v1817_v21, %s2469_s28  ;;  %2164 = vrot.lane.b32.xlu1 %v3588_v12, %s2467_s27 }
 0x69e   :  { %2072 = vrot.lane.b32.xlu0 %v1817_v21, %s2470_s29  ;;  %v2144_v21 = vperm.slane %v3776_v15, 0 }
 0x6a5   :  { %2070 = vrot.lane.b32.xlu2 %v3588_v12, %s2470_s29  ;;  %2100 = vrot.lane.b32.xlu1 %v3588_v12, %s2469_s28  ;;  %v3771_v12 = vld [vmem:[%s4076_s1 + $0x3] ss:$8 sm:$0xf] }
 0x6a6   :  { %1856 = vrot.lane.b32.xlu0 %v3623_v42, %s2467_s27  ;;  %v3676_v36 = vpop.permute.xlu2 %2006  ;;  %v2174_v19 = vperm.slane %v3771_v12, 0  ;;  %v2175_v26 = vperm.slane %v3771_v12, 1 }
 0x6ad   :  { %1918 = vrot.lane.b32.xlu2 %v3680_v2, %s2463_s21  ;;  %1858 = vrot.lane.b32.xlu1 %v3625_v38, %s2467_s27 }
 0x6ae   :  { %1822 = vrot.lane.b32.xlu0 %v3576_v32, %s2466_s24  ;;  %v3688_v27 = vpop.permute.xlu0 %1886 }
 0x6af   :  { %v3690_v46 = vpop.permute.xlu2 %1892 }
 0x6b5   :  { %1828 = vrot.lane.b32.xlu2 %v3601_v0, %s2466_s24  ;;  %1826 = vrot.lane.b32.xlu1 %v3603_v37, %s2466_s24  ;;  %v2147_v37 = vperm.slane %v3776_v15, 3 }
 0x6b6   :  { %1888 = vrot.lane.b32.xlu0 %v3680_v2, %s2464_s22  ;;  %v3698_v48 = vpop.permute.xlu1 %1946  ;;  %v1977_v57 = vpop.permute.xlu0 %1976 }
 0x6b7   :  { %v3700_v44 = vpop.permute.xlu2 %1854 }
 0x6bd   :  { %1824 = vrot.lane.b32.xlu2 %v3680_v2, %s2466_s24  ;;  %1852 = vrot.lane.b32.xlu1 %v3582_v63, %s2467_s27  ;;  %v3865_v2 = vld [vmem:[%s4076_s1 + $0x6] ss:$8 sm:$0xf] }
 0x6be   :  { %2264 = vperm.xlu0 %2461, %v2196_v8   ;;  %v3709_v30 = vpop.permute.xlu1 %2036  ;;  %v2145_v8 = vperm.slane %v3776_v15, 1  ;;  %v1991_v0 = vperm.slane %v3865_v2, 1 }
 0x6bf   :  { %v3711_v31 = vpop.permute.xlu2 %2096  ;;  %v3713_v29 = vpop.permute.xlu0 %2130 }
 0x6c5   :  { %2269 = vperm.xlu1 %2462, %v2197_v55  }
 0x6c7   :  { %v1983_v56 = vpop.permute.xlu2 %1982  ;;  %v3718_v47 = vpop.permute.xlu1 %1922 }
 0x6c8   :  { %v3722_v61 = vsel %vm226_vm1, %v1983_v56, %v1977_v57  ;;  %v3724_v3 = vpop.permute.xlu0 %1920 }
 0x6c9   :  { %v3730_v54 = vsel %vm258_vm0, %v3724_v3, %v3718_v47 }
 0x6cf   :  { %v3732_v53 = vpop.permute.xlu2 %1950  ;;  %v3734_v39 = vpop.permute.xlu1 %1890 }
 0x6d0   :  { %v3736_v51 = vpop.permute.xlu0 %1978 }
 0x6d1   :  { %v3741_v35 = vsel %vm226_vm1, %v1977_v57, %v3736_v51 }
 0x6d7   :  { %v3743_v45 = vpop.permute.xlu2 %2038  ;;  %v3745_v49 = vpop.permute.xlu1 %1948 }
 0x6d8   :  { %v3751_v60 = vsel %vm194_vm2, %v3698_v48, %v3745_v49  ;;  %v2161_v62 = vpop.permute.xlu0 %2160 }
 0x6df   :  { %v3753_v58 = vpop.permute.xlu2 %2008  ;;  %v3755_v1 = vpop.permute.xlu1 %1980 }
 0x6e0   :  { %v3760_v5 = vsel %vm226_vm1, %v3755_v1, %v1983_v56  ;;  %v3762_v4 = vpop.permute.xlu0 %2066 }
 0x6e7   :  { %v3764_v6 = vpop.permute.xlu2 %2136  ;;  %v2133_v9 = vpop.permute.xlu1 %2132 }
 0x6e8   :  { %v3766_v11 = vpop.permute.xlu0 %1952  ;;  %v2140_v25 = vsel %vm162_vm3, %v3713_v29, %v2133_v9 }
 0x6e9   :  { %v2152_v17 = vmul.f32 %v2144_v21, %v2140_v25  ;;  %v3818_v25 = vld [vmem:[%s4076_s1] ss:$8 sm:$0xf] }
 0x6ea   :  { %v2080_v63 = vperm.slane %v3818_v25, 0 }
 0x6ef   :  { %v3780_v22 = vpop.permute.xlu2 %2166  ;;  %v2135_v14 = vpop.permute.xlu1 %2134 }
 0x6f0   :  { %v2171_v34 = vsel %vm126_vm4, %v3780_v22, %v2161_v62  ;;  %v3788_v41 = vpop.permute.xlu0 %2040  ;;  %v2139_v56 = vsel %vm162_vm3, %v2133_v9, %v2135_v14  ;;  %v3828_v9 = vld [vmem:[%s4076_s1 + $0x2] ss:$8 sm:$0xf]  ;;  %v2138_v15 = vsel %vm162_vm3, %v2135_v14, %v3764_v6  ;;  %v1990_v14 = vperm.slane %v3865_v2, 0 }
 0x6f1   :  { %v2182_v23 = vmul.f32 %v2174_v19, %v2171_v34  ;;  %v2153_v21 = vmul.f32 %v2145_v8, %v2139_v56 }
 0x6f3   :  { %2273 = vmatpush.msra.mxu0 %v2182_v23 }
 0x6f5   :  { %2274 = vmatpush.msra.mxu0 %v2152_v17  ;;  %v2111_v17 = vperm.slane %v3793_v28, 1 }
 0x6f7   :  { %v3796_v10 = vpop.permute.xlu2 %2102  ;;  %v3798_v18 = vpop.permute.xlu1 %2042  ;;  %2275 = vmatpush.msra.mxu0 %v3590_v13 }
 0x6f8   :  { %v2107_v59 = vsel %vm62_vm6, %v3796_v10, %v3711_v31  ;;  %v3805_v43 = vpop.permute.xlu0 %2010 }
 0x6f9   :  { %v2118_v33 = vmul.f32 %v2110_v40, %v2107_v59  ;;  %v2081_v59 = vperm.slane %v3818_v25, 1 }
 0x6fb   :  { %2276 = vmatpush.msra.mxu0 %v2118_v33  ;;  %v3842_v33 = vld [vmem:[%s4076_s1 + $0x5] ss:$8 sm:$0xf] }
 0x6ff   :  { %v3808_v57 = vpop.permute.xlu1 %2012  ;;  %v3820_v34 = vpop.permute.xlu2 %2070 }
 0x700   :  { %v2163_v55 = vpop.permute.xlu0 %2162 }
 0x701   :  { %v2170_v13 = vsel %vm126_vm4, %v2161_v62, %v2163_v55  ;;  %v3833_v62 = vld [vmem:[%s4076_s1 + $0x1] ss:$8 sm:$0xf] }
 0x702   :  { %v2183_v19 = vmul.f32 %v2175_v26, %v2170_v13  ;;  %v2021_v56 = vperm.slane %v3833_v62, 1 }
 0x704   :  { %2296 = vmatpush.msra.mxu1 %v2183_v19  ;;  %v2046_v19 = vsel %vm94_vm5, %v3709_v30, %v3743_v45 }
 0x706   :  { %2297 = vmatpush.msra.mxu1 %v2153_v21  ;;  %v2016_v21 = vsel %vm62_vm6, %v3676_v36, %v3753_v58 }
 0x707   :  { %v3822_v23 = vpop.permute.xlu1 %2068  ;;  %v2029_v42 = vmul.f32 %v2021_v56, %v2016_v21  ;;  %v1919_v56 = vpop.permute.xlu2 %1918 }
 0x708   :  { %2298 = vmatpush.msra.mxu1 %v3632_v52  ;;  %v3836_v40 = vpop.permute.xlu0 %2098  ;;  %v2076_v26 = vsel %vm31_vm7, %v3762_v4, %v3822_v23  ;;  %v2051_v52 = vperm.slane %v3828_v9, 1 }
 0x709   :  { %v2106_v8 = vsel %vm62_vm6, %v3711_v31, %v3836_v40  ;;  %v1961_v31 = vperm.slane %v3842_v33, 1  ;;  %v2089_v32 = vmul.f32 %v2081_v59, %v2076_v26  ;;  %v1985_v59 = vsel %vm226_vm1, %v3736_v51, %v3755_v1 }
 0x70a   :  { %v2119_v13 = vmul.f32 %v2111_v17, %v2106_v8  ;;  %v2176_v17 = vperm.slane %v3771_v12, 2  ;;  %v2177_v8 = vperm.slane %v3771_v12, 3  ;;  %v2059_v38 = vmul.f32 %v2051_v52, %v2046_v19 }
 0x70b   :  { %v2050_v26 = vperm.slane %v3828_v9, 0  ;;  %v2141_v12 = vsel %vm162_vm3, %v3764_v6, %v3713_v29 }
 0x70c   :  { %2299 = vmatpush.msra.mxu1 %v2119_v13 }
 0x70e   :  { %2300 = vmatpush.msra.mxu1 %v2089_v32  ;;  %v2047_v32 = vsel %vm94_vm5, %v3798_v18, %v3709_v30  ;;  %v1955_v30 = vsel %vm194_vm2, %v3745_v49, %v3732_v53  ;;  %v1925_v49 = vsel %vm258_vm0, %v1919_v56, %v3724_v3  ;;  %v2082_v3 = vperm.slane %v3818_v25, 2 }
 0x70f   :  { %v2165_v13 = vpop.permute.xlu1 %2164 }
 0x710   :  { %v2168_v52 = vsel %vm126_vm4, %v2165_v13, %v3780_v22  ;;  %v2169_v51 = vsel %vm126_vm4, %v2163_v55, %v2165_v13  ;;  %v2073_v1 = vpop.permute.xlu0 %2072  ;;  %2301 = vmatpush.msra.mxu1 %v2059_v38  ;;  %v3901_v22 = vld [vmem:[%s4076_s1 + $0x7] ss:$8 sm:$0xf]  ;;  %v2020_v55 = vperm.slane %v3833_v62, 0  ;;  %v1999_v38 = vmul.f32 %v1991_v0, %v1985_v59 }
 0x711   :  { %v2184_v19 = vmul.f32 %v2176_v17, %v2169_v51  ;;  %v2185_v29 = vmul.f32 %v2177_v8, %v2168_v52  ;;  %v2077_v6 = vsel %vm31_vm7, %v2073_v1, %v3762_v4  ;;  %v2154_v17 = vmul.f32 %v2146_v20, %v2138_v15 }
 0x712   :  { %v2088_v21 = vmul.f32 %v2080_v63, %v2077_v6  ;;  %v2017_v4 = vsel %vm62_vm6, %v3808_v57, %v3676_v36  ;;  %v1931_v8 = vperm.slane %v3901_v22, 1  ;;  %2302 = vmatpush.msra.mxu1 %v2029_v42  ;;  %v2155_v13 = vmul.f32 %v2147_v37, %v2141_v12 }
 0x713   :  { %2319 = vmatpush.msra.mxu2 %v2184_v19  ;;  %v2058_v52 = vmul.f32 %v2050_v26, %v2047_v32  ;;  %2342 = vmatpush.msra.mxu3 %v2185_v29  ;;  %v1969_v63 = vmul.f32 %v1961_v31, %v1955_v30  ;;  %v2112_v0 = vperm.slane %v3793_v28, 2  ;;  %v2113_v20 = vperm.slane %v3793_v28, 3 }
 0x714   :  { %2277 = vmatpush.msra.mxu0 %v2088_v21  ;;  %2303 = vmatpush.msra.mxu1 %v1999_v38  ;;  %v1998_v36 = vmul.f32 %v1990_v14, %v3741_v35  ;;  %v1960_v42 = vperm.slane %v3842_v33, 0  ;;  %v2052_v37 = vperm.slane %v3828_v9, 2  ;;  %v2028_v59 = vmul.f32 %v2020_v55, %v2017_v4 }
 0x715   :  { %2320 = vmatpush.msra.mxu2 %v2154_v17  ;;  %2343 = vmatpush.msra.mxu3 %v2155_v13  ;;  %v1939_v26 = vmul.f32 %v1931_v8, %v1925_v49  ;;  %v2075_v31 = vsel %vm31_vm7, %v3822_v23, %v3820_v34  ;;  %v2083_v12 = vperm.slane %v3818_v25, 3  ;;  %v1930_v35 = vperm.slane %v3901_v22, 0 }
 0x716   :  { %2278 = vmatpush.msra.mxu0 %v2058_v52  ;;  %2304 = vmatpush.msra.mxu1 %v1969_v63  ;;  %v2074_v15 = vsel %vm31_vm7, %v3820_v34, %v2073_v1  ;;  %v1926_v32 = vsel %vm258_vm0, %v3667_v50, %v1919_v56  ;;  %v2023_v56 = vperm.slane %v3833_v62, 3  ;;  %v2090_v19 = vmul.f32 %v2082_v3, %v2075_v31  ;;  %v1829_v63 = vpop.permute.xlu2 %1828 }
 0x717   :  { %v2101_v28 = vpop.permute.xlu1 %2100  ;;  %2321 = vmatpush.msra.mxu2 %v3640_v24  ;;  %2344 = vmatpush.msra.mxu3 %v3648_v16  ;;  %v2053_v24 = vperm.slane %v3828_v9, 3  ;;  %v2044_v16 = vsel %vm94_vm5, %v3788_v41, %v3798_v18  ;;  %v2022_v9 = vperm.slane %v3833_v62, 2  ;;  %v2091_v29 = vmul.f32 %v2083_v12, %v2074_v15 }
 0x718   :  { %v2104_v51 = vsel %vm62_vm6, %v2101_v28, %v3796_v10  ;;  %v2105_v23 = vsel %vm62_vm6, %v3836_v40, %v2101_v28  ;;  %2279 = vmatpush.msra.mxu0 %v2028_v59  ;;  %v3940_v25 = vpop.permute.xlu0 %1856  ;;  %2305 = vmatpush.msra.mxu1 %v1939_v26  ;;  %v1968_v10 = vmul.f32 %v1960_v42, %v3751_v60  ;;  %v1993_v18 = vperm.slane %v3865_v2, 3 }
 0x719   :  { %v2120_v34 = vmul.f32 %v2112_v0, %v2105_v23  ;;  %v2121_v1 = vmul.f32 %v2113_v20, %v2104_v51  ;;  %v2045_v40 = vsel %vm94_vm5, %v3743_v45, %v3788_v41  ;;  %v2015_v60 = vsel %vm62_vm6, %v3753_v58, %v3805_v43 }
 0x71a   :  { %2280 = vmatpush.msra.mxu0 %v1998_v36  ;;  %v2014_v45 = vsel %vm62_vm6, %v3805_v43, %v3808_v57  ;;  %v1938_v41 = vmul.f32 %v1930_v35, %v1926_v32  ;;  %v1992_v62 = vperm.slane %v3865_v2, 2  ;;  %v2060_v6 = vmul.f32 %v2052_v37, %v2045_v40 }
 0x71b   :  { %2322 = vmatpush.msra.mxu2 %v2120_v34  ;;  %2345 = vmatpush.msra.mxu3 %v2121_v1  ;;  %v2061_v14 = vmul.f32 %v2053_v24, %v2044_v16  ;;  %v1962_v30 = vperm.slane %v3842_v33, 2  ;;  %v1963_v58 = vperm.slane %v3842_v33, 3  ;;  %v2030_v55 = vmul.f32 %v2022_v9, %v2015_v60  ;;  %v2442_v33 = vld [vmem:[%s4076_s1 + $0x6] ss:$8 sm:$0xf] }
 0x71c   :  { %2281 = vmatpush.msra.mxu0 %v1968_v10  ;;  %v2031_v21 = vmul.f32 %v2023_v56, %v2014_v45  ;;  %v1954_v2 = vsel %vm194_vm2, %v3732_v53, %v3766_v11  ;;  %v1957_v43 = vsel %vm194_vm2, %v3766_v11, %v3698_v48  ;;  %v2001_v17 = vmul.f32 %v1993_v18, %v3722_v61  ;;  %v4096_v34 = vld [vmem:[#allocation8_spill] sm:$0xff]  ;;  %v4097_v10 = vld [vmem:[#allocation9_spill] sm:$0xff]  ;;  %v4099_v9 = vld [vmem:[#allocation7_spill] sm:$0xff] }
 0x71d   :  { %2323 = vmatpush.msra.mxu2 %v2090_v19  ;;  %2346 = vmatpush.msra.mxu3 %v2091_v29  ;;  %v1933_v4 = vperm.slane %v3901_v22, 3  ;;  %v1932_v8 = vperm.slane %v3901_v22, 2  ;;  %v2000_v13 = vmul.f32 %v1992_v62, %v3760_v5  ;;  %v1927_v48 = vsel %vm258_vm0, %v3718_v47, %v3667_v50  ;;  %v2441_v5 = vld [vmem:[%s4076_s1 + $0x3] ss:$8 sm:$0xf] }
 0x71e   :  { %2282 = vmatpush.msra.mxu0 %v1938_v41  ;;  %v1902_v53 = vperm.slane %v2442_v33, 2  ;;  %v1970_v11 = vmul.f32 %v1962_v30, %v1954_v2  ;;  %v1971_v52 = vmul.f32 %v1963_v58, %v1957_v43  ;;  %v1903_v49 = vperm.slane %v2442_v33, 3  ;;  %v4098_v16 = vld [vmem:[#allocation4_spill] sm:$0xff]  ;;  %v1825_v56 = vpop.permute.xlu2 %1824  ;;  %v4101_v2 = vld [vmem:[#allocation5_spill] sm:$0xff] }
 0x71f   :  { %v3969_v38 = vpop.permute.xlu1 %1858  ;;  %2324 = vmatpush.msra.mxu2 %v2060_v6  ;;  %2347 = vmatpush.msra.mxu3 %v2061_v14  ;;  %v1894_v61 = vsel %vm226_vm1, %v3734_v39, %v3690_v46  ;;  %v1897_v50 = vsel %vm226_vm1, %v3690_v46, %v3688_v27  ;;  %v1941_v47 = vmul.f32 %v1933_v4, %v1927_v48  ;;  %v1900_v0 = vperm.slane %v2442_v33, 0  ;;  %v2440_v46 = vld [vmem:[%s4076_s1 + $0x4] ss:$8 sm:$0xf] }
 0x720   :  { %v3979_v57 = vpop.permute.xlu0 %1822  ;;  %v1940_v22 = vmul.f32 %v1932_v8, %v3730_v54  ;;  %v1901_v20 = vperm.slane %v2442_v33, 1  ;;  %v1910_v36 = vmul.f32 %v1902_v53, %v1894_v61  ;;  %v1868_v42 = vperm.slane %v2441_v5, 2  ;;  %v2194_v45 = vld [vmem:[%s4078_s2 + $0x48] sm:$0xff] }
 0x721   :  { %2325 = vmatpush.msra.mxu2 %v2030_v55  ;;  %2348 = vmatpush.msra.mxu3 %v2031_v21  ;;  %v1911_v59 = vmul.f32 %v1903_v49, %v1897_v50  ;;  %v1861_v26 = vsel %vm126_vm4, %v3700_v44, %v3940_v25  ;;  %v1869_v3 = vperm.slane %v2441_v5, 3  ;;  %v1838_v31 = vperm.slane %v2440_v46, 2  ;;  %v4100_v55 = vld [vmem:[#allocation6_spill] sm:$0xff] }
 0x722   :  { %v1860_v35 = vsel %vm126_vm4, %v3940_v25, %v3969_v38  ;;  %v1876_v24 = vmul.f32 %v1868_v42, %v1861_v26  ;;  %v1839_v32 = vperm.slane %v2440_v46, 3  ;;  %v1866_v25 = vperm.slane %v2441_v5, 0 }
 0x723   :  { %2326 = vmatpush.msra.mxu2 %v2000_v13  ;;  %2349 = vmatpush.msra.mxu3 %v2001_v17  ;;  %v1867_v40 = vperm.slane %v2441_v5, 1  ;;  %v1836_v19 = vperm.slane %v2440_v46, 0  ;;  %v1832_v41 = vsel %vm162_vm3, %v3979_v57, %v1825_v56  ;;  %v1837_v18 = vperm.slane %v2440_v46, 1 }
 0x725   :  { %2327 = vmatpush.msra.mxu2 %v1970_v11  ;;  %2350 = vmatpush.msra.mxu3 %v1971_v52  ;;  %v1844_v21 = vmul.f32 %v1836_v19, %v1832_v41 }
 0x727   :  { %v1827_v37 = vpop.permute.xlu1 %1826  ;;  %2328 = vmatpush.msra.mxu2 %v1940_v22  ;;  %2351 = vmatpush.msra.mxu3 %v1941_v47 }
 0x728   :  { %v1889_v54 = vpop.permute.xlu0 %1888  ;;  %v1830_v15 = vsel %vm162_vm3, %v1827_v37, %v1829_v63  ;;  %v1831_v14 = vsel %vm162_vm3, %v1825_v56, %v1827_v37 }
 0x729   :  { %v1895_v12 = vsel %vm226_vm1, %v1889_v54, %v3734_v39  ;;  %v1896_v28 = vsel %vm226_vm1, %v3688_v27, %v1889_v54  ;;  %2329 = vmatpush.msra.mxu2 %v1910_v36  ;;  %2352 = vmatpush.msra.mxu3 %v1911_v59  ;;  %v1833_v27 = vsel %vm162_vm3, %v1829_v63, %v3979_v57 }
 0x72a   :  { %v1908_v51 = vmul.f32 %v1900_v0, %v1896_v28  ;;  %v1909_v23 = vmul.f32 %v1901_v20, %v1895_v12  ;;  %v1877_v39 = vmul.f32 %v1869_v3, %v1860_v35  ;;  %v1846_v1 = vmul.f32 %v1838_v31, %v1830_v15 }
 0x72b   :  { %2330 = vmatpush.msra.mxu2 %v4096_v34  ;;  %2353 = vmatpush.msra.mxu3 %v4097_v10  ;;  %v1847_v29 = vmul.f32 %v1839_v32, %v1833_v27  ;;  %v1845_v43 = vmul.f32 %v1837_v18, %v1831_v14 }
 0x72c   :  { %2283 = vmatpush.msra.mxu0 %v1908_v51  ;;  %2306 = vmatpush.msra.mxu1 %v1909_v23 }
 0x72d   :  { %2331 = vmatpush.msra.mxu2 %v1876_v24  ;;  %2354 = vmatpush.msra.mxu3 %v1877_v39 }
 0x72e   :  { %2284 = vmatpush.msra.mxu0 %v4098_v16  ;;  %2307 = vmatpush.msra.mxu1 %v4099_v9 }
 0x72f   :  { %v1853_v60 = vpop.permute.xlu1 %1852  ;;  %2332 = vmatpush.msra.mxu2 %v1846_v1  ;;  %2355 = vmatpush.msra.mxu3 %v1847_v29 }
 0x730   :  { %v1862_v62 = vsel %vm126_vm4, %v1853_v60, %v3700_v44  ;;  %v1863_v6 = vsel %vm126_vm4, %v3969_v38, %v1853_v60  ;;  %v4102_v44 = vld [vmem:[#allocation3_spill] sm:$0xff]  ;;  %v4103_v38 = vld [vmem:[#allocation10_spill] sm:$0xff]  ;;  %v2265_v57 = vpop.permute.xlu0 %2264 }
 0x731   :  { %v1874_v30 = vmul.f32 %v1866_v25, %v1863_v6  ;;  %v1875_v58 = vmul.f32 %v1867_v40, %v1862_v62  ;;  %2333 = vmatpush.msra.mxu2 %v4100_v55  ;;  %2356 = vmatpush.msra.mxu3 %v4101_v2 }
 0x732   :  { %2334 = vmatmul.f32.vlgmr.msra.gmra.mxu2 %v2194_v45  ;;  %2357 = vmatmul.f32.vlgmr.msra.gmra.mxu3 %v2194_v45 }
 0x733   :  { %2285 = vmatpush.msra.mxu0 %v1874_v30  ;;  %2308 = vmatpush.msra.mxu1 %v1875_v58 }
 0x735   :  { %2286 = vmatpush.msra.mxu0 %v1844_v21  ;;  %2309 = vmatpush.msra.mxu1 %v1845_v43 }
 0x737   :  { %2287 = vmatpush.msra.mxu0 %v4102_v44  ;;  %2310 = vmatpush.msra.mxu1 %v4103_v38  ;;  %v2270_v52 = vpop.permute.xlu1 %2269 }
 0x738   :  { %2288 = vmatmul.f32.vlgmr.msra.gmra.mxu0 %v2194_v45  ;;  %2311 = vmatmul.f32.vlgmr.msra.gmra.mxu1 %v2194_v45 }
 0x73a   :  { %2337 = vmatmul.f32.gmra.mxu2 %v2195_v7  ;;  %2360 = vmatmul.f32.gmra.mxu3 %v2195_v7 }
 0x740   :  { %2291 = vmatmul.f32.gmra.mxu0 %v2195_v7  ;;  %2314 = vmatmul.f32.gmra.mxu1 %v2195_v7 }
 0x7b5   :  { %v2289_v33 = vpop.f32.mrf.mxu0  ;;  %v2335_v17 = vpop.f32.mrf.mxu2 }
 0x7b6   :  { %v2290_v4 = vadd.f32 %v2289_v33, %v2265_v57  ;;  %v2312_v8 = vpop.f32.mrf.mxu1  ;;  %v2336_v13 = vadd.f32 %v2335_v17, %v2265_v57  ;;  %v2358_v53 = vpop.f32.mrf.mxu3 }
 0x7b7   :  { %v2313_v48 = vadd.f32 %v2312_v8, %v2265_v57  ;;  %v2359_v11 = vadd.f32 %v2358_v53, %v2265_v57 }
 0x7b8   :  { %2364 = vst [vmem:[%s4079_s4] sm:$0xff] %v2290_v4 }
 0x7b9   :  { %2365 = vst [vmem:[%s4079_s4 + $0x8] sm:$0xff] %v2313_v48 }
 0x7ba   :  { %2366 = vst [vmem:[%s4079_s4 + $0x10] sm:$0xff] %v2336_v13 }
 0x7bb   :  { %2367 = vst [vmem:[%s4079_s4 + $0x18] sm:$0xff] %v2359_v11 }
 0x7bd   :  { %v2292_v49 = vpop.f32.mrf.mxu0  ;;  %v2338_v61 = vpop.f32.mrf.mxu2 }
 0x7be   :  { %v2293_v5 = vadd.f32 %v2292_v49, %v2270_v52  ;;  %v2315_v50 = vpop.f32.mrf.mxu1  ;;  %v2339_v47 = vadd.f32 %v2338_v61, %v2270_v52  ;;  %v2361_v63 = vpop.f32.mrf.mxu3 }
 0x7bf   :  { %v2316_v22 = vadd.f32 %v2315_v50, %v2270_v52  ;;  %v2362_v0 = vadd.f32 %v2361_v63, %v2270_v52 }
 0x7c0   :  { %2368 = vst [vmem:[%s4079_s4 + $0x20] sm:$0xff] %v2293_v5 }
 0x7c1   :  { %2369 = vst [vmem:[%s4079_s4 + $0x28] sm:$0xff] %v2316_v22 }
 0x7c2   :  { %2370 = vst [vmem:[%s4079_s4 + $0x30] sm:$0xff] %v2339_v47 }
 0x7c3   :  { %2371 = vst [vmem:[%s4079_s4 + $0x38] sm:$0xff] %v2362_v0 }

</bundles_post_ra>
